<compile_context>
chip_gen: v7x
topology: tpu7x:2x2x1
jax: 0.10.0
libtpu: 0.0.40
codegen_flags: <defaults>
</compile_context>

<pallas_src>
import math

import jax
import jax.numpy as jnp
from jax.experimental import pallas as pl
from jax.experimental.pallas import tpu as pltpu


# ---------------------------------------------------------------------------
# helpers
# ---------------------------------------------------------------------------
def _softplus(x):
    # numerically stable softplus == torch.nn.Softplus(beta=1)
    return jnp.logaddexp(x, 0.0)


def _full_spec(shape):
    zeros = (0,) * len(shape)
    return pl.BlockSpec(shape, lambda i, _z=zeros: _z)


# ---------------------------------------------------------------------------
# fused kernel: embedding + conv stack + per-neighbor head + crystal head
# ---------------------------------------------------------------------------
def fused_cgcnn_kernel(
    atom_ref, nbr2d_ref, padf_ref,
    eself_ref, enbr_ref, pool_ref, avg_ref, esite_ref,
    wemb_ref, bemb_ref,
    watom_ref, wbondall_ref, bconv_ref, s2_ref, t2_ref,
    w1a_ref, w1b_ref, b1_ref, wo_ref, bo_ref,
    wc1_ref, bc1_ref, wc2_ref, bc2_ref,
    out_ref, crys_ref,
):
    f32 = jnp.float32
    cdt = wemb_ref.dtype                 # MXU operand dtype (bf16 or f32)
    F = wemb_ref.shape[1]
    F2 = 2 * F
    n_conv = watom_ref.shape[0]

    def mm(a, b):
        # MXU matmul with f32 accumulation
        return jnp.dot(a.astype(cdt), b.astype(cdt), preferred_element_type=f32)

    # ---- embedding (atom_h stays resident for the whole forward) ---------
    atom_h = mm(atom_ref[...], wemb_ref[...]) + bemb_ref[...]        # (N, F)

    eself = eself_ref[...]               # (N*M, N)  row -> owning atom
    enbr = enbr_ref[...]                 # (N*M, N)  row -> neighbor atom
    pool = pool_ref[...]                 # (N, N*M)  padded neighbor pooling
    nbr2d = nbr2d_ref[...]               # (N*M, B)  f32 bond features
    bond_cdt = nbr2d.astype(cdt)

    # Bond projections of ALL conv layers are loop-invariant -> hoist them
    # into one wide matmul; per-layer slices below are 128-lane aligned.
    bond_proj = mm(bond_cdt, wbondall_ref[...])                      # (N*M, n_conv*2F)

    # ---- gated graph convolutions (python-unrolled, weights stacked) -----
    for l in range(n_conv):
        # fused self/nbr projection: atom_h @ [W_self | W_nbr] -> (N, 4F)
        proj = mm(atom_h, watom_ref[l])
        # fc_full with bn1 (eval) folded into weights/bias; the padded-row
        # conditional of the original is redundant (zeroed by pool below).
        gated = (mm(eself, proj[:, :F2]) + mm(enbr, proj[:, F2:])
                 + bond_proj[:, l * F2:(l + 1) * F2] + bconv_ref[l]) # (N*M, 2F)
        nbr_filter = jax.nn.sigmoid(gated[:, :F])
        nbr_core = _softplus(gated[:, F:])
        # masked sum over neighbors, done in the 2-D layout on the MXU
        nbr_sumed = mm(pool, nbr_filter * nbr_core)                  # (N, F)
        nbr_sumed = nbr_sumed * s2_ref[l] + t2_ref[l]                # bn2 (eval)
        atom_h = _softplus(atom_h + nbr_sumed)

    # ---- per-neighbor prediction head (split matmul, no concat) ----------
    avg = mm(avg_ref[...], atom_h)                                   # (N*M, F)
    h = _softplus(mm(_softplus(avg), w1a_ref[...])
                  + mm(_softplus(nbr2d), w1b_ref[...]) + b1_ref[...])
    o = mm(h, wo_ref[...]) + bo_ref[...]                             # (N*M, P)
    out_ref[...] = o * padf_ref[...]

    # ---- crystal-site head ------------------------------------------------
    crys_in = mm(esite_ref[...], atom_h)                             # (K, F)
    c = _softplus(mm(_softplus(crys_in), wc1_ref[...]) + bc1_ref[...])
    crys_ref[...] = mm(c, wc2_ref[...]) + bc2_ref[...]               # (K, 3)


# ---------------------------------------------------------------------------
# model wrapper
# ---------------------------------------------------------------------------
def _init_linear(key, fan_in, fan_out):
    """PyTorch nn.Linear-style uniform init; stored transposed as (in, out)."""
    kw, kb = jax.random.split(key)
    bound = 1.0 / math.sqrt(float(fan_in))
    w = jax.random.uniform(kw, (fan_in, fan_out), jnp.float32, -bound, bound)
    b = jax.random.uniform(kb, (1, fan_out), jnp.float32, -bound, bound)
    return w, b


def _bn_affine(num_features, eps=1e-5):
    """Eval-mode BatchNorm1d with default params -> per-channel scale/shift."""
    gamma = jnp.ones((num_features,), jnp.float32)
    beta = jnp.zeros((num_features,), jnp.float32)
    rmean = jnp.zeros((num_features,), jnp.float32)
    rvar = jnp.ones((num_features,), jnp.float32)
    scale = gamma / jnp.sqrt(rvar + eps)
    shift = beta - rmean * scale
    return scale[None, :], shift[None, :]


class CrystalGraphConvNetPallas:
    def __init__(self, key, orig_atom_fea_len, nbr_fea_len, atom_fea_len=64,
                 n_conv=3, h_fea_len=128, n_h=1, model_num_input=1,
                 compute_dtype=jnp.bfloat16):
        self.F = atom_fea_len
        self.B = nbr_fea_len
        self.H = h_fea_len
        self.P = model_num_input
        self.n_conv = n_conv
        self.cdt = compute_dtype

        F, B, H = atom_fea_len, nbr_fea_len, h_fea_len
        keys = jax.random.split(key, n_conv + 5)

        # embedding
        w_emb, b_emb = _init_linear(keys[0], orig_atom_fea_len, F)
        self.w_emb = w_emb.astype(compute_dtype)
        self.b_emb = b_emb

        # conv layers: fold eval-mode bn1 into fc_full, split W into row blocks
        watom, wbond, bconv, s2s, t2s = [], [], [], [], []
        for c in range(n_conv):
            w, b = _init_linear(keys[1 + c], 2 * F + B, 2 * F)
            s1, t1 = _bn_affine(2 * F)
            w = w * s1                       # column-wise bn1 scale folded in
            b = b * s1 + t1
            s2, t2 = _bn_affine(F)
            # fused self/nbr block: (F, 4F) = [W_self | W_nbr]
            watom.append(jnp.concatenate([w[:F, :], w[F:2 * F, :]], axis=1))
            wbond.append(w[2 * F:, :])       # (B, 2F)
            bconv.append(b)
            s2s.append(s2)
            t2s.append(t2)
        self.w_atom = jnp.stack(watom).astype(compute_dtype)        # (n_conv, F, 4F)
        self.w_bond_all = jnp.concatenate(wbond, axis=1).astype(compute_dtype)  # (B, n_conv*2F)
        self.b_conv = jnp.stack(bconv)                               # (n_conv, 1, 2F)
        self.s2 = jnp.stack(s2s)                                     # (n_conv, 1, F)
        self.t2 = jnp.stack(t2s)                                     # (n_conv, 1, F)

        # per-neighbor head: conv_to_fc split into avg-part / bond-part rows
        w1, b1 = _init_linear(keys[1 + n_conv], F + B, H)
        self.w1_avg = w1[:F, :].astype(compute_dtype)                # (F, H)
        self.w1_bond = w1[F:, :].astype(compute_dtype)               # (B, H)
        self.b1 = b1
        wo, bo = _init_linear(keys[2 + n_conv], H, model_num_input)
        self.w_out = wo.astype(compute_dtype)
        self.b_out = bo

        # crystal-site head
        wc1, bc1 = _init_linear(keys[3 + n_conv], F, H)
        self.w_c1 = wc1.astype(compute_dtype)
        self.b_c1 = bc1
        wc2, bc2 = _init_linear(keys[4 + n_conv], H, 3)
        self.w_c2 = wc2.astype(compute_dtype)
        self.b_c2 = bc2

    def __call__(self, atom_fea, nbr_fea, nbr_fea_idx,
                 tabulated_padding_fillter, crystal_atom_idx, site_idx):
        N, M = nbr_fea_idx.shape
        F, B, H, P = self.F, self.B, self.H, self.P
        NM = N * M
        K = site_idx.shape[0]
        cdt = self.cdt

        # -------- host-side data prep (independent of atom_h) --------------
        pad_flat = tabulated_padding_fillter.astype(jnp.float32).reshape(NM, 1)
        nbr2d = nbr_fea.astype(jnp.float32).reshape(NM, B)

        atoms = jnp.arange(N, dtype=jnp.int32)
        idx_flat = nbr_fea_idx.reshape(NM)
        onehot_nbr = (idx_flat[:, None] == atoms[None, :]).astype(jnp.float32)
        row_atom = jnp.repeat(jnp.arange(N, dtype=jnp.int32), M)
        expand_self = (row_atom[:, None] == atoms[None, :]).astype(jnp.float32)
        avg_mat = 0.5 * (expand_self + onehot_nbr)               # (NM, N)
        pool_pad = (expand_self * pad_flat).T                    # (N, NM), pad baked in
        onehot_site = (site_idx[:, None] == atoms[None, :]).astype(jnp.float32)

        inputs = (
            atom_fea.astype(jnp.float32), nbr2d, pad_flat,
            expand_self.astype(cdt), onehot_nbr.astype(cdt),
            pool_pad.astype(cdt), avg_mat.astype(cdt), onehot_site.astype(cdt),
            self.w_emb, self.b_emb,
            self.w_atom, self.w_bond_all, self.b_conv, self.s2, self.t2,
            self.w1_avg, self.w1_bond, self.b1, self.w_out, self.b_out,
            self.w_c1, self.b_c1, self.w_c2, self.b_c2,
        )
        out_shapes = (
            jax.ShapeDtypeStruct((NM, P), jnp.float32),
            jax.ShapeDtypeStruct((K, 3), jnp.float32),
        )

        # rough advisory cost estimate for the fused custom call
        ORIG = atom_fea.shape[1]
        flops = 2 * (
            N * ORIG * F
            + NM * B * self.n_conv * 2 * F                      # hoisted bond proj
            + self.n_conv * (N * F * 4 * F + 2 * NM * N * 2 * F + N * NM * F)
            + NM * N * F + NM * F * H + NM * B * H + NM * H * P
            + K * N * F + K * F * H + K * H * 3
        )
        transcendentals = (self.n_conv * (NM * 2 * F + N * F)
                           + NM * (F + B) + NM * H + K * (F + H))
        bytes_accessed = (
            sum(int(x.size) * jnp.dtype(x.dtype).itemsize for x in inputs)
            + sum(math.prod(s.shape) * jnp.dtype(s.dtype).itemsize
                  for s in out_shapes)
        )

        # NOTE: the whole graph is resident in VMEM (a few hundred KiB here);
        # for much larger graphs the conv stack would need an N-tiled grid.
        fused = pl.pallas_call(
            fused_cgcnn_kernel,
            grid=(1,),
            in_specs=[_full_spec(x.shape) for x in inputs],
            out_specs=tuple(_full_spec(s.shape) for s in out_shapes),
            out_shape=out_shapes,
            compiler_params=pltpu.CompilerParams(
                dimension_semantics=("arbitrary",),
                vmem_limit_bytes=32 * 1024 * 1024),
            cost_estimate=pl.CostEstimate(
                flops=int(flops),
                transcendentals=int(transcendentals),
                bytes_accessed=int(bytes_accessed)),
        )
        out_flat, out_crys = fused(*inputs)
        return out_flat.reshape(N, M, P), out_crys


# ---------------------------------------------------------------------------
# main
# ---------------------------------------------------------------------------
if __name__ == "__main__":
    key = jax.random.PRNGKey(0)
    k_model, k_atom, k_nbr, k_idx, k_pad = jax.random.split(key, 5)

    # small but representative shapes; feature dims chosen lane-friendly
    N, M = 8, 8                       # atoms, max neighbors
    ORIG, NBR = 16, 16                # orig atom features, bond features
    ATOM_F, H = 64, 128               # 2*ATOM_F = 128, h_fea_len = 128

    atom_fea = jax.random.normal(k_atom, (N, ORIG), jnp.float32)
    nbr_fea = jax.random.normal(k_nbr, (N, M, NBR), jnp.float32)
    nbr_fea_idx = jax.random.randint(k_idx, (N, M), 0, N, jnp.int32)
    pad = (jax.random.uniform(k_pad, (N, M)) > 0.3).astype(jnp.float32)
    pad = pad.at[:, 0].set(1.0)       # every atom has >=1 real neighbor
    crystal_atom_idx = [jnp.arange(N, dtype=jnp.int32)]   # unused in forward
    site_idx = jnp.array([0, 3], dtype=jnp.int32)

    model = CrystalGraphConvNetPallas(
        k_model, orig_atom_fea_len=ORIG, nbr_fea_len=NBR,
        atom_fea_len=ATOM_F, n_conv=3, h_fea_len=H, n_h=1, model_num_input=1)

    out, out_crys = model(atom_fea, nbr_fea, nbr_fea_idx, pad,
                          crystal_atom_idx, site_idx)
    jax.block_until_ready(out)
    jax.block_until_ready(out_crys)

    assert out.shape == (N, M, 1)
    assert out_crys.shape == (site_idx.shape[0], 3)
    assert jnp.all(jnp.isfinite(out)) and jnp.all(jnp.isfinite(out_crys))
    print("KERNEL_OK")
</pallas_src>

<mosaic_0001>
module attributes {stable_mosaic.version = 11 : i64} {
  func.func @fused_cgcnn_kernel(%arg0: i32, %arg1: memref<8x16xf32, #tpu.memory_space<vmem>>, %arg2: memref<64x16xf32, #tpu.memory_space<vmem>>, %arg3: memref<64x1xf32, #tpu.memory_space<vmem>>, %arg4: memref<64x8xbf16, #tpu.memory_space<vmem>>, %arg5: memref<64x8xbf16, #tpu.memory_space<vmem>>, %arg6: memref<8x64xbf16, #tpu.memory_space<vmem>>, %arg7: memref<64x8xbf16, #tpu.memory_space<vmem>>, %arg8: memref<2x8xbf16, #tpu.memory_space<vmem>>, %arg9: memref<16x64xbf16, #tpu.memory_space<vmem>>, %arg10: memref<1x64xf32, #tpu.memory_space<vmem>>, %arg11: memref<3x64x256xbf16, #tpu.memory_space<vmem>>, %arg12: memref<16x384xbf16, #tpu.memory_space<vmem>>, %arg13: memref<3x1x128xf32, #tpu.memory_space<vmem>>, %arg14: memref<3x1x64xf32, #tpu.memory_space<vmem>>, %arg15: memref<3x1x64xf32, #tpu.memory_space<vmem>>, %arg16: memref<64x128xbf16, #tpu.memory_space<vmem>>, %arg17: memref<16x128xbf16, #tpu.memory_space<vmem>>, %arg18: memref<1x128xf32, #tpu.memory_space<vmem>>, %arg19: memref<128x1xbf16, #tpu.memory_space<vmem>>, %arg20: memref<1x1xf32, #tpu.memory_space<vmem>>, %arg21: memref<64x128xbf16, #tpu.memory_space<vmem>>, %arg22: memref<1x128xf32, #tpu.memory_space<vmem>>, %arg23: memref<128x3xbf16, #tpu.memory_space<vmem>>, %arg24: memref<1x3xf32, #tpu.memory_space<vmem>>, %arg25: memref<64x1xf32, #tpu.memory_space<vmem>>, %arg26: memref<2x3xf32, #tpu.memory_space<vmem>>) attributes {dimension_semantics = [#tpu.dimension_semantics<arbitrary>], iteration_bounds = array<i64: 1>, scalar_prefetch = 0 : i64, scratch_operands = 0 : i64, tpu.core_type = #tpu.core_type<tc>, window_params = [{pipeline_mode = #tpu.pipeline_mode<synchronous>, transform_indices = @transform_0, window_bounds = array<i64: 8, 16>}, {pipeline_mode = #tpu.pipeline_mode<synchronous>, transform_indices = @transform_1, window_bounds = array<i64: 64, 16>}, {pipeline_mode = #tpu.pipeline_mode<synchronous>, transform_indices = @transform_2, window_bounds = array<i64: 64, 1>}, {pipeline_mode = #tpu.pipeline_mode<synchronous>, transform_indices = @transform_3, window_bounds = array<i64: 64, 8>}, {pipeline_mode = #tpu.pipeline_mode<synchronous>, transform_indices = @transform_4, window_bounds = array<i64: 64, 8>}, {pipeline_mode = #tpu.pipeline_mode<synchronous>, transform_indices = @transform_5, window_bounds = array<i64: 8, 64>}, {pipeline_mode = #tpu.pipeline_mode<synchronous>, transform_indices = @transform_6, window_bounds = array<i64: 64, 8>}, {pipeline_mode = #tpu.pipeline_mode<synchronous>, transform_indices = @transform_7, window_bounds = array<i64: 2, 8>}, {pipeline_mode = #tpu.pipeline_mode<synchronous>, transform_indices = @transform_8, window_bounds = array<i64: 16, 64>}, {pipeline_mode = #tpu.pipeline_mode<synchronous>, transform_indices = @transform_9, window_bounds = array<i64: 1, 64>}, {pipeline_mode = #tpu.pipeline_mode<synchronous>, transform_indices = @transform_10, window_bounds = array<i64: 3, 64, 256>}, {pipeline_mode = #tpu.pipeline_mode<synchronous>, transform_indices = @transform_11, window_bounds = array<i64: 16, 384>}, {pipeline_mode = #tpu.pipeline_mode<synchronous>, transform_indices = @transform_12, window_bounds = array<i64: 3, 1, 128>}, {pipeline_mode = #tpu.pipeline_mode<synchronous>, transform_indices = @transform_13, window_bounds = array<i64: 3, 1, 64>}, {pipeline_mode = #tpu.pipeline_mode<synchronous>, transform_indices = @transform_14, window_bounds = array<i64: 3, 1, 64>}, {pipeline_mode = #tpu.pipeline_mode<synchronous>, transform_indices = @transform_15, window_bounds = array<i64: 64, 128>}, {pipeline_mode = #tpu.pipeline_mode<synchronous>, transform_indices = @transform_16, window_bounds = array<i64: 16, 128>}, {pipeline_mode = #tpu.pipeline_mode<synchronous>, transform_indices = @transform_17, window_bounds = array<i64: 1, 128>}, {pipeline_mode = #tpu.pipeline_mode<synchronous>, transform_indices = @transform_18, window_bounds = array<i64: 128, 1>}, {pipeline_mode = #tpu.pipeline_mode<synchronous>, transform_indices = @transform_19, window_bounds = array<i64: 1, 1>}, {pipeline_mode = #tpu.pipeline_mode<synchronous>, transform_indices = @transform_20, window_bounds = array<i64: 64, 128>}, {pipeline_mode = #tpu.pipeline_mode<synchronous>, transform_indices = @transform_21, window_bounds = array<i64: 1, 128>}, {pipeline_mode = #tpu.pipeline_mode<synchronous>, transform_indices = @transform_22, window_bounds = array<i64: 128, 3>}, {pipeline_mode = #tpu.pipeline_mode<synchronous>, transform_indices = @transform_23, window_bounds = array<i64: 1, 3>}, {pipeline_mode = #tpu.pipeline_mode<synchronous>, transform_indices = @transform_24, window_bounds = array<i64: 64, 1>}, {pipeline_mode = #tpu.pipeline_mode<synchronous>, transform_indices = @transform_25, window_bounds = array<i64: 2, 3>}]} {
    %c0 = arith.constant 0 : index
    %c0_0 = arith.constant 0 : index
    %0 = vector.load %arg1[%c0, %c0_0] : memref<8x16xf32, #tpu.memory_space<vmem>>, vector<8x16xf32>
    %c0_1 = arith.constant 0 : index
    %c0_2 = arith.constant 0 : index
    %1 = vector.load %arg9[%c0_1, %c0_2] : memref<16x64xbf16, #tpu.memory_space<vmem>>, vector<16x64xbf16>
    %2 = arith.truncf %0 : vector<8x16xf32> to vector<8x16xbf16>
    %cst = arith.constant dense<0.000000e+00> : vector<8x64xf32>
    %3 = tpu.matmul %2, %1, %cst {dimension_numbers = #tpu.dot_dimension_numbers<[1], [0], [0], [1], [0, 0, 1, 1], [], []>} : vector<8x16xbf16>, vector<16x64xbf16>, vector<8x64xf32> -> vector<8x64xf32>
    %c0_3 = arith.constant 0 : index
    %c0_4 = arith.constant 0 : index
    %4 = vector.load %arg10[%c0_3, %c0_4] : memref<1x64xf32, #tpu.memory_space<vmem>>, vector<1x64xf32>
    %5 = vector.broadcast %4 : vector<1x64xf32> to vector<8x64xf32>
    %6 = arith.addf %3, %5 : vector<8x64xf32>
    %c0_5 = arith.constant 0 : index
    %c0_6 = arith.constant 0 : index
    %7 = vector.load %arg4[%c0_5, %c0_6] : memref<64x8xbf16, #tpu.memory_space<vmem>>, vector<64x8xbf16>
    %c0_7 = arith.constant 0 : index
    %c0_8 = arith.constant 0 : index
    %8 = vector.load %arg5[%c0_7, %c0_8] : memref<64x8xbf16, #tpu.memory_space<vmem>>, vector<64x8xbf16>
    %c0_9 = arith.constant 0 : index
    %c0_10 = arith.constant 0 : index
    %9 = vector.load %arg6[%c0_9, %c0_10] : memref<8x64xbf16, #tpu.memory_space<vmem>>, vector<8x64xbf16>
    %c0_11 = arith.constant 0 : index
    %c0_12 = arith.constant 0 : index
    %10 = vector.load %arg2[%c0_11, %c0_12] : memref<64x16xf32, #tpu.memory_space<vmem>>, vector<64x16xf32>
    %11 = arith.truncf %10 : vector<64x16xf32> to vector<64x16xbf16>
    %c0_13 = arith.constant 0 : index
    %c0_14 = arith.constant 0 : index
    %12 = vector.load %arg12[%c0_13, %c0_14] : memref<16x384xbf16, #tpu.memory_space<vmem>>, vector<16x384xbf16>
    %cst_15 = arith.constant dense<0.000000e+00> : vector<64x384xf32>
    %13 = tpu.matmul %11, %12, %cst_15 {dimension_numbers = #tpu.dot_dimension_numbers<[1], [0], [0], [1], [0, 0, 1, 1], [], []>} : vector<64x16xbf16>, vector<16x384xbf16>, vector<64x384xf32> -> vector<64x384xf32>
    %c0_16 = arith.constant 0 : index
    %c0_17 = arith.constant 0 : index
    %c0_18 = arith.constant 0 : index
    %14 = vector.load %arg11[%c0_16, %c0_17, %c0_18] : memref<3x64x256xbf16, #tpu.memory_space<vmem>>, vector<1x64x256xbf16>
    %15 = vector.shape_cast %14 : vector<1x64x256xbf16> to vector<64x256xbf16>
    %16 = arith.truncf %6 : vector<8x64xf32> to vector<8x64xbf16>
    %cst_19 = arith.constant dense<0.000000e+00> : vector<8x256xf32>
    %17 = tpu.matmul %16, %15, %cst_19 {dimension_numbers = #tpu.dot_dimension_numbers<[1], [0], [0], [1], [0, 0, 1, 1], [], []>} : vector<8x64xbf16>, vector<64x256xbf16>, vector<8x256xf32> -> vector<8x256xf32>
    %18 = vector.extract_strided_slice %17 {offsets = [0, 0], sizes = [8, 128], strides = [1, 1]} : vector<8x256xf32> to vector<8x128xf32>
    %19 = arith.truncf %18 : vector<8x128xf32> to vector<8x128xbf16>
    %cst_20 = arith.constant dense<0.000000e+00> : vector<64x128xf32>
    %20 = tpu.matmul %7, %19, %cst_20 {dimension_numbers = #tpu.dot_dimension_numbers<[1], [0], [0], [1], [0, 0, 1, 1], [], []>} : vector<64x8xbf16>, vector<8x128xbf16>, vector<64x128xf32> -> vector<64x128xf32>
    %21 = vector.extract_strided_slice %17 {offsets = [0, 128], sizes = [8, 128], strides = [1, 1]} : vector<8x256xf32> to vector<8x128xf32>
    %22 = arith.truncf %21 : vector<8x128xf32> to vector<8x128xbf16>
    %cst_21 = arith.constant dense<0.000000e+00> : vector<64x128xf32>
    %23 = tpu.matmul %8, %22, %cst_21 {dimension_numbers = #tpu.dot_dimension_numbers<[1], [0], [0], [1], [0, 0, 1, 1], [], []>} : vector<64x8xbf16>, vector<8x128xbf16>, vector<64x128xf32> -> vector<64x128xf32>
    %24 = arith.addf %20, %23 : vector<64x128xf32>
    %25 = vector.extract_strided_slice %13 {offsets = [0, 0], sizes = [64, 128], strides = [1, 1]} : vector<64x384xf32> to vector<64x128xf32>
    %26 = arith.addf %24, %25 : vector<64x128xf32>
    %c0_22 = arith.constant 0 : index
    %c0_23 = arith.constant 0 : index
    %c0_24 = arith.constant 0 : index
    %27 = vector.load %arg13[%c0_22, %c0_23, %c0_24] : memref<3x1x128xf32, #tpu.memory_space<vmem>>, vector<1x1x128xf32>
    %28 = vector.shape_cast %27 : vector<1x1x128xf32> to vector<1x128xf32>
    %29 = vector.broadcast %28 : vector<1x128xf32> to vector<64x128xf32>
    %30 = arith.addf %26, %29 : vector<64x128xf32>
    %31 = vector.extract_strided_slice %30 {offsets = [0, 0], sizes = [64, 64], strides = [1, 1]} : vector<64x128xf32> to vector<64x64xf32>
    %32 = arith.negf %31 : vector<64x64xf32>
    %33 = math.exp %32 : vector<64x64xf32>
    %cst_25 = arith.constant 1.000000e+00 : f32
    %34 = vector.broadcast %cst_25 : f32 to vector<64x64xf32>
    %35 = arith.addf %34, %33 : vector<64x64xf32>
    %36 = arith.divf %34, %35 : vector<64x64xf32>
    %37 = vector.extract_strided_slice %30 {offsets = [0, 64], sizes = [64, 64], strides = [1, 1]} : vector<64x128xf32> to vector<64x64xf32>
    %cst_26 = arith.constant 0.000000e+00 : f32
    %38 = vector.broadcast %cst_26 : f32 to vector<64x64xf32>
    %39 = arith.maximumf %37, %38 : vector<64x64xf32>
    %40 = vector.broadcast %cst_26 : f32 to vector<64x64xf32>
    %41 = arith.subf %37, %40 : vector<64x64xf32>
    %42 = arith.cmpf one, %41, %41 : vector<64x64xf32>
    %43 = vector.broadcast %cst_26 : f32 to vector<64x64xf32>
    %44 = arith.addf %37, %43 : vector<64x64xf32>
    %45 = math.absf %41 : vector<64x64xf32>
    %cst_27 = arith.constant 0.000000e+00 : f32
    %46 = vector.broadcast %cst_27 : f32 to vector<64x64xf32>
    %47 = arith.subf %46, %45 : vector<64x64xf32>
    %48 = math.exp %47 : vector<64x64xf32>
    %49 = math.log1p %48 : vector<64x64xf32>
    %50 = arith.addf %39, %49 : vector<64x64xf32>
    %51 = arith.select %42, %44, %50 : vector<64x64xi1>, vector<64x64xf32>
    %52 = arith.mulf %36, %51 : vector<64x64xf32>
    %53 = arith.truncf %52 : vector<64x64xf32> to vector<64x64xbf16>
    %cst_28 = arith.constant dense<0.000000e+00> : vector<8x64xf32>
    %54 = tpu.matmul %9, %53, %cst_28 {dimension_numbers = #tpu.dot_dimension_numbers<[1], [0], [0], [1], [0, 0, 1, 1], [], []>} : vector<8x64xbf16>, vector<64x64xbf16>, vector<8x64xf32> -> vector<8x64xf32>
    %c0_29 = arith.constant 0 : index
    %c0_30 = arith.constant 0 : index
    %c0_31 = arith.constant 0 : index
    %55 = vector.load %arg14[%c0_29, %c0_30, %c0_31] : memref<3x1x64xf32, #tpu.memory_space<vmem>>, vector<1x1x64xf32>
    %56 = vector.shape_cast %55 : vector<1x1x64xf32> to vector<1x64xf32>
    %57 = vector.broadcast %56 : vector<1x64xf32> to vector<8x64xf32>
    %58 = arith.mulf %54, %57 : vector<8x64xf32>
    %c0_32 = arith.constant 0 : index
    %c0_33 = arith.constant 0 : index
    %c0_34 = arith.constant 0 : index
    %59 = vector.load %arg15[%c0_32, %c0_33, %c0_34] : memref<3x1x64xf32, #tpu.memory_space<vmem>>, vector<1x1x64xf32>
    %60 = vector.shape_cast %59 : vector<1x1x64xf32> to vector<1x64xf32>
    %61 = vector.broadcast %60 : vector<1x64xf32> to vector<8x64xf32>
    %62 = arith.addf %58, %61 : vector<8x64xf32>
    %63 = arith.addf %6, %62 : vector<8x64xf32>
    %cst_35 = arith.constant 0.000000e+00 : f32
    %64 = vector.broadcast %cst_35 : f32 to vector<8x64xf32>
    %65 = arith.maximumf %63, %64 : vector<8x64xf32>
    %66 = vector.broadcast %cst_35 : f32 to vector<8x64xf32>
    %67 = arith.subf %63, %66 : vector<8x64xf32>
    %68 = arith.cmpf one, %67, %67 : vector<8x64xf32>
    %69 = vector.broadcast %cst_35 : f32 to vector<8x64xf32>
    %70 = arith.addf %63, %69 : vector<8x64xf32>
    %71 = math.absf %67 : vector<8x64xf32>
    %cst_36 = arith.constant 0.000000e+00 : f32
    %72 = vector.broadcast %cst_36 : f32 to vector<8x64xf32>
    %73 = arith.subf %72, %71 : vector<8x64xf32>
    %74 = math.exp %73 : vector<8x64xf32>
    %75 = math.log1p %74 : vector<8x64xf32>
    %76 = arith.addf %65, %75 : vector<8x64xf32>
    %77 = arith.select %68, %70, %76 : vector<8x64xi1>, vector<8x64xf32>
    %c1 = arith.constant 1 : index
    %c0_37 = arith.constant 0 : index
    %c0_38 = arith.constant 0 : index
    %78 = vector.load %arg11[%c1, %c0_37, %c0_38] : memref<3x64x256xbf16, #tpu.memory_space<vmem>>, vector<1x64x256xbf16>
    %79 = vector.shape_cast %78 : vector<1x64x256xbf16> to vector<64x256xbf16>
    %80 = arith.truncf %77 : vector<8x64xf32> to vector<8x64xbf16>
    %cst_39 = arith.constant dense<0.000000e+00> : vector<8x256xf32>
    %81 = tpu.matmul %80, %79, %cst_39 {dimension_numbers = #tpu.dot_dimension_numbers<[1], [0], [0], [1], [0, 0, 1, 1], [], []>} : vector<8x64xbf16>, vector<64x256xbf16>, vector<8x256xf32> -> vector<8x256xf32>
    %82 = vector.extract_strided_slice %81 {offsets = [0, 0], sizes = [8, 128], strides = [1, 1]} : vector<8x256xf32> to vector<8x128xf32>
    %83 = arith.truncf %82 : vector<8x128xf32> to vector<8x128xbf16>
    %cst_40 = arith.constant dense<0.000000e+00> : vector<64x128xf32>
    %84 = tpu.matmul %7, %83, %cst_40 {dimension_numbers = #tpu.dot_dimension_numbers<[1], [0], [0], [1], [0, 0, 1, 1], [], []>} : vector<64x8xbf16>, vector<8x128xbf16>, vector<64x128xf32> -> vector<64x128xf32>
    %85 = vector.extract_strided_slice %81 {offsets = [0, 128], sizes = [8, 128], strides = [1, 1]} : vector<8x256xf32> to vector<8x128xf32>
    %86 = arith.truncf %85 : vector<8x128xf32> to vector<8x128xbf16>
    %cst_41 = arith.constant dense<0.000000e+00> : vector<64x128xf32>
    %87 = tpu.matmul %8, %86, %cst_41 {dimension_numbers = #tpu.dot_dimension_numbers<[1], [0], [0], [1], [0, 0, 1, 1], [], []>} : vector<64x8xbf16>, vector<8x128xbf16>, vector<64x128xf32> -> vector<64x128xf32>
    %88 = arith.addf %84, %87 : vector<64x128xf32>
    %89 = vector.extract_strided_slice %13 {offsets = [0, 128], sizes = [64, 128], strides = [1, 1]} : vector<64x384xf32> to vector<64x128xf32>
    %90 = arith.addf %88, %89 : vector<64x128xf32>
    %c1_42 = arith.constant 1 : index
    %c0_43 = arith.constant 0 : index
    %c0_44 = arith.constant 0 : index
    %91 = vector.load %arg13[%c1_42, %c0_43, %c0_44] : memref<3x1x128xf32, #tpu.memory_space<vmem>>, vector<1x1x128xf32>
    %92 = vector.shape_cast %91 : vector<1x1x128xf32> to vector<1x128xf32>
    %93 = vector.broadcast %92 : vector<1x128xf32> to vector<64x128xf32>
    %94 = arith.addf %90, %93 : vector<64x128xf32>
    %95 = vector.extract_strided_slice %94 {offsets = [0, 0], sizes = [64, 64], strides = [1, 1]} : vector<64x128xf32> to vector<64x64xf32>
    %96 = arith.negf %95 : vector<64x64xf32>
    %97 = math.exp %96 : vector<64x64xf32>
    %cst_45 = arith.constant 1.000000e+00 : f32
    %98 = vector.broadcast %cst_45 : f32 to vector<64x64xf32>
    %99 = arith.addf %98, %97 : vector<64x64xf32>
    %100 = arith.divf %98, %99 : vector<64x64xf32>
    %101 = vector.extract_strided_slice %94 {offsets = [0, 64], sizes = [64, 64], strides = [1, 1]} : vector<64x128xf32> to vector<64x64xf32>
    %cst_46 = arith.constant 0.000000e+00 : f32
    %102 = vector.broadcast %cst_46 : f32 to vector<64x64xf32>
    %103 = arith.maximumf %101, %102 : vector<64x64xf32>
    %104 = vector.broadcast %cst_46 : f32 to vector<64x64xf32>
    %105 = arith.subf %101, %104 : vector<64x64xf32>
    %106 = arith.cmpf one, %105, %105 : vector<64x64xf32>
    %107 = vector.broadcast %cst_46 : f32 to vector<64x64xf32>
    %108 = arith.addf %101, %107 : vector<64x64xf32>
    %109 = math.absf %105 : vector<64x64xf32>
    %cst_47 = arith.constant 0.000000e+00 : f32
    %110 = vector.broadcast %cst_47 : f32 to vector<64x64xf32>
    %111 = arith.subf %110, %109 : vector<64x64xf32>
    %112 = math.exp %111 : vector<64x64xf32>
    %113 = math.log1p %112 : vector<64x64xf32>
    %114 = arith.addf %103, %113 : vector<64x64xf32>
    %115 = arith.select %106, %108, %114 : vector<64x64xi1>, vector<64x64xf32>
    %116 = arith.mulf %100, %115 : vector<64x64xf32>
    %117 = arith.truncf %116 : vector<64x64xf32> to vector<64x64xbf16>
    %cst_48 = arith.constant dense<0.000000e+00> : vector<8x64xf32>
    %118 = tpu.matmul %9, %117, %cst_48 {dimension_numbers = #tpu.dot_dimension_numbers<[1], [0], [0], [1], [0, 0, 1, 1], [], []>} : vector<8x64xbf16>, vector<64x64xbf16>, vector<8x64xf32> -> vector<8x64xf32>
    %c1_49 = arith.constant 1 : index
    %c0_50 = arith.constant 0 : index
    %c0_51 = arith.constant 0 : index
    %119 = vector.load %arg14[%c1_49, %c0_50, %c0_51] : memref<3x1x64xf32, #tpu.memory_space<vmem>>, vector<1x1x64xf32>
    %120 = vector.shape_cast %119 : vector<1x1x64xf32> to vector<1x64xf32>
    %121 = vector.broadcast %120 : vector<1x64xf32> to vector<8x64xf32>
    %122 = arith.mulf %118, %121 : vector<8x64xf32>
    %c1_52 = arith.constant 1 : index
    %c0_53 = arith.constant 0 : index
    %c0_54 = arith.constant 0 : index
    %123 = vector.load %arg15[%c1_52, %c0_53, %c0_54] : memref<3x1x64xf32, #tpu.memory_space<vmem>>, vector<1x1x64xf32>
    %124 = vector.shape_cast %123 : vector<1x1x64xf32> to vector<1x64xf32>
    %125 = vector.broadcast %124 : vector<1x64xf32> to vector<8x64xf32>
    %126 = arith.addf %122, %125 : vector<8x64xf32>
    %127 = arith.addf %77, %126 : vector<8x64xf32>
    %cst_55 = arith.constant 0.000000e+00 : f32
    %128 = vector.broadcast %cst_55 : f32 to vector<8x64xf32>
    %129 = arith.maximumf %127, %128 : vector<8x64xf32>
    %130 = vector.broadcast %cst_55 : f32 to vector<8x64xf32>
    %131 = arith.subf %127, %130 : vector<8x64xf32>
    %132 = arith.cmpf one, %131, %131 : vector<8x64xf32>
    %133 = vector.broadcast %cst_55 : f32 to vector<8x64xf32>
    %134 = arith.addf %127, %133 : vector<8x64xf32>
    %135 = math.absf %131 : vector<8x64xf32>
    %cst_56 = arith.constant 0.000000e+00 : f32
    %136 = vector.broadcast %cst_56 : f32 to vector<8x64xf32>
    %137 = arith.subf %136, %135 : vector<8x64xf32>
    %138 = math.exp %137 : vector<8x64xf32>
    %139 = math.log1p %138 : vector<8x64xf32>
    %140 = arith.addf %129, %139 : vector<8x64xf32>
    %141 = arith.select %132, %134, %140 : vector<8x64xi1>, vector<8x64xf32>
    %c2 = arith.constant 2 : index
    %c0_57 = arith.constant 0 : index
    %c0_58 = arith.constant 0 : index
    %142 = vector.load %arg11[%c2, %c0_57, %c0_58] : memref<3x64x256xbf16, #tpu.memory_space<vmem>>, vector<1x64x256xbf16>
    %143 = vector.shape_cast %142 : vector<1x64x256xbf16> to vector<64x256xbf16>
    %144 = arith.truncf %141 : vector<8x64xf32> to vector<8x64xbf16>
    %cst_59 = arith.constant dense<0.000000e+00> : vector<8x256xf32>
    %145 = tpu.matmul %144, %143, %cst_59 {dimension_numbers = #tpu.dot_dimension_numbers<[1], [0], [0], [1], [0, 0, 1, 1], [], []>} : vector<8x64xbf16>, vector<64x256xbf16>, vector<8x256xf32> -> vector<8x256xf32>
    %146 = vector.extract_strided_slice %145 {offsets = [0, 0], sizes = [8, 128], strides = [1, 1]} : vector<8x256xf32> to vector<8x128xf32>
    %147 = arith.truncf %146 : vector<8x128xf32> to vector<8x128xbf16>
    %cst_60 = arith.constant dense<0.000000e+00> : vector<64x128xf32>
    %148 = tpu.matmul %7, %147, %cst_60 {dimension_numbers = #tpu.dot_dimension_numbers<[1], [0], [0], [1], [0, 0, 1, 1], [], []>} : vector<64x8xbf16>, vector<8x128xbf16>, vector<64x128xf32> -> vector<64x128xf32>
    %149 = vector.extract_strided_slice %145 {offsets = [0, 128], sizes = [8, 128], strides = [1, 1]} : vector<8x256xf32> to vector<8x128xf32>
    %150 = arith.truncf %149 : vector<8x128xf32> to vector<8x128xbf16>
    %cst_61 = arith.constant dense<0.000000e+00> : vector<64x128xf32>
    %151 = tpu.matmul %8, %150, %cst_61 {dimension_numbers = #tpu.dot_dimension_numbers<[1], [0], [0], [1], [0, 0, 1, 1], [], []>} : vector<64x8xbf16>, vector<8x128xbf16>, vector<64x128xf32> -> vector<64x128xf32>
    %152 = arith.addf %148, %151 : vector<64x128xf32>
    %153 = vector.extract_strided_slice %13 {offsets = [0, 256], sizes = [64, 128], strides = [1, 1]} : vector<64x384xf32> to vector<64x128xf32>
    %154 = arith.addf %152, %153 : vector<64x128xf32>
    %c2_62 = arith.constant 2 : index
    %c0_63 = arith.constant 0 : index
    %c0_64 = arith.constant 0 : index
    %155 = vector.load %arg13[%c2_62, %c0_63, %c0_64] : memref<3x1x128xf32, #tpu.memory_space<vmem>>, vector<1x1x128xf32>
    %156 = vector.shape_cast %155 : vector<1x1x128xf32> to vector<1x128xf32>
    %157 = vector.broadcast %156 : vector<1x128xf32> to vector<64x128xf32>
    %158 = arith.addf %154, %157 : vector<64x128xf32>
    %159 = vector.extract_strided_slice %158 {offsets = [0, 0], sizes = [64, 64], strides = [1, 1]} : vector<64x128xf32> to vector<64x64xf32>
    %160 = arith.negf %159 : vector<64x64xf32>
    %161 = math.exp %160 : vector<64x64xf32>
    %cst_65 = arith.constant 1.000000e+00 : f32
    %162 = vector.broadcast %cst_65 : f32 to vector<64x64xf32>
    %163 = arith.addf %162, %161 : vector<64x64xf32>
    %164 = arith.divf %162, %163 : vector<64x64xf32>
    %165 = vector.extract_strided_slice %158 {offsets = [0, 64], sizes = [64, 64], strides = [1, 1]} : vector<64x128xf32> to vector<64x64xf32>
    %cst_66 = arith.constant 0.000000e+00 : f32
    %166 = vector.broadcast %cst_66 : f32 to vector<64x64xf32>
    %167 = arith.maximumf %165, %166 : vector<64x64xf32>
    %168 = vector.broadcast %cst_66 : f32 to vector<64x64xf32>
    %169 = arith.subf %165, %168 : vector<64x64xf32>
    %170 = arith.cmpf one, %169, %169 : vector<64x64xf32>
    %171 = vector.broadcast %cst_66 : f32 to vector<64x64xf32>
    %172 = arith.addf %165, %171 : vector<64x64xf32>
    %173 = math.absf %169 : vector<64x64xf32>
    %cst_67 = arith.constant 0.000000e+00 : f32
    %174 = vector.broadcast %cst_67 : f32 to vector<64x64xf32>
    %175 = arith.subf %174, %173 : vector<64x64xf32>
    %176 = math.exp %175 : vector<64x64xf32>
    %177 = math.log1p %176 : vector<64x64xf32>
    %178 = arith.addf %167, %177 : vector<64x64xf32>
    %179 = arith.select %170, %172, %178 : vector<64x64xi1>, vector<64x64xf32>
    %180 = arith.mulf %164, %179 : vector<64x64xf32>
    %181 = arith.truncf %180 : vector<64x64xf32> to vector<64x64xbf16>
    %cst_68 = arith.constant dense<0.000000e+00> : vector<8x64xf32>
    %182 = tpu.matmul %9, %181, %cst_68 {dimension_numbers = #tpu.dot_dimension_numbers<[1], [0], [0], [1], [0, 0, 1, 1], [], []>} : vector<8x64xbf16>, vector<64x64xbf16>, vector<8x64xf32> -> vector<8x64xf32>
    %c2_69 = arith.constant 2 : index
    %c0_70 = arith.constant 0 : index
    %c0_71 = arith.constant 0 : index
    %183 = vector.load %arg14[%c2_69, %c0_70, %c0_71] : memref<3x1x64xf32, #tpu.memory_space<vmem>>, vector<1x1x64xf32>
    %184 = vector.shape_cast %183 : vector<1x1x64xf32> to vector<1x64xf32>
    %185 = vector.broadcast %184 : vector<1x64xf32> to vector<8x64xf32>
    %186 = arith.mulf %182, %185 : vector<8x64xf32>
    %c2_72 = arith.constant 2 : index
    %c0_73 = arith.constant 0 : index
    %c0_74 = arith.constant 0 : index
    %187 = vector.load %arg15[%c2_72, %c0_73, %c0_74] : memref<3x1x64xf32, #tpu.memory_space<vmem>>, vector<1x1x64xf32>
    %188 = vector.shape_cast %187 : vector<1x1x64xf32> to vector<1x64xf32>
    %189 = vector.broadcast %188 : vector<1x64xf32> to vector<8x64xf32>
    %190 = arith.addf %186, %189 : vector<8x64xf32>
    %191 = arith.addf %141, %190 : vector<8x64xf32>
    %cst_75 = arith.constant 0.000000e+00 : f32
    %192 = vector.broadcast %cst_75 : f32 to vector<8x64xf32>
    %193 = arith.maximumf %191, %192 : vector<8x64xf32>
    %194 = vector.broadcast %cst_75 : f32 to vector<8x64xf32>
    %195 = arith.subf %191, %194 : vector<8x64xf32>
    %196 = arith.cmpf one, %195, %195 : vector<8x64xf32>
    %197 = vector.broadcast %cst_75 : f32 to vector<8x64xf32>
    %198 = arith.addf %191, %197 : vector<8x64xf32>
    %199 = math.absf %195 : vector<8x64xf32>
    %cst_76 = arith.constant 0.000000e+00 : f32
    %200 = vector.broadcast %cst_76 : f32 to vector<8x64xf32>
    %201 = arith.subf %200, %199 : vector<8x64xf32>
    %202 = math.exp %201 : vector<8x64xf32>
    %203 = math.log1p %202 : vector<8x64xf32>
    %204 = arith.addf %193, %203 : vector<8x64xf32>
    %205 = arith.select %196, %198, %204 : vector<8x64xi1>, vector<8x64xf32>
    %c0_77 = arith.constant 0 : index
    %c0_78 = arith.constant 0 : index
    %206 = vector.load %arg7[%c0_77, %c0_78] : memref<64x8xbf16, #tpu.memory_space<vmem>>, vector<64x8xbf16>
    %207 = arith.truncf %205 : vector<8x64xf32> to vector<8x64xbf16>
    %cst_79 = arith.constant dense<0.000000e+00> : vector<64x64xf32>
    %208 = tpu.matmul %206, %207, %cst_79 {dimension_numbers = #tpu.dot_dimension_numbers<[1], [0], [0], [1], [0, 0, 1, 1], [], []>} : vector<64x8xbf16>, vector<8x64xbf16>, vector<64x64xf32> -> vector<64x64xf32>
    %cst_80 = arith.constant 0.000000e+00 : f32
    %209 = vector.broadcast %cst_80 : f32 to vector<64x64xf32>
    %210 = arith.maximumf %208, %209 : vector<64x64xf32>
    %211 = vector.broadcast %cst_80 : f32 to vector<64x64xf32>
    %212 = arith.subf %208, %211 : vector<64x64xf32>
    %213 = arith.cmpf one, %212, %212 : vector<64x64xf32>
    %214 = vector.broadcast %cst_80 : f32 to vector<64x64xf32>
    %215 = arith.addf %208, %214 : vector<64x64xf32>
    %216 = math.absf %212 : vector<64x64xf32>
    %cst_81 = arith.constant 0.000000e+00 : f32
    %217 = vector.broadcast %cst_81 : f32 to vector<64x64xf32>
    %218 = arith.subf %217, %216 : vector<64x64xf32>
    %219 = math.exp %218 : vector<64x64xf32>
    %220 = math.log1p %219 : vector<64x64xf32>
    %221 = arith.addf %210, %220 : vector<64x64xf32>
    %222 = arith.select %213, %215, %221 : vector<64x64xi1>, vector<64x64xf32>
    %c0_82 = arith.constant 0 : index
    %c0_83 = arith.constant 0 : index
    %223 = vector.load %arg16[%c0_82, %c0_83] : memref<64x128xbf16, #tpu.memory_space<vmem>>, vector<64x128xbf16>
    %224 = arith.truncf %222 : vector<64x64xf32> to vector<64x64xbf16>
    %cst_84 = arith.constant dense<0.000000e+00> : vector<64x128xf32>
    %225 = tpu.matmul %224, %223, %cst_84 {dimension_numbers = #tpu.dot_dimension_numbers<[1], [0], [0], [1], [0, 0, 1, 1], [], []>} : vector<64x64xbf16>, vector<64x128xbf16>, vector<64x128xf32> -> vector<64x128xf32>
    %cst_85 = arith.constant 0.000000e+00 : f32
    %226 = vector.broadcast %cst_85 : f32 to vector<64x16xf32>
    %227 = arith.maximumf %10, %226 : vector<64x16xf32>
    %228 = vector.broadcast %cst_85 : f32 to vector<64x16xf32>
    %229 = arith.subf %10, %228 : vector<64x16xf32>
    %230 = arith.cmpf one, %229, %229 : vector<64x16xf32>
    %231 = vector.broadcast %cst_85 : f32 to vector<64x16xf32>
    %232 = arith.addf %10, %231 : vector<64x16xf32>
    %233 = math.absf %229 : vector<64x16xf32>
    %cst_86 = arith.constant 0.000000e+00 : f32
    %234 = vector.broadcast %cst_86 : f32 to vector<64x16xf32>
    %235 = arith.subf %234, %233 : vector<64x16xf32>
    %236 = math.exp %235 : vector<64x16xf32>
    %237 = math.log1p %236 : vector<64x16xf32>
    %238 = arith.addf %227, %237 : vector<64x16xf32>
    %239 = arith.select %230, %232, %238 : vector<64x16xi1>, vector<64x16xf32>
    %c0_87 = arith.constant 0 : index
    %c0_88 = arith.constant 0 : index
    %240 = vector.load %arg17[%c0_87, %c0_88] : memref<16x128xbf16, #tpu.memory_space<vmem>>, vector<16x128xbf16>
    %241 = arith.truncf %239 : vector<64x16xf32> to vector<64x16xbf16>
    %cst_89 = arith.constant dense<0.000000e+00> : vector<64x128xf32>
    %242 = tpu.matmul %241, %240, %cst_89 {dimension_numbers = #tpu.dot_dimension_numbers<[1], [0], [0], [1], [0, 0, 1, 1], [], []>} : vector<64x16xbf16>, vector<16x128xbf16>, vector<64x128xf32> -> vector<64x128xf32>
    %243 = arith.addf %225, %242 : vector<64x128xf32>
    %c0_90 = arith.constant 0 : index
    %c0_91 = arith.constant 0 : index
    %244 = vector.load %arg18[%c0_90, %c0_91] : memref<1x128xf32, #tpu.memory_space<vmem>>, vector<1x128xf32>
    %245 = vector.broadcast %244 : vector<1x128xf32> to vector<64x128xf32>
    %246 = arith.addf %243, %245 : vector<64x128xf32>
    %cst_92 = arith.constant 0.000000e+00 : f32
    %247 = vector.broadcast %cst_92 : f32 to vector<64x128xf32>
    %248 = arith.maximumf %246, %247 : vector<64x128xf32>
    %249 = vector.broadcast %cst_92 : f32 to vector<64x128xf32>
    %250 = arith.subf %246, %249 : vector<64x128xf32>
    %251 = arith.cmpf one, %250, %250 : vector<64x128xf32>
    %252 = vector.broadcast %cst_92 : f32 to vector<64x128xf32>
    %253 = arith.addf %246, %252 : vector<64x128xf32>
    %254 = math.absf %250 : vector<64x128xf32>
    %cst_93 = arith.constant 0.000000e+00 : f32
    %255 = vector.broadcast %cst_93 : f32 to vector<64x128xf32>
    %256 = arith.subf %255, %254 : vector<64x128xf32>
    %257 = math.exp %256 : vector<64x128xf32>
    %258 = math.log1p %257 : vector<64x128xf32>
    %259 = arith.addf %248, %258 : vector<64x128xf32>
    %260 = arith.select %251, %253, %259 : vector<64x128xi1>, vector<64x128xf32>
    %c0_94 = arith.constant 0 : index
    %c0_95 = arith.constant 0 : index
    %261 = vector.load %arg19[%c0_94, %c0_95] : memref<128x1xbf16, #tpu.memory_space<vmem>>, vector<128x1xbf16>
    %262 = arith.truncf %260 : vector<64x128xf32> to vector<64x128xbf16>
    %cst_96 = arith.constant dense<0.000000e+00> : vector<64x1xf32>
    %263 = tpu.matmul %262, %261, %cst_96 {dimension_numbers = #tpu.dot_dimension_numbers<[1], [0], [0], [1], [0, 0, 1, 1], [], []>} : vector<64x128xbf16>, vector<128x1xbf16>, vector<64x1xf32> -> vector<64x1xf32>
    %c0_97 = arith.constant 0 : index
    %c0_98 = arith.constant 0 : index
    %264 = vector.load %arg20[%c0_97, %c0_98] : memref<1x1xf32, #tpu.memory_space<vmem>>, vector<1x1xf32>
    %265 = vector.broadcast %264 : vector<1x1xf32> to vector<64x1xf32>
    %266 = arith.addf %263, %265 : vector<64x1xf32>
    %c0_99 = arith.constant 0 : index
    %c0_100 = arith.constant 0 : index
    %267 = vector.load %arg3[%c0_99, %c0_100] : memref<64x1xf32, #tpu.memory_space<vmem>>, vector<64x1xf32>
    %268 = arith.mulf %266, %267 : vector<64x1xf32>
    %c0_101 = arith.constant 0 : index
    %c0_102 = arith.constant 0 : index
    %269 = vector.load %arg25[%c0_101, %c0_102] : memref<64x1xf32, #tpu.memory_space<vmem>>, vector<64x1xf32>
    tpu.vector_store %arg25[%c0_101, %c0_102], %268 {strides = array<i32>} : memref<64x1xf32, #tpu.memory_space<vmem>>, vector<64x1xf32>,
    %c0_103 = arith.constant 0 : index
    %c0_104 = arith.constant 0 : index
    %270 = vector.load %arg8[%c0_103, %c0_104] : memref<2x8xbf16, #tpu.memory_space<vmem>>, vector<2x8xbf16>
    %271 = arith.truncf %205 : vector<8x64xf32> to vector<8x64xbf16>
    %cst_105 = arith.constant dense<0.000000e+00> : vector<2x64xf32>
    %272 = tpu.matmul %270, %271, %cst_105 {dimension_numbers = #tpu.dot_dimension_numbers<[1], [0], [0], [1], [0, 0, 1, 1], [], []>} : vector<2x8xbf16>, vector<8x64xbf16>, vector<2x64xf32> -> vector<2x64xf32>
    %cst_106 = arith.constant 0.000000e+00 : f32
    %273 = vector.broadcast %cst_106 : f32 to vector<2x64xf32>
    %274 = arith.maximumf %272, %273 : vector<2x64xf32>
    %275 = vector.broadcast %cst_106 : f32 to vector<2x64xf32>
    %276 = arith.subf %272, %275 : vector<2x64xf32>
    %277 = arith.cmpf one, %276, %276 : vector<2x64xf32>
    %278 = vector.broadcast %cst_106 : f32 to vector<2x64xf32>
    %279 = arith.addf %272, %278 : vector<2x64xf32>
    %280 = math.absf %276 : vector<2x64xf32>
    %cst_107 = arith.constant 0.000000e+00 : f32
    %281 = vector.broadcast %cst_107 : f32 to vector<2x64xf32>
    %282 = arith.subf %281, %280 : vector<2x64xf32>
    %283 = math.exp %282 : vector<2x64xf32>
    %284 = math.log1p %283 : vector<2x64xf32>
    %285 = arith.addf %274, %284 : vector<2x64xf32>
    %286 = arith.select %277, %279, %285 : vector<2x64xi1>, vector<2x64xf32>
    %c0_108 = arith.constant 0 : index
    %c0_109 = arith.constant 0 : index
    %287 = vector.load %arg21[%c0_108, %c0_109] : memref<64x128xbf16, #tpu.memory_space<vmem>>, vector<64x128xbf16>
    %288 = arith.truncf %286 : vector<2x64xf32> to vector<2x64xbf16>
    %cst_110 = arith.constant dense<0.000000e+00> : vector<2x128xf32>
    %289 = tpu.matmul %288, %287, %cst_110 {dimension_numbers = #tpu.dot_dimension_numbers<[1], [0], [0], [1], [0, 0, 1, 1], [], []>} : vector<2x64xbf16>, vector<64x128xbf16>, vector<2x128xf32> -> vector<2x128xf32>
    %c0_111 = arith.constant 0 : index
    %c0_112 = arith.constant 0 : index
    %290 = vector.load %arg22[%c0_111, %c0_112] : memref<1x128xf32, #tpu.memory_space<vmem>>, vector<1x128xf32>
    %291 = vector.broadcast %290 : vector<1x128xf32> to vector<2x128xf32>
    %292 = arith.addf %289, %291 : vector<2x128xf32>
    %cst_113 = arith.constant 0.000000e+00 : f32
    %293 = vector.broadcast %cst_113 : f32 to vector<2x128xf32>
    %294 = arith.maximumf %292, %293 : vector<2x128xf32>
    %295 = vector.broadcast %cst_113 : f32 to vector<2x128xf32>
    %296 = arith.subf %292, %295 : vector<2x128xf32>
    %297 = arith.cmpf one, %296, %296 : vector<2x128xf32>
    %298 = vector.broadcast %cst_113 : f32 to vector<2x128xf32>
    %299 = arith.addf %292, %298 : vector<2x128xf32>
    %300 = math.absf %296 : vector<2x128xf32>
    %cst_114 = arith.constant 0.000000e+00 : f32
    %301 = vector.broadcast %cst_114 : f32 to vector<2x128xf32>
    %302 = arith.subf %301, %300 : vector<2x128xf32>
    %303 = math.exp %302 : vector<2x128xf32>
    %304 = math.log1p %303 : vector<2x128xf32>
    %305 = arith.addf %294, %304 : vector<2x128xf32>
    %306 = arith.select %297, %299, %305 : vector<2x128xi1>, vector<2x128xf32>
    %c0_115 = arith.constant 0 : index
    %c0_116 = arith.constant 0 : index
    %307 = vector.load %arg23[%c0_115, %c0_116] : memref<128x3xbf16, #tpu.memory_space<vmem>>, vector<128x3xbf16>
    %308 = arith.truncf %306 : vector<2x128xf32> to vector<2x128xbf16>
    %cst_117 = arith.constant dense<0.000000e+00> : vector<2x3xf32>
    %309 = tpu.matmul %308, %307, %cst_117 {dimension_numbers = #tpu.dot_dimension_numbers<[1], [0], [0], [1], [0, 0, 1, 1], [], []>} : vector<2x128xbf16>, vector<128x3xbf16>, vector<2x3xf32> -> vector<2x3xf32>
    %c0_118 = arith.constant 0 : index
    %c0_119 = arith.constant 0 : index
    %310 = vector.load %arg24[%c0_118, %c0_119] : memref<1x3xf32, #tpu.memory_space<vmem>>, vector<1x3xf32>
    %311 = vector.broadcast %310 : vector<1x3xf32> to vector<2x3xf32>
    %312 = arith.addf %309, %311 : vector<2x3xf32>
    %c0_120 = arith.constant 0 : index
    %c0_121 = arith.constant 0 : index
    %313 = vector.load %arg26[%c0_120, %c0_121] : memref<2x3xf32, #tpu.memory_space<vmem>>, vector<2x3xf32>
    tpu.vector_store %arg26[%c0_120, %c0_121], %312 {strides = array<i32>} : memref<2x3xf32, #tpu.memory_space<vmem>>, vector<2x3xf32>,
    return
  }
  func.func @transform_0(%arg0: i32) -> (i32, i32) {
    %c0_i32 = arith.constant 0 : i32
    %c0_i32_0 = arith.constant 0 : i32
    %c0_i32_1 = arith.constant 0 : i32
    return %c0_i32, %c0_i32_0 : i32, i32
  }
  func.func @transform_1(%arg0: i32) -> (i32, i32) {
    %c0_i32 = arith.constant 0 : i32
    %c0_i32_0 = arith.constant 0 : i32
    %c0_i32_1 = arith.constant 0 : i32
    return %c0_i32, %c0_i32_0 : i32, i32
  }
  func.func @transform_2(%arg0: i32) -> (i32, i32) {
    %c0_i32 = arith.constant 0 : i32
    %c0_i32_0 = arith.constant 0 : i32
    %c0_i32_1 = arith.constant 0 : i32
    return %c0_i32, %c0_i32_0 : i32, i32
  }
  func.func @transform_3(%arg0: i32) -> (i32, i32) {
    %c0_i32 = arith.constant 0 : i32
    %c0_i32_0 = arith.constant 0 : i32
    %c0_i32_1 = arith.constant 0 : i32
    return %c0_i32, %c0_i32_0 : i32, i32
  }
  func.func @transform_4(%arg0: i32) -> (i32, i32) {
    %c0_i32 = arith.constant 0 : i32
    %c0_i32_0 = arith.constant 0 : i32
    %c0_i32_1 = arith.constant 0 : i32
    return %c0_i32, %c0_i32_0 : i32, i32
  }
  func.func @transform_5(%arg0: i32) -> (i32, i32) {
    %c0_i32 = arith.constant 0 : i32
    %c0_i32_0 = arith.constant 0 : i32
    %c0_i32_1 = arith.constant 0 : i32
    return %c0_i32, %c0_i32_0 : i32, i32
  }
  func.func @transform_6(%arg0: i32) -> (i32, i32) {
    %c0_i32 = arith.constant 0 : i32
    %c0_i32_0 = arith.constant 0 : i32
    %c0_i32_1 = arith.constant 0 : i32
    return %c0_i32, %c0_i32_0 : i32, i32
  }
  func.func @transform_7(%arg0: i32) -> (i32, i32) {
    %c0_i32 = arith.constant 0 : i32
    %c0_i32_0 = arith.constant 0 : i32
    %c0_i32_1 = arith.constant 0 : i32
    return %c0_i32, %c0_i32_0 : i32, i32
  }
  func.func @transform_8(%arg0: i32) -> (i32, i32) {
    %c0_i32 = arith.constant 0 : i32
    %c0_i32_0 = arith.constant 0 : i32
    %c0_i32_1 = arith.constant 0 : i32
    return %c0_i32, %c0_i32_0 : i32, i32
  }
  func.func @transform_9(%arg0: i32) -> (i32, i32) {
    %c0_i32 = arith.constant 0 : i32
    %c0_i32_0 = arith.constant 0 : i32
    %c0_i32_1 = arith.constant 0 : i32
    return %c0_i32, %c0_i32_0 : i32, i32
  }
  func.func @transform_10(%arg0: i32) -> (i32, i32, i32) {
    %c0_i32 = arith.constant 0 : i32
    %c0_i32_0 = arith.constant 0 : i32
    %c0_i32_1 = arith.constant 0 : i32
    %c0_i32_2 = arith.constant 0 : i32
    return %c0_i32, %c0_i32_0, %c0_i32_1 : i32, i32, i32
  }
  func.func @transform_11(%arg0: i32) -> (i32, i32) {
    %c0_i32 = arith.constant 0 : i32
    %c0_i32_0 = arith.constant 0 : i32
    %c0_i32_1 = arith.constant 0 : i32
    return %c0_i32, %c0_i32_0 : i32, i32
  }
  func.func @transform_12(%arg0: i32) -> (i32, i32, i32) {
    %c0_i32 = arith.constant 0 : i32
    %c0_i32_0 = arith.constant 0 : i32
    %c0_i32_1 = arith.constant 0 : i32
    %c0_i32_2 = arith.constant 0 : i32
    return %c0_i32, %c0_i32_0, %c0_i32_1 : i32, i32, i32
  }
  func.func @transform_13(%arg0: i32) -> (i32, i32, i32) {
    %c0_i32 = arith.constant 0 : i32
    %c0_i32_0 = arith.constant 0 : i32
    %c0_i32_1 = arith.constant 0 : i32
    %c0_i32_2 = arith.constant 0 : i32
    return %c0_i32, %c0_i32_0, %c0_i32_1 : i32, i32, i32
  }
  func.func @transform_14(%arg0: i32) -> (i32, i32, i32) {
    %c0_i32 = arith.constant 0 : i32
    %c0_i32_0 = arith.constant 0 : i32
    %c0_i32_1 = arith.constant 0 : i32
    %c0_i32_2 = arith.constant 0 : i32
    return %c0_i32, %c0_i32_0, %c0_i32_1 : i32, i32, i32
  }
  func.func @transform_15(%arg0: i32) -> (i32, i32) {
    %c0_i32 = arith.constant 0 : i32
    %c0_i32_0 = arith.constant 0 : i32
    %c0_i32_1 = arith.constant 0 : i32
    return %c0_i32, %c0_i32_0 : i32, i32
  }
  func.func @transform_16(%arg0: i32) -> (i32, i32) {
    %c0_i32 = arith.constant 0 : i32
    %c0_i32_0 = arith.constant 0 : i32
    %c0_i32_1 = arith.constant 0 : i32
    return %c0_i32, %c0_i32_0 : i32, i32
  }
  func.func @transform_17(%arg0: i32) -> (i32, i32) {
    %c0_i32 = arith.constant 0 : i32
    %c0_i32_0 = arith.constant 0 : i32
    %c0_i32_1 = arith.constant 0 : i32
    return %c0_i32, %c0_i32_0 : i32, i32
  }
  func.func @transform_18(%arg0: i32) -> (i32, i32) {
    %c0_i32 = arith.constant 0 : i32
    %c0_i32_0 = arith.constant 0 : i32
    %c0_i32_1 = arith.constant 0 : i32
    return %c0_i32, %c0_i32_0 : i32, i32
  }
  func.func @transform_19(%arg0: i32) -> (i32, i32) {
    %c0_i32 = arith.constant 0 : i32
    %c0_i32_0 = arith.constant 0 : i32
    %c0_i32_1 = arith.constant 0 : i32
    return %c0_i32, %c0_i32_0 : i32, i32
  }
  func.func @transform_20(%arg0: i32) -> (i32, i32) {
    %c0_i32 = arith.constant 0 : i32
    %c0_i32_0 = arith.constant 0 : i32
    %c0_i32_1 = arith.constant 0 : i32
    return %c0_i32, %c0_i32_0 : i32, i32
  }
  func.func @transform_21(%arg0: i32) -> (i32, i32) {
    %c0_i32 = arith.constant 0 : i32
    %c0_i32_0 = arith.constant 0 : i32
    %c0_i32_1 = arith.constant 0 : i32
    return %c0_i32, %c0_i32_0 : i32, i32
  }
  func.func @transform_22(%arg0: i32) -> (i32, i32) {
    %c0_i32 = arith.constant 0 : i32
    %c0_i32_0 = arith.constant 0 : i32
    %c0_i32_1 = arith.constant 0 : i32
    return %c0_i32, %c0_i32_0 : i32, i32
  }
  func.func @transform_23(%arg0: i32) -> (i32, i32) {
    %c0_i32 = arith.constant 0 : i32
    %c0_i32_0 = arith.constant 0 : i32
    %c0_i32_1 = arith.constant 0 : i32
    return %c0_i32, %c0_i32_0 : i32, i32
  }
  func.func @transform_24(%arg0: i32) -> (i32, i32) {
    %c0_i32 = arith.constant 0 : i32
    %c0_i32_0 = arith.constant 0 : i32
    %c0_i32_1 = arith.constant 0 : i32
    return %c0_i32, %c0_i32_0 : i32, i32
  }
  func.func @transform_25(%arg0: i32) -> (i32, i32) {
    %c0_i32 = arith.constant 0 : i32
    %c0_i32_0 = arith.constant 0 : i32
    %c0_i32_1 = arith.constant 0 : i32
    return %c0_i32, %c0_i32_0 : i32, i32
  }
}

</mosaic_0001>

<bundles_post_ra>
// kernel: tpu_custom_call.1
= control target key start
LH: loop header
LB: loop body
LE: loop exit
PB: predicated region body
PF: predicated region fallthrough
CT: control target
= control target key end

     0   :  { %s5830_s0 = inlined_call_operand.vmem [shape: f32[8,16], index: 0, kind: input, shape index: {}]   ;;  %s5831_s1 = inlined_call_operand.vmem [shape: f32[64,16], index: 1, kind: input, shape index: {}]   ;;  %s5832_s2 = inlined_call_operand.vmem [shape: f32[64,1], index: 2, kind: input, shape index: {}]   ;;  %s5833_s3 = inlined_call_operand.vmem [shape: bf16[64,8], index: 3, kind: input, shape index: {}]   ;;  %s5834_s4 = inlined_call_operand.vmem [shape: bf16[64,8], index: 4, kind: input, shape index: {}]   ;;  %s5835_s5 = inlined_call_operand.vmem [shape: bf16[8,64], index: 5, kind: input, shape index: {}]   ;;  %s5836_s6 = inlined_call_operand.vmem [shape: bf16[64,8], index: 6, kind: input, shape index: {}]   ;;  %s5837_s7 = inlined_call_operand.vmem [shape: bf16[2,8], index: 7, kind: input, shape index: {}]   ;;  %s5838_s8 = inlined_call_operand.vmem [shape: bf16[16,64], index: 8, kind: input, shape index: {}]   ;;  %s5839_s9 = inlined_call_operand.vmem [shape: f32[1,64], index: 9, kind: input, shape index: {}]   ;;  %s5840_s10 = inlined_call_operand.vmem [shape: bf16[3,64,256], index: 10, kind: input, shape index: {}]   ;;  %s5841_s11 = inlined_call_operand.vmem [shape: bf16[16,384], index: 11, kind: input, shape index: {}]   ;;  %s5842_s12 = inlined_call_operand.vmem [shape: f32[3,1,128], index: 12, kind: input, shape index: {}]   ;;  %s5843_s13 = inlined_call_operand.vmem [shape: f32[3,1,64], index: 13, kind: input, shape index: {}]   ;;  %s5844_s14 = inlined_call_operand.vmem [shape: f32[3,1,64], index: 14, kind: input, shape index: {}]   ;;  %s5845_s15 = inlined_call_operand.vmem [shape: bf16[64,128], index: 15, kind: input, shape index: {}]   ;;  %s5846_s16 = inlined_call_operand.vmem [shape: bf16[16,128], index: 16, kind: input, shape index: {}]   ;;  %s5847_s17 = inlined_call_operand.vmem [shape: f32[1,128], index: 17, kind: input, shape index: {}]   ;;  %s5848_s18 = inlined_call_operand.vmem [shape: bf16[128,1], index: 18, kind: input, shape index: {}]   ;;  %s5849_s19 = inlined_call_operand.<no memory space> [shape: f32[1,1], index: 19, kind: input, shape index: {}]   ;;  %s5850_s20 = inlined_call_operand.vmem [shape: bf16[64,128], index: 20, kind: input, shape index: {}]   ;;  %s5851_s21 = inlined_call_operand.vmem [shape: f32[1,128], index: 21, kind: input, shape index: {}]   ;;  %s5852_s22 = inlined_call_operand.vmem [shape: bf16[128,3], index: 22, kind: input, shape index: {}]   ;;  %s5853_s23 = inlined_call_operand.vmem [shape: f32[1,3], index: 23, kind: input, shape index: {}]   ;;  %s5854_s24 = inlined_call_operand.vmem [shape: f32[64,1], index: 24, kind: output, shape index: {0}]   ;;  %s5855_s25 = inlined_call_operand.hbm [shape: f32[2,3], index: 25, kind: output, shape index: {1}]  }
   0x1   :  { %5862 = sst [smem:[#allocation6_spill]] %s5830_s0  ;;  %v31_v0 = vstv %s5849_s19 }
   0x2   :  { %5863 = sst [smem:[#allocation7_spill]] %s5831_s1  ;;  %32 = vst [vmem:[#allocation2] sm:$0x1] %v31_v0 }
   0x3   :  { %5864 = sst [smem:[#allocation8_spill]] %s5832_s2 }
   0x4   :  { %5865 = sst [smem:[#allocation9_spill]] %s5833_s3 }
   0x5   :  { %5866 = sst [smem:[#allocation10_spill]] %s5834_s4 }
   0x6   :  { %5867 = sst [smem:[#allocation11_spill]] %s5835_s5 }
   0x7   :  { %5868 = sst [smem:[#allocation12_spill]] %s5836_s6 }
   0x8   :  { %5869 = sst [smem:[#allocation13_spill]] %s5837_s7 }
   0x9   :  { %5870 = sst [smem:[#allocation14_spill]] %s5838_s8 }
   0xa   :  { %5871 = sst [smem:[#allocation15_spill]] %s5839_s9 }
   0xb   :  { %s5872_s7 = sld [smem:[#allocation14_spill]]  ;;  %v4301_v2 = vmov 0.0   ;;  %vm4302_vm0 = vmmov 0   ;;  %vm100_vm1 = vcmask 130048   ;;  %v3875_v5 = vld [vmem:[%s5841_s11] ss:$12 sps:$4 sm:$0xff]  }
   0xc   :  { %3610 = vmatprep.subr.bf16.mxu0 %v4301_v2  ;;  %s5873_s1 = sld [smem:[#allocation6_spill]]  ;;  %3612 = vmatprep.mubr.msk.bf16.mxu0 %vm4302_vm0, %v4301_v2  ;;  %v3877_v6 = vld [vmem:[%s5841_s11 + $0x4] ss:$12 sps:$4 sm:$0xff]   ;;  %v4303_v7 = vmov 0   ;;  %v3878_v8 = vld [vmem:[%s5841_s11 + $0x8] ss:$12 sps:$4 sm:$0xff]  }
   0xd   :  { %257 = vmatprep.mubr.bf16.mxu1 %v4303_v7  ;;  %3820 = vmatprep.subr.bf16.mxu1 %v3877_v6  ;;  %s5874_s29 = sld [smem:[#allocation7_spill]]  ;;  %v3881_v14 = vld [vmem:[%s5840_s10 + $0x4] ss:$8 sps:$4 sm:$0xff]   ;;  %v3879_v22 = vld [vmem:[%s5840_s10] ss:$8 sps:$4 sm:$0xff]  }
   0xe   :  { %3821 = vmatpush1.bf16.msra.mxu1 %v3875_v5  ;;  %v3884_v23 = vld [vmem:[%s5840_s10 + $0x14] ss:$8 sps:$4 sm:$0xff]   ;;  %v3882_v24 = vld [vmem:[%s5840_s10 + $0x10] ss:$8 sps:$4 sm:$0xff]   ;;  %v3887_v25 = vld [vmem:[%s5840_s10 + $0x24] ss:$8 sps:$4 sm:$0xff]  }
   0xf   :  { %3646 = vmatprep.subr.bf16.mxu1 %v4301_v2  ;;  %v3885_v26 = vld [vmem:[%s5840_s10 + $0x20] ss:$8 sps:$4 sm:$0xff]  }
  0x11   :  { %v3874_v1 = vld [vmem:[%s5872_s7] sm:$0xff]  }
  0x12   :  { %v83_v3 = vld [vmem:[%s5873_s1] sm:$0xff]  ;;  %3611 = vmatpush3.bf16.msra.mxu0 %v3874_v1 }
  0x13   :  { %v86_v4 = vpack.c.bf16 %v83_v3, %v83_v3  ;;  %205 = vmatprep.subr.bf16.mxu0 %v3877_v6  ;;  %v161_v9 = vld [vmem:[%s5874_s29] sm:$0xff]  ;;  %v162_v10 = vld [vmem:[%s5874_s29 + $0x8] sm:$0xff]  ;;  %v163_v16 = vld [vmem:[%s5874_s29 + $0x10] sm:$0xff] }
  0x14   :  { %v169_v11 = vpack.c.bf16 %v162_v10, %v161_v9  ;;  %v165_v12 = vld [vmem:[%s5874_s29 + $0x20] sm:$0xff]  ;;  %v166_v13 = vld [vmem:[%s5874_s29 + $0x28] sm:$0xff]  ;;  %v164_v17 = vld [vmem:[%s5874_s29 + $0x18] sm:$0xff] }
  0x15   :  { %3613 = vmatmul.mubr.msk.bf16.vlgmr.msra.gmra.mrb[0].mxu0 %vm100_vm1, %v86_v4  ;;  %v171_v15 = vpack.c.bf16 %v166_v13, %v165_v12  ;;  %v167_v18 = vld [vmem:[%s5874_s29 + $0x30] sm:$0xff]  ;;  %v168_v19 = vld [vmem:[%s5874_s29 + $0x38] sm:$0xff]  ;;  %v170_v20 = vpack.c.bf16 %v164_v17, %v163_v16 }
  0x16   :  { %206 = vmatpush1.bf16.msra.mxu0 %v3875_v5  ;;  %237 = vmatprep.mubr.bf16.mxu0 %v4303_v7  ;;  %v172_v21 = vpack.c.bf16 %v168_v19, %v167_v18 }
  0x17   :  { %3616 = vmatprep.subr.bf16.mxu0 %v3878_v8  ;;  %3342 = vmatmul.mubr.msk.bf16.vlgmr.msra.gmra.mrb[0].mxu1 %vm100_vm1, %v171_v15 }
  0x18   :  { %267 = vmatprep.mubr.bf16.mxu1 %v4303_v7 }
  0x1d   :  { %3340 = vmatmul.mubr.msk.bf16.vlgmr.msra.gmra.mrb[4].mxu0 %vm100_vm1, %v169_v11 }
  0x1e   :  { %247 = vmatprep.mubr.bf16.mxu0 %v4303_v7  ;;  %3617 = vmatpush3.bf16.msra.mxu0 %v3878_v8 }
  0x1f   :  { %396 = vmatprep.subr.bf16.mxu0 %v3881_v14  ;;  %3343 = vmatmul.mubr.msk.bf16.gmra.mrb[4].mxu1 %vm100_vm1, %v172_v21 }
  0x20   :  { %3654 = vmatprep.mubr.msk.bf16.mxu1 %vm4302_vm0, %v4301_v2 }
  0x25   :  { %3341 = vmatmul.mubr.msk.bf16.gmra.mrb[8].mxu0 %vm100_vm1, %v170_v20 }
  0x26   :  { %3618 = vmatprep.mubr.msk.bf16.mxu0 %vm100_vm1, %v169_v11 }
  0x2d   :  { %3619 = vmatmul.mubr.msk.bf16.vlgmr.msra.gmra.mrb[12].mxu0 %vm100_vm1, %v170_v20 }
  0x2e   :  { %397 = vmatpush1.bf16.msra.mxu0 %v3879_v22  ;;  %3622 = vmatprep.mubr.msk.bf16.mxu0 %vm100_vm1, %v171_v15 }
  0x2f   :  { %398 = vmatprep.subr.bf16.mxu0 %v3884_v23 }
  0x32   :  { %399 = vmatpush1.bf16.msra.mxu0 %v3882_v24 }
  0x33   :  { %400 = vmatprep.subr.bf16.mxu0 %v3887_v25 }
  0x35   :  { %3623 = vmatmul.mubr.msk.bf16.gmra.mrb[16].mxu0 %vm100_vm1, %v172_v21 }
  0x36   :  { %401 = vmatpush1.bf16.msra.mxu0 %v3885_v26  ;;  %428 = vmatprep.mubr.bf16.mxu0 %v4303_v7 }
  0x37   :  { %33 = vsyncpa [#allocation4], 0  ;;  %v3890_v27 = vld [vmem:[%s5840_s10 + $0x34] ss:$8 sps:$4 sm:$0xff]   ;;  %v3888_v28 = vld [vmem:[%s5840_s10 + $0x30] ss:$8 sps:$4 sm:$0xff]  }
  0x38   :  { %402 = vmatprep.subr.bf16.mxu0 %v3890_v27  ;;  %s5875_s2 = sld [smem:[#allocation15_spill]]  ;;  %vm392_vm2 = vcmask 523264   ;;  %s5876_s30 = sld [smem:[#allocation10_spill]]  ;;  %vm459_vm3 = vcmask 64512   ;;  %vm472_vm4 = vcmask 1043456  }
  0x39   :  { %s5877_s28 = sld [smem:[#allocation9_spill]]  ;;  %v3373_v6 = vld [vmem:[%s5842_s12] ss:$0 sm:$0xff]  ;;  %s4304_s26 = smov 64  }
  0x3a   :  { %403 = vmatpush1.bf16.msra.mxu0 %v3888_v28  ;;  %s5888_s8 = sld [smem:[#allocation11_spill]]  ;;  %s5909_s1 = sld [smem:[#allocation12_spill]] }
  0x3b   :  { %s4305_s7 = smov [#allocation3]  }
  0x3e   :  { %v3334_v29 = vld [vmem:[%s5875_s2] ss:$0 sm:$0xff]  ;;  %v4550_v52 = vld [vmem:[%s5876_s30 + $0x8] sm:$0xff]   ;;  %v4555_v53 = vld [vmem:[%s5876_s30 + $0x10] sm:$0xff]  }
  0x3f   :  { %v4541_v44 = vld [vmem:[%s5876_s30] sm:$0xff]   ;;  %v4567_v55 = vld [vmem:[%s5876_s30 + $0x18] sm:$0xff]   ;;  %v4581_v57 = vld [vmem:[%s5877_s28 + $0x8] sm:$0xff]  }
  0x40   :  { %v4572_v56 = vld [vmem:[%s5877_s28] sm:$0xff]   ;;  %v4586_v58 = vld [vmem:[%s5877_s28 + $0x10] sm:$0xff]   ;;  %v4595_v59 = vld [vmem:[%s5877_s28 + $0x18] sm:$0xff]  }
  0xe8   :  { %v138_v30 = vpop.f32.mrb[0].mxu0 }
  0xe9   :  { %v4525_v31 = vadd.f32 %v3334_v29, %v138_v30  ;;  %v3614_v32 = vpop.f32.mrb[1].mxu0 }
  0xea   :  { %v141_v33 = vpop.f32.mrb[2].mxu0  ;;  %v259_v60 = vpop.f32.mrb[0].mxu1 }
  0xeb   :  { %v351_v34 = vpack.c.bf16 %v4525_v31, %v4525_v31  ;;  %v3615_v35 = vpop.f32.mrb[3].mxu0  ;;  %v4601_v61 = vpop.f32.mrb[1].mxu1 }
  0xec   :  { %v263_v62 = vpop.f32.mrb[2].mxu1 }
  0xed   :  { %3356 = vmatmul.mubr.msk.bf16.vlgmr.msra.gmra.mrb[20].mxu0 %vm392_vm2, %v351_v34  ;;  %v4603_v63 = vpop.f32.mrb[3].mxu1 }
  0xee   :  { %3628 = vmatprep.mubr.msk.bf16.mxu0 %vm459_vm3, %v4541_v44 }
  0xf0   :  { %v239_v36 = vpop.f32.mrb[4].mxu0 }
  0xf1   :  { %v4530_v37 = vpop.f32.mrb[5].mxu0 }
  0xf2   :  { %v243_v38 = vpop.f32.mrb[6].mxu0  ;;  %v269_v0 = vpop.f32.mrb[4].mxu1 }
  0xf3   :  { %v4532_v39 = vpop.f32.mrb[7].mxu0  ;;  %v4605_v1 = vpop.f32.mrb[5].mxu1 }
  0xf4   :  { %v273_v3 = vpop.f32.mrb[6].mxu1 }
  0xf5   :  { %v4607_v4 = vpop.f32.mrb[7].mxu1 }
  0xf8   :  { %v249_v40 = vpop.f32.mrb[8].mxu0 }
  0xf9   :  { %v4534_v41 = vpop.f32.mrb[9].mxu0 }
  0xfa   :  { %v253_v42 = vpop.f32.mrb[10].mxu0 }
  0xfb   :  { %v4536_v43 = vpop.f32.mrb[11].mxu0 }
 0x1c0   :  { %v430_v45 = vpop.f32.mrb[20].mxu0 }
 0x1c1   :  { %v432_v46 = vpop.f32.mrb[21].mxu0  ;;  %v437_v50 = vpack.c.bf16 %v430_v45, %v430_v45 }
 0x1c2   :  { %v438_v47 = vpack.c.bf16 %v432_v46, %v432_v46  ;;  %v434_v48 = vpop.f32.mrb[22].mxu0 }
 0x1c3   :  { %v435_v49 = vpop.f32.mrb[23].mxu0  ;;  %v574_v54 = vsel %vm472_vm4, %v437_v50, 0 }
 0x1c4   :  { %v474_v51 = vsel %vm472_vm4, %v438_v47, 0  ;;  %3862 = vmatprep.subr.msk.bf16.mxu0 %vm472_vm4, %v438_v47 }
 0x1c5   :  { %3627 = vmatpush3.bf16.msra.mxu0 %v474_v51 }
 0x1c6   :  { %3863 = vmatprep.subr.msk.bf16.mxu0 %vm472_vm4, %v437_v50 }
 0x1c8   :  { %3629 = vmatmul.mubr.msk.bf16.vlgmr.msra.gmra.mrb[24].mxu0 %vm459_vm3, %v4550_v52 }
 0x1c9   :  { %3637 = vmatpush3.bf16.msra.mxu0 %v574_v54  ;;  %3632 = vmatprep.mubr.msk.bf16.mxu0 %vm459_vm3, %v4555_v53 }
 0x1ca   :  { %3678 = vmatprep.subr.bf16.mxu0 %v4301_v2 }
 0x1d0   :  { %3633 = vmatmul.mubr.msk.bf16.gmra.mrb[28].mxu0 %vm459_vm3, %v4567_v55 }
 0x1d1   :  { %3638 = vmatprep.mubr.msk.bf16.mxu0 %vm459_vm3, %v4572_v56 }
 0x1d8   :  { %3639 = vmatmul.mubr.msk.bf16.vlgmr.msra.gmra.mrb[24].mxu0 %vm459_vm3, %v4581_v57 }
 0x1d9   :  { %3642 = vmatprep.mubr.msk.bf16.mxu0 %vm459_vm3, %v4586_v58 }
 0x1e0   :  { %3643 = vmatmul.mubr.msk.bf16.gmra.mrb[28].mxu0 %vm459_vm3, %v4595_v59 }
 0x1e1   :  { %3686 = vmatprep.mubr.msk.bf16.mxu0 %vm4302_vm0, %v4301_v2 }
 0x2ab   :  { %v3640_v5 = vpop.f32.mrb[24].mxu0 }
 0x2ac   :  { %v643_v8 = vadd.f32 %v3640_v5, %v249_v40  ;;  %v610_v9 = vpop.f32.mrb[25].mxu0 }
 0x2ad   :  { %v641_v10 = vadd.f32 %v610_v9, %v239_v36  ;;  %v3641_v11 = vpop.f32.mrb[26].mxu0 }
 0x2ae   :  { %v4612_v12 = vadd.f32 %v3373_v6, %v643_v8  ;;  %v644_v13 = vadd.f32 %v3641_v11, %v253_v42  ;;  %v613_v14 = vpop.f32.mrb[27].mxu0 }
 0x2af   :  { %v4614_v15 = vadd.f32 %v3373_v6, %v641_v10  ;;  %v642_v16 = vadd.f32 %v613_v14, %v243_v38 }
 0x2b0   :  { %v738_v17 = vand.u32 2147483647, %v4612_v12  ;;  %v4617_v18 = vadd.f32 %v3373_v6, %v644_v13  ;;  %vm722_vm5 = vcmp.ne.f32.partialorder %v4612_v12, %v4612_v12 }
 0x2b1   :  { %v736_v19 = vand.u32 2147483647, %v4614_v15  ;;  %v4620_v20 = vadd.f32 %v3373_v6, %v642_v16  ;;  %vm720_vm6 = vcmp.ne.f32.partialorder %v4614_v15, %v4614_v15 }
 0x2b2   :  { %v746_v21 = vsub.f32 0.0, %v738_v17  ;;  %v739_v22 = vand.u32 2147483647, %v4617_v18  ;;  %vm723_vm9 = vcmp.ne.f32.partialorder %v4617_v18, %v4617_v18 }
 0x2b3   :  { %v744_v23 = vsub.f32 0.0, %v736_v19  ;;  %v737_v24 = vand.u32 2147483647, %v4620_v20  ;;  %v3644_v25 = vpop.f32.mrb[28].mxu0  ;;  %vm721_vm13 = vcmp.ne.f32.partialorder %v4620_v20, %v4620_v20 }
 0x2b4   :  { %v756_v26 = vmul.f32 1.442695, %v746_v21  ;;  %v747_v27 = vsub.f32 0.0, %v739_v22  ;;  %v647_v28 = vadd.f32 %v3644_v25, %v269_v0  ;;  %v626_v29 = vpop.f32.mrb[29].mxu0 }
 0x2b5   :  { %v752_v30 = vmul.f32 1.442695, %v744_v23  ;;  %v745_v32 = vsub.f32 0.0, %v737_v24  ;;  %v645_v33 = vadd.f32 %v626_v29, %v259_v60  ;;  %v3645_v34 = vpop.f32.mrb[30].mxu0  ;;  %v715_v29 = vmax.f32 %v4617_v18, 0.0 }
 0x2b6   :  { %3952 = vpow2.f32 %v756_v26  ;;  %v758_v35 = vmul.f32 1.442695, %v747_v27  ;;  %v4624_v36 = vadd.f32 %v3373_v6, %v647_v28  ;;  %v648_v38 = vadd.f32 %v3645_v34, %v273_v3  ;;  %v629_v40 = vpop.f32.mrb[31].mxu0 }
 0x2b7   :  { %3954 = vpow2.f32 %v752_v30  ;;  %v754_v42 = vmul.f32 1.442695, %v745_v32  ;;  %v4626_v45 = vadd.f32 %v3373_v6, %v645_v33  ;;  %v646_v46 = vadd.f32 %v629_v40, %v263_v62 }
 0x2b8   :  { %3956 = vpow2.f32 %v758_v35  ;;  %v742_v47 = vand.u32 2147483647, %v4624_v36  ;;  %v4629_v48 = vadd.f32 %v3373_v6, %v648_v38  ;;  %v714_v26 = vmax.f32 %v4612_v12, 0.0 }
 0x2b9   :  { %3958 = vpow2.f32 %v754_v42  ;;  %v740_v49 = vand.u32 2147483647, %v4626_v45  ;;  %v4632_v50 = vadd.f32 %v3373_v6, %v646_v46  ;;  %v712_v28 = vmax.f32 %v4614_v15, 0.0 }
 0x2ba   :  { %v750_v51 = vsub.f32 0.0, %v742_v47  ;;  %v743_v54 = vand.u32 2147483647, %v4629_v48  ;;  %v713_v42 = vmax.f32 %v4620_v20, 0.0 }
 0x2bb   :  { %v748_v60 = vsub.f32 0.0, %v740_v49  ;;  %v741_v0 = vand.u32 2147483647, %v4632_v50 }
 0x2bc   :  { %v764_v3 = vmul.f32 1.442695, %v750_v51  ;;  %v751_v5 = vsub.f32 0.0, %v743_v54  ;;  %v716_v54 = vmax.f32 %v4626_v45, 0.0 }
 0x2bd   :  { %v760_v8 = vmul.f32 1.442695, %v748_v60  ;;  %v749_v62 = vsub.f32 0.0, %v741_v0 }
 0x2be   :  { %3960 = vpow2.f32 %v764_v3  ;;  %v766_v9 = vmul.f32 1.442695, %v751_v5 }
 0x2bf   :  { %3962 = vpow2.f32 %v760_v8  ;;  %v762_v10 = vmul.f32 1.442695, %v749_v62 }
 0x2c0   :  { %v3953_v11 = vpop.eup %3952  ;;  %3964 = vpow2.f32 %v766_v9 }
 0x2c1   :  { %v3955_v13 = vpop.eup %3954  ;;  %3966 = vpow2.f32 %v762_v10  ;;  %v786_v6 = vadd.f32 1.0, %v3953_v11  ;;  %v789_v21 = vmul.f32 -0.5, %v3953_v11  ;;  %v792_v27 = vand.u32 2147483647, %v3953_v11 }
 0x2c2   :  { %v3957_v14 = vpop.eup %3956  ;;  %v768_v16 = vadd.f32 1.0, %v3955_v13  ;;  %v771_v22 = vmul.f32 -0.5, %v3955_v13  ;;  %v774_v34 = vand.u32 2147483647, %v3955_v13 }
 0x2c3   :  { %v4636_v17 = vpop.eup %3958  ;;  %3968 = vlog2.f32 %v786_v6  ;;  %v795_v19 = vadd.f32 1.0, %v3957_v14  ;;  %v798_v24 = vmul.f32 -0.5, %v3957_v14  ;;  %v790_v32 = vadd.f32 1.0, %v789_v21 }
 0x2c4   :  { %3970 = vlog2.f32 %v768_v16  ;;  %v777_v23 = vadd.f32 1.0, %v4636_v17  ;;  %v772_v33 = vadd.f32 1.0, %v771_v22  ;;  %v801_v40 = vand.u32 2147483647, %v3957_v14 }
 0x2c5   :  { %3972 = vlog2.f32 %v795_v19  ;;  %v780_v46 = vmul.f32 -0.5, %v4636_v17  ;;  %v799_v51 = vadd.f32 1.0, %v798_v24  ;;  %vm4660_vm7 = vcmp.lt.f32.partialorder %v792_v27, 0.0004427343 }
 0x2c6   :  { %3974 = vlog2.f32 %v777_v23  ;;  %v783_v3 = vand.u32 2147483647, %v4636_v17  ;;  %v791_v62 = vmul.f32 %v3953_v11, %v790_v32  ;;  %v773_v9 = vmul.f32 %v3955_v13, %v772_v33 }
 0x2c7   :  { %vm4666_vm8 = vcmp.lt.f32.partialorder %v774_v34, 0.0004427343  ;;  %vm4672_vm10 = vcmp.lt.f32.partialorder %v801_v40, 0.0004427343  ;;  %v781_v21 = vadd.f32 1.0, %v780_v46  ;;  %v800_v11 = vmul.f32 %v3957_v14, %v799_v51 }
 0x2c8   :  { %v4639_v25 = vpop.eup %3960  ;;  %vm4680_vm11 = vcmp.lt.f32.partialorder %v783_v3, 0.0004427343  ;;  %v3380_v19 = vmul.f32 -1.442695, %v4624_v36 }
 0x2c9   :  { %v4644_v30 = vpop.eup %3962  ;;  %v822_v35 = vadd.f32 1.0, %v4639_v25  ;;  %v825_v24 = vmul.f32 -0.5, %v4639_v25  ;;  %v828_v14 = vand.u32 2147483647, %v4639_v25  ;;  %v782_v3 = vmul.f32 %v4636_v17, %v781_v21 }
 0x2ca   :  { %v4647_v38 = vpop.eup %3964  ;;  %v804_v47 = vadd.f32 1.0, %v4644_v30  ;;  %v807_v13 = vmul.f32 -0.5, %v4644_v30  ;;  %v810_v17 = vand.u32 2147483647, %v4644_v30 }
 0x2cb   :  { %v4654_v49 = vpop.eup %3966  ;;  %3976 = vlog2.f32 %v822_v35  ;;  %v831_v60 = vadd.f32 1.0, %v4647_v38  ;;  %vm4706_vm12 = vcmp.lt.f32.partialorder %v828_v14, 0.0004427343 }
 0x2cc   :  { %3978 = vlog2.f32 %v804_v47  ;;  %v813_v5 = vadd.f32 1.0, %v4654_v49  ;;  %v816_v34 = vmul.f32 -0.5, %v4654_v49  ;;  %v834_v47 = vmul.f32 -0.5, %v4647_v38 }
 0x2cd   :  { %v3969_v8 = vpop.eup %3968  ;;  %3980 = vlog2.f32 %v831_v60  ;;  %vm811_vm14 = vcmp.lt.f32.partialorder %v810_v17, 0.0004427343  ;;  %v3374_v17 = vmul.f32 -1.442695, %v4614_v15 }
 0x2ce   :  { %v3971_v6 = vpop.eup %3970  ;;  %v788_v16 = vmul.f32 0.6931472, %v3969_v8  ;;  %3982 = vlog2.f32 %v813_v5  ;;  %v808_v8 = vadd.f32 1.0, %v807_v13  ;;  %v817_v10 = vadd.f32 1.0, %v816_v34 }
 0x2cf   :  { %v3973_v22 = vpop.eup %3972  ;;  %v770_v23 = vmul.f32 0.6931472, %v3971_v6  ;;  %v835_v21 = vadd.f32 1.0, %v834_v47  ;;  %v837_v13 = vand.u32 2147483647, %v4647_v38 }
 0x2d0   :  { %v794_v27 = vsel %vm4660_vm7, %v791_v62, %v788_v16  ;;  %v797_v32 = vmul.f32 0.6931472, %v3973_v22  ;;  %v3975_v35 = vpop.eup %3974  ;;  %v826_v62 = vadd.f32 1.0, %v825_v24  ;;  %v717_v16 = vmax.f32 %v4632_v50, 0.0 }
 0x2d1   :  { %v842_v40 = vadd.f32 %v794_v27, %v714_v26  ;;  %v776_v46 = vsel %vm4666_vm8, %v773_v9, %v770_v23  ;;  %v779_v0 = vmul.f32 0.6931472, %v3975_v35  ;;  %v819_v23 = vand.u32 2147483647, %v4654_v49 }
 0x2d2   :  { %v840_v51 = vadd.f32 %v776_v46, %v712_v28  ;;  %v803_v60 = vsel %vm4672_vm10, %v800_v11, %v797_v32  ;;  %v809_v32 = vmul.f32 %v4644_v30, %v808_v8  ;;  %v827_v33 = vmul.f32 %v4639_v25, %v826_v62 }
 0x2d3   :  { %v850_v5 = vsel %vm722_vm5, %v4612_v12, %v842_v40  ;;  %v843_v26 = vadd.f32 %v803_v60, %v715_v29  ;;  %v785_v9 = vsel %vm4680_vm11, %v782_v3, %v779_v0  ;;  %v818_v40 = vmul.f32 %v4654_v49, %v817_v10 }
 0x2d4   :  { %868 = vrot.lane.b32.xlu1 %v850_v5, %s4304_s26  ;;  %v848_v28 = vsel %vm720_vm6, %v4614_v15, %v840_v51  ;;  %v841_v29 = vadd.f32 %v785_v9, %v713_v42  ;;  %v836_v30 = vmul.f32 %v4647_v38, %v835_v21  ;;  %vm820_vm15 = vcmp.lt.f32.partialorder %v819_v23, 0.0004427343 }
 0x2d5   :  { %v3977_v6 = vpop.eup %3976  ;;  %864 = vrot.lane.b32.xlu0 %v848_v28, %s4304_s26  ;;  %v851_v42 = vsel %vm723_vm9, %v4617_v18, %v843_v26  ;;  %v718_v60 = vmax.f32 %v4624_v36, 0.0  ;;  %vm838_vm5 = vcmp.lt.f32.partialorder %v837_v13, 0.0004427343  ;;  %vm724_vm6 = vcmp.ne.f32.partialorder %v4626_v45, %v4626_v45 }
 0x2d6   :  { %v3979_v22 = vpop.eup %3978  ;;  %v824_v11 = vmul.f32 0.6931472, %v3977_v6  ;;  %v849_v35 = vsel %vm721_vm13, %v4620_v20, %v841_v29  ;;  %v719_v8 = vmax.f32 %v4629_v48, 0.0  ;;  %vm725_vm7 = vcmp.ne.f32.partialorder %v4632_v50, %v4632_v50 }
 0x2d7   :  { %v3981_v24 = vpop.eup %3980  ;;  %v806_v27 = vmul.f32 0.6931472, %v3979_v22  ;;  %vm726_vm8 = vcmp.ne.f32.partialorder %v4624_v36, %v4624_v36  ;;  %vm727_vm9 = vcmp.ne.f32.partialorder %v4629_v48, %v4629_v48  ;;  %v3376_v9 = vmul.f32 -1.442695, %v4612_v12 }
 0x2d8   :  { %v3983_v34 = vpop.eup %3982  ;;  %870 = vrot.lane.b32.xlu1 %v851_v42, %s4304_s26  ;;  %v833_v46 = vmul.f32 0.6931472, %v3981_v24  ;;  %v830_v51 = vsel %vm4706_vm12, %v827_v33, %v824_v11  ;;  %v3377_v10 = vmul.f32 -1.442695, %v4617_v18  ;;  %v3375_v6 = vmul.f32 -1.442695, %v4620_v20 }
 0x2d9   :  { %866 = vrot.lane.b32.xlu0 %v849_v35, %s4304_s26  ;;  %v812_v14 = vsel %vm811_vm14, %v809_v32, %v806_v27  ;;  %v815_v47 = vmul.f32 0.6931472, %v3983_v34  ;;  %v846_v26 = vadd.f32 %v830_v51, %v718_v60  ;;  %3984 = vpow2.f32 %v3376_v9 }
 0x2da   :  { %v844_v25 = vadd.f32 %v812_v14, %v716_v54  ;;  %v839_v0 = vsel %vm838_vm5, %v836_v30, %v833_v46  ;;  %3986 = vpow2.f32 %v3374_v17  ;;  %v3378_v29 = vmul.f32 -1.442695, %v4626_v45 }
 0x2db   :  { %v821_v49 = vsel %vm820_vm15, %v818_v40, %v815_v47  ;;  %v847_v54 = vadd.f32 %v839_v0, %v719_v8  ;;  %v854_v62 = vsel %vm726_vm8, %v4624_v36, %v846_v26  ;;  %3988 = vpow2.f32 %v3377_v10 }
 0x2dc   :  { %v852_v3 = vsel %vm724_vm6, %v4626_v45, %v844_v25  ;;  %v845_v5 = vadd.f32 %v821_v49, %v717_v16  ;;  %3990 = vpow2.f32 %v3375_v6  ;;  %v3379_v16 = vmul.f32 -1.442695, %v4632_v50 }
 0x2dd   :  { %872 = vrot.lane.b32.xlu0 %v852_v3, %s4304_s26  ;;  %v855_v28 = vsel %vm727_vm9, %v4629_v48, %v847_v54  ;;  %3992 = vpow2.f32 %v3378_v29  ;;  %v3381_v21 = vmul.f32 -1.442695, %v4629_v48 }
 0x2de   :  { %v853_v38 = vsel %vm725_vm7, %v4632_v50, %v845_v5  ;;  %3994 = vpow2.f32 %v3379_v16 }
 0x2df   :  { %874 = vrot.lane.b32.xlu1 %v853_v38, %s4304_s26  ;;  %3996 = vpow2.f32 %v3380_v19 }
 0x2e0   :  { %3998 = vpow2.f32 %v3381_v21  ;;  %v4761_v21 = vld [vmem:[%s5888_s8] sm:$0xf] }
 0x2e1   :  { %876 = vrot.lane.b32.xlu0 %v854_v62, %s4304_s26 }
 0x2e3   :  { %878 = vrot.lane.b32.xlu1 %v855_v28, %s4304_s26  ;;  %v3985_v12 = vpop.eup %3984 }
 0x2e4   :  { %v3987_v15 = vpop.eup %3986  ;;  %v690_v20 = vadd.f32 1.0, %v3985_v12  ;;  %v3899_v12 = vld [vmem:[%s5840_s10 + $0x40] ss:$8 sps:$4 sm:$0xff]  }
 0x2e5   :  { %v3989_v22 = vpop.eup %3988  ;;  %v688_v23 = vadd.f32 1.0, %v3987_v15  ;;  %v3901_v15 = vld [vmem:[%s5840_s10 + $0x44] ss:$8 sps:$4 sm:$0xff]  }
 0x2e6   :  { %v3991_v18 = vpop.eup %3990  ;;  %v691_v11 = vadd.f32 1.0, %v3989_v22  ;;  %4000 = vrcp.f32 %v690_v20  ;;  %v3904_v22 = vld [vmem:[%s5840_s10 + $0x54] ss:$8 sps:$4 sm:$0xff]   ;;  %v3907_v20 = vld [vmem:[%s5840_s10 + $0x64] ss:$8 sps:$4 sm:$0xff]  }
 0x2e7   :  { %v689_v13 = vadd.f32 1.0, %v3991_v18  ;;  %v3993_v45 = vpop.eup %3992  ;;  %4002 = vrcp.f32 %v688_v23  ;;  %v3902_v18 = vld [vmem:[%s5840_s10 + $0x50] ss:$8 sps:$4 sm:$0xff]   ;;  %v3905_v23 = vld [vmem:[%s5840_s10 + $0x60] ss:$8 sps:$4 sm:$0xff]  }
 0x2e8   :  { %v3995_v50 = vpop.eup %3994  ;;  %4004 = vrcp.f32 %v691_v11  ;;  %v692_v36 = vadd.f32 1.0, %v3993_v45  ;;  %v3910_v11 = vld [vmem:[%s5840_s10 + $0x74] ss:$8 sps:$4 sm:$0xff]   ;;  %v3383_v45 = vld [vmem:[%s5843_s13] ss:$0 sm:$0xff] }
 0x2e9   :  { %4006 = vrcp.f32 %v689_v13  ;;  %v3997_v24 = vpop.eup %3996  ;;  %v693_v48 = vadd.f32 1.0, %v3995_v50  ;;  %v3908_v13 = vld [vmem:[%s5840_s10 + $0x70] ss:$8 sps:$4 sm:$0xff]  }
 0x2ea   :  { %v3999_v42 = vpop.eup %3998  ;;  %4008 = vrcp.f32 %v692_v36  ;;  %v694_v32 = vadd.f32 1.0, %v3997_v24  ;;  %v3384_v36 = vld [vmem:[%s5844_s14] ss:$0 sm:$0xff] }
 0x2eb   :  { %4010 = vrcp.f32 %v693_v48  ;;  %v695_v34 = vadd.f32 1.0, %v3999_v42 }
 0x2ec   :  { %4012 = vrcp.f32 %v694_v32 }
 0x2ed   :  { %4014 = vrcp.f32 %v695_v34 }
 0x2f0   :  { %v4001_v35 = vpop.eup %4000 }
 0x2f1   :  { %v4003_v40 = vpop.eup %4002 }
 0x2f2   :  { %v4005_v46 = vpop.eup %4004 }
 0x2f3   :  { %v4007_v47 = vpop.eup %4006 }
 0x2f4   :  { %v4009_v26 = vpop.eup %4008 }
 0x2f5   :  { %v4011_v8 = vpop.eup %4010 }
 0x2f6   :  { %v4013_v9 = vpop.eup %4012 }
 0x2f7   :  { %v4015_v10 = vpop.eup %4014 }
 0x346   :  { %v869_v27 = vpop.permute.xlu1 %868 }
 0x347   :  { %v865_v33 = vpop.permute.xlu0 %864  ;;  %v890_v51 = vmul.f32 %v4001_v35, %v869_v27 }
 0x348   :  { %v888_v60 = vmul.f32 %v4003_v40, %v865_v33 }
 0x34a   :  { %v871_v14 = vpop.permute.xlu1 %870 }
 0x34b   :  { %v891_v30 = vmul.f32 %v4005_v46, %v871_v14  ;;  %v867_v25 = vpop.permute.xlu0 %866 }
 0x34c   :  { %v889_v49 = vmul.f32 %v4007_v47, %v867_v25 }
 0x34d   :  { %v897_v0 = vpack.c.bf16 %v891_v30, %v890_v51 }
 0x34e   :  { %v896_v3 = vpack.c.bf16 %v889_v49, %v888_v60 }
 0x34f   :  { %v873_v5 = vpop.permute.xlu0 %872 }
 0x350   :  { %3647 = vmatpush3.bf16.msra.mxu1 %v896_v3  ;;  %v892_v54 = vmul.f32 %v4009_v26, %v873_v5 }
 0x351   :  { %v875_v38 = vpop.permute.xlu1 %874  ;;  %3648 = vmatprep.subr.bf16.mxu1 %v4301_v2 }
 0x352   :  { %v893_v62 = vmul.f32 %v4011_v8, %v875_v38 }
 0x353   :  { %v877_v28 = vpop.permute.xlu0 %876 }
 0x354   :  { %v898_v17 = vpack.c.bf16 %v893_v62, %v892_v54  ;;  %3649 = vmatpush3.bf16.msra.mxu1 %v897_v0  ;;  %v894_v29 = vmul.f32 %v4013_v9, %v877_v28 }
 0x355   :  { %v879_v6 = vpop.permute.xlu1 %878  ;;  %3650 = vmatprep.subr.bf16.mxu1 %v4301_v2 }
 0x356   :  { %v895_v16 = vmul.f32 %v4015_v10, %v879_v6 }
 0x358   :  { %v899_v19 = vpack.c.bf16 %v895_v16, %v894_v29  ;;  %3651 = vmatpush3.bf16.msra.mxu1 %v898_v17 }
 0x359   :  { %3652 = vmatprep.subr.bf16.mxu1 %v4301_v2 }
 0x35c   :  { %3653 = vmatpush3.bf16.msra.mxu1 %v899_v19 }
 0x35d   :  { %1031 = vmatprep.subr.bf16.mxu1 %v3901_v15 }
 0x35f   :  { %3655 = vmatmul.mubr.msk.bf16.vlgmr.msra.gmra.mrb[8].mxu1 %vm392_vm2, %v4761_v21 }
 0x360   :  { %1063 = vmatprep.mubr.bf16.mxu1 %v4303_v7  ;;  %1032 = vmatpush1.bf16.msra.mxu1 %v3899_v12 }
 0x361   :  { %1033 = vmatprep.subr.bf16.mxu1 %v3904_v22 }
 0x364   :  { %1034 = vmatpush1.bf16.msra.mxu1 %v3902_v18 }
 0x365   :  { %1035 = vmatprep.subr.bf16.mxu1 %v3907_v20 }
 0x368   :  { %1036 = vmatpush1.bf16.msra.mxu1 %v3905_v23 }
 0x369   :  { %1037 = vmatprep.subr.bf16.mxu1 %v3910_v11 }
 0x36c   :  { %1038 = vmatpush1.bf16.msra.mxu1 %v3908_v13 }
 0x432   :  { %v937_v50 = vpop.f32.mrb[8].mxu1 }
 0x433   :  { %v950_v24 = vmul.f32 %v3383_v45, %v937_v50  ;;  %v3656_v48 = vpop.f32.mrb[9].mxu1 }
 0x434   :  { %v940_v42 = vpop.f32.mrb[10].mxu1 }
 0x435   :  { %v958_v27 = vadd.f32 %v3384_v36, %v950_v24  ;;  %v3657_v32 = vpop.f32.mrb[11].mxu1 }
 0x437   :  { %v959_v33 = vadd.f32 %v958_v27, %v4525_v31 }
 0x439   :  { %v963_v34 = vand.u32 2147483647, %v959_v33  ;;  %v960_v0 = vmax.f32 %v959_v33, 0.0  ;;  %vm961_vm11 = vcmp.ne.f32.partialorder %v959_v33, %v959_v33 }
 0x43b   :  { %v964_v35 = vsub.f32 0.0, %v963_v34 }
 0x43d   :  { %v965_v40 = vmul.f32 1.442695, %v964_v35 }
 0x43f   :  { %4016 = vpow2.f32 %v965_v40 }
 0x449   :  { %v4017_v46 = vpop.eup %4016 }
 0x44a   :  { %v967_v14 = vadd.f32 1.0, %v4017_v46  ;;  %v970_v47 = vmul.f32 -0.5, %v4017_v46  ;;  %v973_v30 = vand.u32 2147483647, %v4017_v46 }
 0x44c   :  { %4018 = vlog2.f32 %v967_v14  ;;  %v971_v51 = vadd.f32 1.0, %v970_v47  ;;  %vm974_vm10 = vcmp.lt.f32.partialorder %v973_v30, 0.0004427343 }
 0x44e   :  { %v972_v49 = vmul.f32 %v4017_v46, %v971_v51 }
 0x456   :  { %v4019_v25 = vpop.eup %4018 }
 0x457   :  { %v969_v60 = vmul.f32 0.6931472, %v4019_v25 }
 0x459   :  { %v975_v3 = vsel %vm974_vm10, %v972_v49, %v969_v60 }
 0x45a   :  { %v976_v5 = vadd.f32 %v975_v3, %v960_v0 }
 0x45c   :  { %v4797_v26 = vsel %vm961_vm11, %v959_v33, %v976_v5 }
 0x45d   :  { %v987_v31 = vpack.c.bf16 %v4797_v26, %v4797_v26 }
 0x45f   :  { %3401 = vmatmul.mubr.msk.bf16.vlgmr.msra.gmra.mrb[12].mxu1 %vm392_vm2, %v987_v31 }
 0x460   :  { %3660 = vmatprep.mubr.msk.bf16.mxu1 %vm459_vm3, %v4541_v44 }
 0x532   :  { %v1065_v8 = vpop.f32.mrb[12].mxu1 }
 0x533   :  { %v1067_v38 = vpop.f32.mrb[13].mxu1  ;;  %v1072_v9 = vpack.c.bf16 %v1065_v8, %v1065_v8 }
 0x534   :  { %v1073_v54 = vpack.c.bf16 %v1067_v38, %v1067_v38  ;;  %v1069_v62 = vpop.f32.mrb[14].mxu1 }
 0x535   :  { %v1070_v28 = vpop.f32.mrb[15].mxu1  ;;  %v1143_v10 = vsel %vm472_vm4, %v1072_v9, 0 }
 0x536   :  { %v1075_v17 = vsel %vm472_vm4, %v1073_v54, 0  ;;  %3864 = vmatprep.subr.msk.bf16.mxu1 %vm472_vm4, %v1073_v54 }
 0x537   :  { %3659 = vmatpush3.bf16.msra.mxu1 %v1075_v17 }
 0x538   :  { %3865 = vmatprep.subr.msk.bf16.mxu1 %vm472_vm4, %v1072_v9 }
 0x53a   :  { %3661 = vmatmul.mubr.msk.bf16.vlgmr.msra.gmra.mrb[16].mxu1 %vm459_vm3, %v4550_v52  ;;  %v3411_v52 = vld [vmem:[%s5842_s12 + $0x1] ss:$0 sm:$0xff] }
 0x53b   :  { %3669 = vmatpush3.bf16.msra.mxu1 %v1143_v10  ;;  %3664 = vmatprep.mubr.msk.bf16.mxu1 %vm459_vm3, %v4555_v53 }
 0x53c   :  { %3710 = vmatprep.subr.bf16.mxu1 %v4301_v2 }
 0x542   :  { %3665 = vmatmul.mubr.msk.bf16.gmra.mrb[20].mxu1 %vm459_vm3, %v4567_v55 }
 0x543   :  { %3670 = vmatprep.mubr.msk.bf16.mxu1 %vm459_vm3, %v4572_v56 }
 0x54a   :  { %3671 = vmatmul.mubr.msk.bf16.vlgmr.msra.gmra.mrb[16].mxu1 %vm459_vm3, %v4581_v57 }
 0x54b   :  { %3674 = vmatprep.mubr.msk.bf16.mxu1 %vm459_vm3, %v4586_v58 }
 0x552   :  { %3675 = vmatmul.mubr.msk.bf16.gmra.mrb[20].mxu1 %vm459_vm3, %v4595_v59 }
 0x553   :  { %3718 = vmatprep.mubr.msk.bf16.mxu1 %vm4302_vm0, %v4301_v2 }
 0x61d   :  { %v3672_v44 = vpop.f32.mrb[16].mxu1 }
 0x61e   :  { %v1212_v53 = vadd.f32 %v3672_v44, %v4534_v41  ;;  %v1179_v55 = vpop.f32.mrb[17].mxu1 }
 0x61f   :  { %v1210_v56 = vadd.f32 %v1179_v55, %v4530_v37  ;;  %v3673_v57 = vpop.f32.mrb[18].mxu1 }
 0x620   :  { %v4830_v6 = vadd.f32 %v3411_v52, %v1212_v53  ;;  %v1213_v58 = vadd.f32 %v3673_v57, %v4536_v43  ;;  %v1182_v29 = vpop.f32.mrb[19].mxu1 }
 0x621   :  { %v4833_v59 = vadd.f32 %v3411_v52, %v1210_v56  ;;  %v1211_v16 = vadd.f32 %v1182_v29, %v4532_v39 }
 0x622   :  { %v1308_v19 = vand.u32 2147483647, %v4830_v6  ;;  %v4837_v12 = vadd.f32 %v3411_v52, %v1213_v58  ;;  %v1284_v53 = vmax.f32 %v4830_v6, 0.0  ;;  %vm1292_vm6 = vcmp.ne.f32.partialorder %v4830_v6, %v4830_v6 }
 0x623   :  { %v1306_v15 = vand.u32 2147483647, %v4833_v59  ;;  %v4840_v41 = vadd.f32 %v3411_v52, %v1211_v16  ;;  %v1282_v44 = vmax.f32 %v4833_v59, 0.0  ;;  %vm1290_vm12 = vcmp.ne.f32.partialorder %v4833_v59, %v4833_v59 }
 0x624   :  { %v1316_v22 = vsub.f32 0.0, %v1308_v19  ;;  %v1309_v37 = vand.u32 2147483647, %v4837_v12  ;;  %vm1293_vm7 = vcmp.ne.f32.partialorder %v4837_v12, %v4837_v12 }
 0x625   :  { %v1314_v18 = vsub.f32 0.0, %v1306_v15  ;;  %v1307_v20 = vand.u32 2147483647, %v4840_v41  ;;  %v3676_v43 = vpop.f32.mrb[20].mxu1  ;;  %vm1291_vm14 = vcmp.ne.f32.partialorder %v4840_v41, %v4840_v41 }
 0x626   :  { %v1326_v23 = vmul.f32 1.442695, %v1316_v22  ;;  %v1317_v11 = vsub.f32 0.0, %v1309_v37  ;;  %v1216_v13 = vadd.f32 %v3676_v43, %v4605_v1  ;;  %v1195_v39 = vpop.f32.mrb[21].mxu1  ;;  %v1283_v22 = vmax.f32 %v4840_v41, 0.0 }
 0x627   :  { %v1322_v45 = vmul.f32 1.442695, %v1314_v18  ;;  %v1315_v50 = vsub.f32 0.0, %v1307_v20  ;;  %v1214_v36 = vadd.f32 %v1195_v39, %v4601_v61  ;;  %v3677_v24 = vpop.f32.mrb[22].mxu1  ;;  %v1285_v37 = vmax.f32 %v4837_v12, 0.0 }
 0x628   :  { %4020 = vpow2.f32 %v1326_v23  ;;  %v1328_v48 = vmul.f32 1.442695, %v1317_v11  ;;  %v4846_v42 = vadd.f32 %v3411_v52, %v1216_v13  ;;  %v1217_v27 = vadd.f32 %v3677_v24, %v4607_v4  ;;  %v1198_v32 = vpop.f32.mrb[23].mxu1 }
 0x629   :  { %4022 = vpow2.f32 %v1322_v45  ;;  %v1324_v33 = vmul.f32 1.442695, %v1315_v50  ;;  %v4849_v34 = vadd.f32 %v3411_v52, %v1214_v36  ;;  %v1215_v35 = vadd.f32 %v1198_v32, %v4603_v63 }
 0x62a   :  { %4024 = vpow2.f32 %v1328_v48  ;;  %v1312_v1 = vand.u32 2147483647, %v4846_v42  ;;  %v4853_v40 = vadd.f32 %v3411_v52, %v1217_v27 }
 0x62b   :  { %4026 = vpow2.f32 %v1324_v33  ;;  %v1310_v61 = vand.u32 2147483647, %v4849_v34  ;;  %v4856_v46 = vadd.f32 %v3411_v52, %v1215_v35  ;;  %v1286_v23 = vmax.f32 %v4849_v34, 0.0 }
 0x62c   :  { %v1320_v14 = vsub.f32 0.0, %v1312_v1  ;;  %v1313_v4 = vand.u32 2147483647, %v4853_v40 }
 0x62d   :  { %v1318_v47 = vsub.f32 0.0, %v1310_v61  ;;  %v1311_v51 = vand.u32 2147483647, %v4856_v46 }
 0x62e   :  { %v1334_v30 = vmul.f32 1.442695, %v1320_v14  ;;  %v1321_v25 = vsub.f32 0.0, %v1313_v4 }
 0x62f   :  { %v1330_v60 = vmul.f32 1.442695, %v1318_v47  ;;  %v1319_v63 = vsub.f32 0.0, %v1311_v51 }
 0x630   :  { %4028 = vpow2.f32 %v1334_v30  ;;  %v1336_v49 = vmul.f32 1.442695, %v1321_v25 }
 0x631   :  { %4030 = vpow2.f32 %v1330_v60  ;;  %v1332_v0 = vmul.f32 1.442695, %v1319_v63 }
 0x632   :  { %v4021_v3 = vpop.eup %4020  ;;  %4032 = vpow2.f32 %v1336_v49 }
 0x633   :  { %v4023_v5 = vpop.eup %4022  ;;  %4034 = vpow2.f32 %v1332_v0  ;;  %v1356_v31 = vadd.f32 1.0, %v4021_v3  ;;  %v1359_v9 = vmul.f32 -0.5, %v4021_v3  ;;  %v1362_v29 = vand.u32 2147483647, %v4021_v3 }
 0x634   :  { %v4860_v8 = vpop.eup %4024  ;;  %v1338_v38 = vadd.f32 1.0, %v4023_v5  ;;  %v1341_v17 = vmul.f32 -0.5, %v4023_v5  ;;  %v1344_v57 = vand.u32 2147483647, %v4023_v5 }
 0x635   :  { %v4027_v54 = vpop.eup %4026  ;;  %4036 = vlog2.f32 %v1356_v31  ;;  %v1365_v62 = vadd.f32 1.0, %v4860_v8  ;;  %v1368_v55 = vmul.f32 -0.5, %v4860_v8  ;;  %v1360_v58 = vadd.f32 1.0, %v1359_v9 }
 0x636   :  { %4038 = vlog2.f32 %v1338_v38  ;;  %v1347_v28 = vadd.f32 1.0, %v4027_v54  ;;  %v1350_v52 = vmul.f32 -0.5, %v4027_v54  ;;  %v1342_v15 = vadd.f32 1.0, %v1341_v17 }
 0x637   :  { %4040 = vlog2.f32 %v1365_v62  ;;  %v1353_v43 = vand.u32 2147483647, %v4027_v54  ;;  %v1369_v39 = vadd.f32 1.0, %v1368_v55  ;;  %vm4883_vm13 = vcmp.lt.f32.partialorder %v1344_v57, 0.0004427343 }
 0x638   :  { %4042 = vlog2.f32 %v1347_v28  ;;  %v1351_v13 = vadd.f32 1.0, %v1350_v52  ;;  %v1361_v24 = vmul.f32 %v4021_v3, %v1360_v58  ;;  %vm4889_vm15 = vcmp.lt.f32.partialorder %v1362_v29, 0.0004427343 }
 0x639   :  { %v1343_v32 = vmul.f32 %v4023_v5, %v1342_v15  ;;  %v1371_v35 = vand.u32 2147483647, %v4860_v8  ;;  %vm4894_vm5 = vcmp.lt.f32.partialorder %v1353_v43, 0.0004427343  ;;  %v1370_v60 = vmul.f32 %v4860_v8, %v1369_v39 }
 0x63a   :  { %v4863_v10 = vpop.eup %4028  ;;  %v1352_v30 = vmul.f32 %v4027_v54, %v1351_v13  ;;  %v1287_v29 = vmax.f32 %v4856_v46, 0.0  ;;  %v1288_v15 = vmax.f32 %v4846_v42, 0.0  ;;  %v3418_v38 = vmul.f32 -1.442695, %v4846_v42 }
 0x63b   :  { %v4868_v56 = vpop.eup %4030  ;;  %v1392_v16 = vadd.f32 1.0, %v4863_v10  ;;  %v1395_v47 = vmul.f32 -0.5, %v4863_v10  ;;  %vm4911_vm8 = vcmp.lt.f32.partialorder %v1371_v35, 0.0004427343  ;;  %v1398_v54 = vand.u32 2147483647, %v4863_v10 }
 0x63c   :  { %v4871_v19 = vpop.eup %4032  ;;  %v1374_v18 = vadd.f32 1.0, %v4868_v56  ;;  %v1377_v4 = vmul.f32 -0.5, %v4868_v56  ;;  %v1380_v8 = vand.u32 2147483647, %v4868_v56 }
 0x63d   :  { %v4876_v20 = vpop.eup %4034  ;;  %4044 = vlog2.f32 %v1392_v16  ;;  %v1401_v11 = vadd.f32 1.0, %v4871_v19  ;;  %v1404_v5 = vmul.f32 -0.5, %v4871_v19  ;;  %v1396_v17 = vadd.f32 1.0, %v1395_v47 }
 0x63e   :  { %4046 = vlog2.f32 %v1374_v18  ;;  %v1383_v45 = vadd.f32 1.0, %v4876_v20  ;;  %v1386_v63 = vmul.f32 -0.5, %v4876_v20  ;;  %v1378_v9 = vadd.f32 1.0, %v1377_v4 }
 0x63f   :  { %v4037_v50 = vpop.eup %4036  ;;  %4048 = vlog2.f32 %v1401_v11  ;;  %v1389_v16 = vand.u32 2147483647, %v4876_v20  ;;  %v1405_v18 = vadd.f32 1.0, %v1404_v5  ;;  %v1397_v36 = vmul.f32 %v4863_v10, %v1396_v17 }
 0x640   :  { %v4039_v27 = vpop.eup %4038  ;;  %v1358_v33 = vmul.f32 0.6931472, %v4037_v50  ;;  %4050 = vlog2.f32 %v1383_v45  ;;  %v1387_v57 = vadd.f32 1.0, %v1386_v63  ;;  %v1379_v50 = vmul.f32 %v4868_v56, %v1378_v9 }
 0x641   :  { %v4041_v1 = vpop.eup %4040  ;;  %v1340_v61 = vmul.f32 0.6931472, %v4039_v27  ;;  %vm4937_vm9 = vcmp.lt.f32.partialorder %v1398_v54, 0.0004427343  ;;  %vm1381_vm10 = vcmp.lt.f32.partialorder %v1380_v8, 0.0004427343  ;;  %v1406_v35 = vmul.f32 %v4871_v19, %v1405_v18 }
 0x642   :  { %v4043_v51 = vpop.eup %4042  ;;  %v1367_v25 = vmul.f32 0.6931472, %v4041_v1  ;;  %v1364_v3 = vsel %vm4889_vm15, %v1361_v24, %v1358_v33  ;;  %v1388_v27 = vmul.f32 %v4876_v20, %v1387_v57  ;;  %vm1390_vm11 = vcmp.lt.f32.partialorder %v1389_v16, 0.0004427343 }
 0x643   :  { %v1346_v49 = vsel %vm4883_vm13, %v1343_v32, %v1340_v61  ;;  %v1349_v0 = vmul.f32 0.6931472, %v4043_v51  ;;  %v1412_v55 = vadd.f32 %v1364_v3, %v1284_v53  ;;  %v1407_v53 = vand.u32 2147483647, %v4871_v19 }
 0x644   :  { %v1410_v31 = vadd.f32 %v1346_v49, %v1282_v44  ;;  %v1373_v28 = vsel %vm4911_vm8, %v1370_v60, %v1367_v25  ;;  %vm1294_vm13 = vcmp.ne.f32.partialorder %v4849_v34, %v4849_v34  ;;  %v1289_v51 = vmax.f32 %v4853_v40, 0.0 }
 0x645   :  { %v1355_v62 = vsel %vm4894_vm5, %v1352_v30, %v1349_v0  ;;  %v1413_v13 = vadd.f32 %v1373_v28, %v1285_v37  ;;  %v1420_v37 = vsel %vm1292_vm6, %v4830_v6, %v1412_v55  ;;  %vm1296_vm15 = vcmp.ne.f32.partialorder %v4846_v42, %v4846_v42 }
 0x646   :  { %v1418_v44 = vsel %vm1290_vm12, %v4833_v59, %v1410_v31  ;;  %v1411_v52 = vadd.f32 %v1355_v62, %v1283_v22  ;;  %vm1408_vm12 = vcmp.lt.f32.partialorder %v1407_v53, 0.0004427343  ;;  %vm1297_vm5 = vcmp.ne.f32.partialorder %v4853_v40, %v4853_v40 }
 0x647   :  { %v4045_v58 = vpop.eup %4044  ;;  %1434 = vrot.lane.b32.xlu0 %v1418_v44, %s4304_s26  ;;  %v1421_v1 = vsel %vm1293_vm7, %v4837_v12, %v1413_v13  ;;  %v3412_v63 = vmul.f32 -1.442695, %v4833_v59  ;;  %v3413_v49 = vmul.f32 -1.442695, %v4840_v41  ;;  %v3414_v0 = vmul.f32 -1.442695, %v4830_v6 }
 0x648   :  { %v4047_v43 = vpop.eup %4046  ;;  %v1419_v11 = vsel %vm1291_vm14, %v4840_v41, %v1411_v52  ;;  %v1394_v22 = vmul.f32 0.6931472, %v4045_v58  ;;  %vm1295_vm14 = vcmp.ne.f32.partialorder %v4856_v46, %v4856_v46  ;;  %v3415_v3 = vmul.f32 -1.442695, %v4837_v12 }
 0x649   :  { %v4049_v39 = vpop.eup %4048  ;;  %1436 = vrot.lane.b32.xlu1 %v1419_v11, %s4304_s26  ;;  %v1376_v45 = vmul.f32 0.6931472, %v4047_v43  ;;  %4052 = vpow2.f32 %v3412_v63  ;;  %v3416_v5 = vmul.f32 -1.442695, %v4849_v34  ;;  %v3417_v31 = vmul.f32 -1.442695, %v4856_v46 }
 0x64a   :  { %v4051_v48 = vpop.eup %4050  ;;  %v1403_v32 = vmul.f32 0.6931472, %v4049_v39  ;;  %v1400_v10 = vsel %vm4937_vm9, %v1397_v36, %v1394_v22  ;;  %4054 = vpow2.f32 %v3413_v49  ;;  %v3419_v8 = vmul.f32 -1.442695, %v4853_v40  ;;  %v3424_v63 = vld [vmem:[%s5844_s14 + $0x1] ss:$0 sm:$0xff] }
 0x64b   :  { %1438 = vrot.lane.b32.xlu0 %v1420_v37, %s4304_s26  ;;  %v1382_v33 = vsel %vm1381_vm10, %v1379_v50, %v1376_v45  ;;  %v1385_v56 = vmul.f32 0.6931472, %v4051_v48  ;;  %v1416_v47 = vadd.f32 %v1400_v10, %v1288_v15  ;;  %4056 = vpow2.f32 %v3414_v0 }
 0x64c   :  { %v1414_v61 = vadd.f32 %v1382_v33, %v1286_v23  ;;  %v1409_v14 = vsel %vm1408_vm12, %v1406_v35, %v1403_v32  ;;  %4058 = vpow2.f32 %v3415_v3 }
 0x64d   :  { %1440 = vrot.lane.b32.xlu1 %v1421_v1, %s4304_s26  ;;  %v1391_v20 = vsel %vm1390_vm11, %v1388_v27, %v1385_v56  ;;  %v1417_v30 = vadd.f32 %v1409_v14, %v1289_v51  ;;  %v1424_v25 = vsel %vm1296_vm15, %v4846_v42, %v1416_v47  ;;  %4060 = vpow2.f32 %v3416_v5  ;;  %v3916_v47 = vld [vmem:[%s5840_s10 + $0x94] ss:$8 sps:$4 sm:$0xff]   ;;  %v3917_v51 = vld [vmem:[%s5840_s10 + $0xa0] ss:$8 sps:$4 sm:$0xff]  }
 0x64e   :  { %v1422_v4 = vsel %vm1294_vm13, %v4849_v34, %v1414_v61  ;;  %v1415_v19 = vadd.f32 %v1391_v20, %v1287_v29  ;;  %4062 = vpow2.f32 %v3417_v31 }
 0x64f   :  { %1442 = vrot.lane.b32.xlu0 %v1422_v4, %s4304_s26  ;;  %v1425_v60 = vsel %vm1297_vm5, %v4853_v40, %v1417_v30  ;;  %4064 = vpow2.f32 %v3418_v38  ;;  %v3911_v4 = vld [vmem:[%s5840_s10 + $0x80] ss:$8 sps:$4 sm:$0xff]   ;;  %v3920_v30 = vld [vmem:[%s5840_s10 + $0xb0] ss:$8 sps:$4 sm:$0xff]  }
 0x650   :  { %v1423_v23 = vsel %vm1295_vm14, %v4856_v46, %v1415_v19  ;;  %4066 = vpow2.f32 %v3419_v8  ;;  %v3913_v19 = vld [vmem:[%s5840_s10 + $0x84] ss:$8 sps:$4 sm:$0xff]  }
 0x651   :  { %1444 = vrot.lane.b32.xlu1 %v1423_v23, %s4304_s26  ;;  %v3922_v23 = vld [vmem:[%s5840_s10 + $0xb4] ss:$8 sps:$4 sm:$0xff]  }
 0x653   :  { %1446 = vrot.lane.b32.xlu0 %v1424_v25, %s4304_s26  ;;  %v4053_v59 = vpop.eup %4052  ;;  %v3422_v25 = vld [vmem:[%s5843_s13 + $0x1] ss:$0 sm:$0xff] }
 0x654   :  { %v4055_v41 = vpop.eup %4054  ;;  %v1258_v6 = vadd.f32 1.0, %v4053_v59 }
 0x655   :  { %1448 = vrot.lane.b32.xlu1 %v1425_v60, %s4304_s26  ;;  %v4057_v54 = vpop.eup %4056  ;;  %v1259_v12 = vadd.f32 1.0, %v4055_v41 }
 0x656   :  { %v4059_v62 = vpop.eup %4058  ;;  %4068 = vrcp.f32 %v1258_v6  ;;  %v1260_v34 = vadd.f32 1.0, %v4057_v54 }
 0x657   :  { %v4061_v28 = vpop.eup %4060  ;;  %4070 = vrcp.f32 %v1259_v12  ;;  %v1261_v46 = vadd.f32 1.0, %v4059_v62 }
 0x658   :  { %v4063_v9 = vpop.eup %4062  ;;  %4072 = vrcp.f32 %v1260_v34  ;;  %v1262_v42 = vadd.f32 1.0, %v4061_v28 }
 0x659   :  { %v4065_v17 = vpop.eup %4064  ;;  %4074 = vrcp.f32 %v1261_v46  ;;  %v1263_v40 = vadd.f32 1.0, %v4063_v9 }
 0x65a   :  { %v4067_v44 = vpop.eup %4066  ;;  %4076 = vrcp.f32 %v1262_v42  ;;  %v1264_v52 = vadd.f32 1.0, %v4065_v17 }
 0x65b   :  { %4078 = vrcp.f32 %v1263_v40  ;;  %v1265_v57 = vadd.f32 1.0, %v4067_v44 }
 0x65c   :  { %4080 = vrcp.f32 %v1264_v52  ;;  %v4260_v52 = vld [vmem:[%s5876_s30] sm:$0xff]  }
 0x65d   :  { %4082 = vrcp.f32 %v1265_v57 }
 0x660   :  { %v4069_v58 = vpop.eup %4068 }
 0x661   :  { %v4071_v29 = vpop.eup %4070 }
 0x662   :  { %v4073_v11 = vpop.eup %4072 }
 0x663   :  { %v4075_v22 = vpop.eup %4074 }
 0x664   :  { %v4077_v36 = vpop.eup %4076 }
 0x665   :  { %v4079_v48 = vpop.eup %4078 }
 0x666   :  { %v4081_v56 = vpop.eup %4080 }
 0x667   :  { %v4083_v35 = vpop.eup %4082 }
 0x6b9   :  { %v1435_v55 = vpop.permute.xlu0 %1434 }
 0x6ba   :  { %v1458_v15 = vmul.f32 %v4069_v58, %v1435_v55 }
 0x6bb   :  { %v1437_v16 = vpop.permute.xlu1 %1436 }
 0x6bc   :  { %v1459_v18 = vmul.f32 %v4071_v29, %v1437_v16 }
 0x6bd   :  { %v1439_v43 = vpop.permute.xlu0 %1438 }
 0x6be   :  { %v1466_v13 = vpack.c.bf16 %v1459_v18, %v1458_v15  ;;  %v1460_v39 = vmul.f32 %v4073_v11, %v1439_v43  ;;  %v4261_v11 = vld [vmem:[%s5876_s30 + $0x8] sm:$0xff]  }
 0x6bf   :  { %v1441_v53 = vpop.permute.xlu1 %1440 }
 0x6c0   :  { %v1461_v45 = vmul.f32 %v4075_v22, %v1441_v53  ;;  %3679 = vmatpush3.bf16.msra.mxu0 %v1466_v13  ;;  %v4262_v13 = vld [vmem:[%s5876_s30 + $0x10] sm:$0xff]   ;;  %v4263_v22 = vld [vmem:[%s5876_s30 + $0x18] sm:$0xff]   ;;  %v4264_v53 = vld [vmem:[%s5877_s28] sm:$0xff]  }
 0x6c1   :  { %v1443_v50 = vpop.permute.xlu0 %1442  ;;  %3680 = vmatprep.subr.bf16.mxu0 %v4301_v2 }
 0x6c2   :  { %v1467_v24 = vpack.c.bf16 %v1461_v45, %v1460_v39  ;;  %v1462_v27 = vmul.f32 %v4077_v36, %v1443_v50  ;;  %v4265_v39 = vld [vmem:[%s5877_s28 + $0x8] sm:$0xff]   ;;  %v4266_v45 = vld [vmem:[%s5877_s28 + $0x10] sm:$0xff]   ;;  %v4267_v50 = vld [vmem:[%s5877_s28 + $0x18] sm:$0xff]  }
 0x6c3   :  { %v1445_v37 = vpop.permute.xlu1 %1444  ;;  %v3451_v36 = vld [vmem:[%s5842_s12 + $0x2] ss:$0 sm:$0xff]  ;;  %s5920_s12 = sld [smem:[#allocation13_spill]] }
 0x6c4   :  { %v1463_v32 = vmul.f32 %v4079_v48, %v1445_v37  ;;  %3681 = vmatpush3.bf16.msra.mxu0 %v1467_v24 }
 0x6c5   :  { %v1447_v33 = vpop.permute.xlu0 %1446  ;;  %3682 = vmatprep.subr.bf16.mxu0 %v4301_v2 }
 0x6c6   :  { %v1468_v10 = vpack.c.bf16 %v1463_v32, %v1462_v27  ;;  %v1464_v61 = vmul.f32 %v4081_v56, %v1447_v33 }
 0x6c7   :  { %v1449_v1 = vpop.permute.xlu1 %1448 }
 0x6c8   :  { %v1465_v20 = vmul.f32 %v4083_v35, %v1449_v1  ;;  %3683 = vmatpush3.bf16.msra.mxu0 %v1468_v10 }
 0x6c9   :  { %3684 = vmatprep.subr.bf16.mxu0 %v4301_v2 }
 0x6ca   :  { %v1469_v14 = vpack.c.bf16 %v1465_v20, %v1464_v61 }
 0x6cc   :  { %3685 = vmatpush3.bf16.msra.mxu0 %v1469_v14 }
 0x6cd   :  { %1600 = vmatprep.subr.bf16.mxu0 %v3913_v19 }
 0x6cf   :  { %3687 = vmatmul.mubr.msk.bf16.vlgmr.msra.gmra.mrb[32].mxu0 %vm392_vm2, %v4761_v21  ;;  %v3914_v21 = vld [vmem:[%s5840_s10 + $0x90] ss:$8 sps:$4 sm:$0xff]  }
 0x6d0   :  { %1632 = vmatprep.mubr.bf16.mxu0 %v4303_v7  ;;  %1601 = vmatpush1.bf16.msra.mxu0 %v3911_v4  ;;  %v3919_v7 = vld [vmem:[%s5840_s10 + $0xa4] ss:$8 sps:$4 sm:$0xff]  }
 0x6d1   :  { %1602 = vmatprep.subr.bf16.mxu0 %v3916_v47 }
 0x6d4   :  { %1603 = vmatpush1.bf16.msra.mxu0 %v3914_v21 }
 0x6d5   :  { %1604 = vmatprep.subr.bf16.mxu0 %v3919_v7 }
 0x6d8   :  { %1605 = vmatpush1.bf16.msra.mxu0 %v3917_v51 }
 0x6d9   :  { %1606 = vmatprep.subr.bf16.mxu0 %v3922_v23 }
 0x6dc   :  { %1607 = vmatpush1.bf16.msra.mxu0 %v3920_v30 }
 0x7a2   :  { %v1504_v60 = vpop.f32.mrb[32].mxu0 }
 0x7a3   :  { %v1518_v49 = vmul.f32 %v3422_v25, %v1504_v60  ;;  %v3688_v0 = vpop.f32.mrb[33].mxu0 }
 0x7a4   :  { %v1507_v3 = vpop.f32.mrb[34].mxu0 }
 0x7a5   :  { %v1527_v5 = vadd.f32 %v3424_v63, %v1518_v49  ;;  %v3689_v31 = vpop.f32.mrb[35].mxu0 }
 0x7a7   :  { %v1528_v38 = vadd.f32 %v1527_v5, %v4797_v26 }
 0x7a9   :  { %v1532_v8 = vand.u32 2147483647, %v1528_v38  ;;  %v1529_v42 = vmax.f32 %v1528_v38, 0.0  ;;  %vm1530_vm7 = vcmp.ne.f32.partialorder %v1528_v38, %v1528_v38 }
 0x7ab   :  { %v1533_v59 = vsub.f32 0.0, %v1532_v8 }
 0x7ad   :  { %v1534_v41 = vmul.f32 1.442695, %v1533_v59 }
 0x7af   :  { %4084 = vpow2.f32 %v1534_v41 }
 0x7b9   :  { %v4085_v6 = vpop.eup %4084 }
 0x7ba   :  { %v1536_v54 = vadd.f32 1.0, %v4085_v6  ;;  %v1539_v12 = vmul.f32 -0.5, %v4085_v6  ;;  %v1542_v34 = vand.u32 2147483647, %v4085_v6 }
 0x7bc   :  { %4086 = vlog2.f32 %v1536_v54  ;;  %v1540_v62 = vadd.f32 1.0, %v1539_v12  ;;  %vm1543_vm6 = vcmp.lt.f32.partialorder %v1542_v34, 0.0004427343 }
 0x7be   :  { %v1541_v9 = vmul.f32 %v4085_v6, %v1540_v62 }
 0x7c6   :  { %v4087_v28 = vpop.eup %4086 }
 0x7c7   :  { %v1538_v46 = vmul.f32 0.6931472, %v4087_v28 }
 0x7c9   :  { %v1544_v17 = vsel %vm1543_vm6, %v1541_v9, %v1538_v46 }
 0x7ca   :  { %v1545_v40 = vadd.f32 %v1544_v17, %v1529_v42 }
 0x7cc   :  { %v5019_v44 = vsel %vm1530_vm7, %v1528_v38, %v1545_v40 }
 0x7cd   :  { %v1556_v26 = vpack.c.bf16 %v5019_v44, %v5019_v44 }
 0x7cf   :  { %3441 = vmatmul.mubr.msk.bf16.vlgmr.msra.gmra.mrb[36].mxu0 %vm392_vm2, %v1556_v26 }
 0x7d0   :  { %3692 = vmatprep.mubr.msk.bf16.mxu0 %vm459_vm3, %v4260_v52 }
 0x8a2   :  { %v1634_v55 = vpop.f32.mrb[36].mxu0 }
 0x8a3   :  { %v1636_v57 = vpop.f32.mrb[37].mxu0  ;;  %v1641_v15 = vpack.c.bf16 %v1634_v55, %v1634_v55 }
 0x8a4   :  { %v1642_v58 = vpack.c.bf16 %v1636_v57, %v1636_v57  ;;  %v1638_v29 = vpop.f32.mrb[38].mxu0 }
 0x8a5   :  { %v1639_v16 = vpop.f32.mrb[39].mxu0  ;;  %v1712_v43 = vsel %vm472_vm4, %v1641_v15, 0 }
 0x8a6   :  { %v1644_v18 = vsel %vm472_vm4, %v1642_v58, 0  ;;  %3866 = vmatprep.subr.msk.bf16.mxu0 %vm472_vm4, %v1642_v58 }
 0x8a7   :  { %3691 = vmatpush3.bf16.msra.mxu0 %v1644_v18 }
 0x8a8   :  { %3867 = vmatprep.subr.msk.bf16.mxu0 %vm472_vm4, %v1641_v15 }
 0x8aa   :  { %3693 = vmatmul.mubr.msk.bf16.vlgmr.msra.gmra.mrb[12].mxu0 %vm459_vm3, %v4261_v11 }
 0x8ab   :  { %3701 = vmatpush3.bf16.msra.mxu0 %v1712_v43  ;;  %3696 = vmatprep.mubr.msk.bf16.mxu0 %vm459_vm3, %v4262_v13 }
 0x8b2   :  { %3697 = vmatmul.mubr.msk.bf16.gmra.mrb[16].mxu0 %vm459_vm3, %v4263_v22 }
 0x8b3   :  { %3702 = vmatprep.mubr.msk.bf16.mxu0 %vm459_vm3, %v4264_v53 }
 0x8ba   :  { %3703 = vmatmul.mubr.msk.bf16.vlgmr.msra.gmra.mrb[12].mxu0 %vm459_vm3, %v4265_v39 }
 0x8bb   :  { %3706 = vmatprep.mubr.msk.bf16.mxu0 %vm459_vm3, %v4266_v45 }
 0x8c2   :  { %3707 = vmatmul.mubr.msk.bf16.gmra.mrb[16].mxu0 %vm459_vm3, %v4267_v50 }
 0x98d   :  { %v3704_v24 = vpop.f32.mrb[12].mxu0 }
 0x98e   :  { %v5063_v48 = vadd.f32 %v3704_v24, %v3451_v36  ;;  %v1748_v37 = vpop.f32.mrb[13].mxu0 }
 0x98f   :  { %v5065_v27 = vadd.f32 %v3451_v36, %v1748_v37  ;;  %v3705_v32 = vpop.f32.mrb[14].mxu0 }
 0x990   :  { %v1877_v33 = vand.u32 2147483647, %v5063_v48  ;;  %v5068_v56 = vadd.f32 %v3705_v32, %v3451_v36  ;;  %v1751_v10 = vpop.f32.mrb[15].mxu0  ;;  %v1853_v43 = vmax.f32 %v5063_v48, 0.0  ;;  %vm1861_vm13 = vcmp.ne.f32.partialorder %v5063_v48, %v5063_v48 }
 0x991   :  { %v1875_v35 = vand.u32 2147483647, %v5065_v27  ;;  %v5071_v1 = vadd.f32 %v3451_v36, %v1751_v10  ;;  %v1851_v15 = vmax.f32 %v5065_v27, 0.0  ;;  %vm1859_vm8 = vcmp.ne.f32.partialorder %v5065_v27, %v5065_v27 }
 0x992   :  { %v1885_v61 = vsub.f32 0.0, %v1877_v33  ;;  %v1878_v20 = vand.u32 2147483647, %v5068_v56  ;;  %v1854_v37 = vmax.f32 %v5068_v56, 0.0  ;;  %vm1862_vm14 = vcmp.ne.f32.partialorder %v5068_v56, %v5068_v56 }
 0x993   :  { %v1883_v14 = vsub.f32 0.0, %v1875_v35  ;;  %v1876_v4 = vand.u32 2147483647, %v5071_v1  ;;  %v1852_v24 = vmax.f32 %v5071_v1, 0.0  ;;  %vm1860_vm10 = vcmp.ne.f32.partialorder %v5071_v1, %v5071_v1 }
 0x994   :  { %v1895_v19 = vmul.f32 1.442695, %v1885_v61  ;;  %v1886_v47 = vsub.f32 0.0, %v1878_v20 }
 0x995   :  { %v1891_v21 = vmul.f32 1.442695, %v1883_v14  ;;  %v1884_v7 = vsub.f32 0.0, %v1876_v4  ;;  %v3708_v51 = vpop.f32.mrb[16].mxu0 }
 0x996   :  { %4088 = vpow2.f32 %v1895_v19  ;;  %v1897_v23 = vmul.f32 1.442695, %v1886_v47  ;;  %v5075_v30 = vadd.f32 %v3708_v51, %v3451_v36  ;;  %v1764_v25 = vpop.f32.mrb[17].mxu0 }
 0x997   :  { %4090 = vpow2.f32 %v1891_v21  ;;  %v1893_v60 = vmul.f32 1.442695, %v1884_v7  ;;  %v5077_v63 = vadd.f32 %v3451_v36, %v1764_v25  ;;  %v3709_v49 = vpop.f32.mrb[18].mxu0 }
 0x998   :  { %4092 = vpow2.f32 %v1897_v23  ;;  %v1881_v0 = vand.u32 2147483647, %v5075_v30  ;;  %v5080_v3 = vadd.f32 %v3709_v49, %v3451_v36  ;;  %v1767_v5 = vpop.f32.mrb[19].mxu0 }
 0x999   :  { %4094 = vpow2.f32 %v1893_v60  ;;  %v1879_v31 = vand.u32 2147483647, %v5077_v63  ;;  %v5083_v38 = vadd.f32 %v3451_v36, %v1767_v5  ;;  %v1855_v35 = vmax.f32 %v5077_v63, 0.0 }
 0x99a   :  { %v1889_v8 = vsub.f32 0.0, %v1881_v0  ;;  %v1882_v59 = vand.u32 2147483647, %v5080_v3 }
 0x99b   :  { %v1887_v41 = vsub.f32 0.0, %v1879_v31  ;;  %v1880_v6 = vand.u32 2147483647, %v5083_v38 }
 0x99c   :  { %v1903_v54 = vmul.f32 1.442695, %v1889_v8  ;;  %v1890_v12 = vsub.f32 0.0, %v1882_v59 }
 0x99d   :  { %v1899_v62 = vmul.f32 1.442695, %v1887_v41  ;;  %v1888_v34 = vsub.f32 0.0, %v1880_v6 }
 0x99e   :  { %4096 = vpow2.f32 %v1903_v54  ;;  %v1905_v28 = vmul.f32 1.442695, %v1890_v12 }
 0x99f   :  { %4098 = vpow2.f32 %v1899_v62  ;;  %v1901_v46 = vmul.f32 1.442695, %v1888_v34 }
 0x9a0   :  { %v4089_v9 = vpop.eup %4088  ;;  %4100 = vpow2.f32 %v1905_v28 }
 0x9a1   :  { %v4091_v42 = vpop.eup %4090  ;;  %4102 = vpow2.f32 %v1901_v46  ;;  %v1925_v17 = vadd.f32 1.0, %v4089_v9  ;;  %v1928_v58 = vmul.f32 -0.5, %v4089_v9  ;;  %v1931_v39 = vand.u32 2147483647, %v4089_v9 }
 0x9a2   :  { %v5087_v40 = vpop.eup %4092  ;;  %v1907_v26 = vadd.f32 1.0, %v4091_v42  ;;  %v1910_v29 = vmul.f32 -0.5, %v4091_v42  ;;  %v1913_v22 = vand.u32 2147483647, %v4091_v42 }
 0x9a3   :  { %v4095_v52 = vpop.eup %4094  ;;  %4104 = vlog2.f32 %v1925_v17  ;;  %v1934_v55 = vadd.f32 1.0, %v5087_v40  ;;  %v1937_v11 = vmul.f32 -0.5, %v5087_v40  ;;  %v1929_v53 = vadd.f32 1.0, %v1928_v58 }
 0x9a4   :  { %4106 = vlog2.f32 %v1907_v26  ;;  %v1916_v57 = vadd.f32 1.0, %v4095_v52  ;;  %v1919_v18 = vmul.f32 -0.5, %v4095_v52  ;;  %v1911_v36 = vadd.f32 1.0, %v1910_v29 }
 0x9a5   :  { %4108 = vlog2.f32 %v1934_v55  ;;  %v1922_v10 = vand.u32 2147483647, %v4095_v52  ;;  %v1938_v14 = vadd.f32 1.0, %v1937_v11  ;;  %vm5110_vm9 = vcmp.lt.f32.partialorder %v1913_v22, 0.0004427343 }
 0x9a6   :  { %4110 = vlog2.f32 %v1916_v57  ;;  %v1920_v20 = vadd.f32 1.0, %v1919_v18  ;;  %v1930_v21 = vmul.f32 %v4089_v9, %v1929_v53  ;;  %vm5116_vm11 = vcmp.lt.f32.partialorder %v1931_v39, 0.0004427343 }
 0x9a7   :  { %v1912_v23 = vmul.f32 %v4091_v42, %v1911_v36  ;;  %v1940_v60 = vand.u32 2147483647, %v5087_v40  ;;  %vm5121_vm12 = vcmp.lt.f32.partialorder %v1922_v10, 0.0004427343  ;;  %v1939_v54 = vmul.f32 %v5087_v40, %v1938_v14 }
 0x9a8   :  { %v5090_v16 = vpop.eup %4096  ;;  %v1921_v41 = vmul.f32 %v4095_v52, %v1920_v20  ;;  %v1856_v22 = vmax.f32 %v5083_v38, 0.0  ;;  %v1857_v39 = vmax.f32 %v5075_v30, 0.0 }
 0x9a9   :  { %v5095_v13 = vpop.eup %4098  ;;  %v1961_v45 = vadd.f32 1.0, %v5090_v16  ;;  %v1964_v8 = vmul.f32 -0.5, %v5090_v16  ;;  %vm5138_vm15 = vcmp.lt.f32.partialorder %v1940_v60, 0.0004427343  ;;  %v1967_v40 = vand.u32 2147483647, %v5090_v16 }
 0x9aa   :  { %v5098_v50 = vpop.eup %4100  ;;  %v1943_v32 = vadd.f32 1.0, %v5095_v13  ;;  %v1946_v31 = vmul.f32 -0.5, %v5095_v13  ;;  %v1949_v17 = vand.u32 2147483647, %v5095_v13 }
 0x9ab   :  { %v5103_v33 = vpop.eup %4102  ;;  %4112 = vlog2.f32 %v1961_v45  ;;  %v1970_v61 = vadd.f32 1.0, %v5098_v50  ;;  %v1973_v46 = vmul.f32 -0.5, %v5098_v50  ;;  %v1965_v57 = vadd.f32 1.0, %v1964_v8 }
 0x9ac   :  { %4114 = vlog2.f32 %v1943_v32  ;;  %v1952_v4 = vadd.f32 1.0, %v5103_v33  ;;  %v1955_v12 = vmul.f32 -0.5, %v5103_v33  ;;  %v1947_v55 = vadd.f32 1.0, %v1946_v31 }
 0x9ad   :  { %v4105_v19 = vpop.eup %4104  ;;  %4116 = vlog2.f32 %v1970_v61  ;;  %v1958_v53 = vand.u32 2147483647, %v5103_v33  ;;  %v1974_v45 = vadd.f32 1.0, %v1973_v46  ;;  %vm5164_vm5 = vcmp.lt.f32.partialorder %v1967_v40, 0.0004427343 }
 0x9ae   :  { %v4107_v51 = vpop.eup %4106  ;;  %v1927_v25 = vmul.f32 0.6931472, %v4105_v19  ;;  %4118 = vlog2.f32 %v1952_v4  ;;  %v1956_v18 = vadd.f32 1.0, %v1955_v12  ;;  %v1948_v14 = vmul.f32 %v5095_v13, %v1947_v55 }
 0x9af   :  { %v4109_v49 = vpop.eup %4108  ;;  %v1909_v0 = vmul.f32 0.6931472, %v4107_v51  ;;  %v1966_v4 = vmul.f32 %v5090_v16, %v1965_v57  ;;  %vm1950_vm6 = vcmp.lt.f32.partialorder %v1949_v17, 0.0004427343  ;;  %vm1959_vm7 = vcmp.lt.f32.partialorder %v1958_v53, 0.0004427343 }
 0x9b0   :  { %v4111_v59 = vpop.eup %4110  ;;  %v1936_v6 = vmul.f32 0.6931472, %v4109_v49  ;;  %v1933_v28 = vsel %vm5116_vm11, %v1930_v21, %v1927_v25  ;;  %v1957_v21 = vmul.f32 %v5103_v33, %v1956_v18  ;;  %v1858_v31 = vmax.f32 %v5080_v3, 0.0 }
 0x9b1   :  { %v1915_v62 = vsel %vm5110_vm9, %v1912_v23, %v1909_v0  ;;  %v1918_v34 = vmul.f32 0.6931472, %v4111_v59  ;;  %v1975_v23 = vmul.f32 %v5098_v50, %v1974_v45  ;;  %vm1863_vm9 = vcmp.ne.f32.partialorder %v5077_v63, %v5077_v63 }
 0x9b2   :  { %v1979_v9 = vadd.f32 %v1915_v62, %v1851_v15  ;;  %v1942_v52 = vsel %vm5138_vm15, %v1939_v54, %v1936_v6  ;;  %v1981_v15 = vadd.f32 %v1933_v28, %v1853_v43  ;;  %v1976_v43 = vand.u32 2147483647, %v5098_v50 }
 0x9b3   :  { %v1924_v26 = vsel %vm5121_vm12, %v1921_v41, %v1918_v34  ;;  %v1982_v10 = vadd.f32 %v1942_v52, %v1854_v37  ;;  %vm1865_vm11 = vcmp.ne.f32.partialorder %v5075_v30, %v5075_v30  ;;  %vm1866_vm12 = vcmp.ne.f32.partialorder %v5080_v3, %v5080_v3 }
 0x9b4   :  { %v1987_v58 = vsel %vm1859_vm8, %v5065_v27, %v1979_v9  ;;  %v1980_v29 = vadd.f32 %v1924_v26, %v1852_v24  ;;  %v1989_v37 = vsel %vm1861_vm13, %v5063_v48, %v1981_v15  ;;  %vm1977_vm8 = vcmp.lt.f32.partialorder %v1976_v43, 0.0004427343 }
 0x9b5   :  { %v4113_v11 = vpop.eup %4112  ;;  %2003 = vrot.lane.b32.xlu0 %v1987_v58, %s4304_s26  ;;  %v1990_v25 = vsel %vm1862_vm14, %v5068_v56, %v1982_v10  ;;  %v3452_v6 = vmul.f32 -1.442695, %v5065_v27  ;;  %v3453_v54 = vmul.f32 -1.442695, %v5071_v1  ;;  %v3454_v12 = vmul.f32 -1.442695, %v5063_v48 }
 0x9b6   :  { %v4115_v36 = vpop.eup %4114  ;;  %v1988_v32 = vsel %vm1860_vm10, %v5071_v1, %v1980_v29  ;;  %v1963_v24 = vmul.f32 0.6931472, %v4113_v11  ;;  %vm1864_vm10 = vcmp.ne.f32.partialorder %v5083_v38, %v5083_v38  ;;  %v3455_v62 = vmul.f32 -1.442695, %v5068_v56 }
 0x9b7   :  { %v4117_v61 = vpop.eup %4116  ;;  %2005 = vrot.lane.b32.xlu1 %v1988_v32, %s4304_s26  ;;  %v1945_v20 = vmul.f32 0.6931472, %v4115_v36  ;;  %4120 = vpow2.f32 %v3452_v6  ;;  %v3456_v34 = vmul.f32 -1.442695, %v5077_v63  ;;  %v3457_v28 = vmul.f32 -1.442695, %v5083_v38 }
 0x9b8   :  { %v4119_v47 = vpop.eup %4118  ;;  %v1972_v7 = vmul.f32 0.6931472, %v4117_v61  ;;  %v1969_v16 = vsel %vm5164_vm5, %v1966_v4, %v1963_v24  ;;  %4122 = vpow2.f32 %v3453_v54  ;;  %v3458_v46 = vmul.f32 -1.442695, %v5075_v30 }
 0x9b9   :  { %2007 = vrot.lane.b32.xlu0 %v1989_v37, %s4304_s26  ;;  %v1951_v51 = vsel %vm1950_vm6, %v1948_v14, %v1945_v20  ;;  %v1954_v13 = vmul.f32 0.6931472, %v4119_v47  ;;  %v1985_v5 = vadd.f32 %v1969_v16, %v1857_v39  ;;  %4124 = vpow2.f32 %v3454_v12 }
 0x9ba   :  { %v1983_v60 = vadd.f32 %v1951_v51, %v1855_v35  ;;  %v1978_v49 = vsel %vm1977_vm8, %v1975_v23, %v1972_v7  ;;  %4126 = vpow2.f32 %v3455_v62  ;;  %v3459_v9 = vmul.f32 -1.442695, %v5080_v3 }
 0x9bb   :  { %2009 = vrot.lane.b32.xlu1 %v1990_v25, %s4304_s26  ;;  %v1960_v33 = vsel %vm1959_vm7, %v1957_v21, %v1954_v13  ;;  %v1986_v8 = vadd.f32 %v1978_v49, %v1858_v31  ;;  %v1993_v59 = vsel %vm1865_vm11, %v5075_v30, %v1985_v5  ;;  %4128 = vpow2.f32 %v3456_v34  ;;  %v3923_v49 = vld [vmem:[%s5909_s1] sm:$0xff]  }
 0x9bc   :  { %v1991_v0 = vsel %vm1863_vm9, %v5077_v63, %v1983_v60  ;;  %v1984_v50 = vadd.f32 %v1960_v33, %v1856_v22  ;;  %4130 = vpow2.f32 %v3457_v28  ;;  %v4268_v33 = vld [vmem:[%s5888_s8] sm:$0xf] }
 0x9bd   :  { %2011 = vrot.lane.b32.xlu0 %v1991_v0, %s4304_s26  ;;  %v1994_v41 = vsel %vm1866_vm12, %v5080_v3, %v1986_v8  ;;  %4132 = vpow2.f32 %v3458_v46  ;;  %v3462_v0 = vld [vmem:[%s5843_s13 + $0x2] ss:$0 sm:$0xff] }
 0x9be   :  { %v1992_v35 = vsel %vm1864_vm10, %v5083_v38, %v1984_v50  ;;  %4134 = vpow2.f32 %v3459_v9  ;;  %v3464_v5 = vld [vmem:[%s5844_s14 + $0x2] ss:$0 sm:$0xff] }
 0x9bf   :  { %2013 = vrot.lane.b32.xlu1 %v1992_v35, %s4304_s26 }
 0x9c1   :  { %2015 = vrot.lane.b32.xlu0 %v1993_v59, %s4304_s26  ;;  %v4121_v27 = vpop.eup %4120 }
 0x9c2   :  { %v4123_v1 = vpop.eup %4122  ;;  %v1827_v48 = vadd.f32 1.0, %v4121_v27 }
 0x9c3   :  { %2017 = vrot.lane.b32.xlu1 %v1994_v41, %s4304_s26  ;;  %v4125_v42 = vpop.eup %4124  ;;  %v1828_v56 = vadd.f32 1.0, %v4123_v1 }
 0x9c4   :  { %v4127_v17 = vpop.eup %4126  ;;  %4136 = vrcp.f32 %v1827_v48  ;;  %v1829_v40 = vadd.f32 1.0, %v4125_v42 }
 0x9c5   :  { %v4129_v63 = vpop.eup %4128  ;;  %4138 = vrcp.f32 %v1828_v56  ;;  %v1830_v26 = vadd.f32 1.0, %v4127_v17 }
 0x9c6   :  { %v4131_v38 = vpop.eup %4130  ;;  %4140 = vrcp.f32 %v1829_v40  ;;  %v1831_v30 = vadd.f32 1.0, %v4129_v63 }
 0x9c7   :  { %v4133_v52 = vpop.eup %4132  ;;  %4142 = vrcp.f32 %v1830_v26  ;;  %v1832_v3 = vadd.f32 1.0, %v4131_v38  ;;  %v3924_v38 = vld [vmem:[%s5909_s1 + $0x8] sm:$0xff]  }
 0x9c8   :  { %v4135_v55 = vpop.eup %4134  ;;  %4144 = vrcp.f32 %v1831_v30  ;;  %v1833_v57 = vadd.f32 1.0, %v4133_v52  ;;  %v3925_v30 = vld [vmem:[%s5909_s1 + $0x10] sm:$0xff]   ;;  %v3926_v52 = vld [vmem:[%s5909_s1 + $0x18] sm:$0xff]  }
 0x9c9   :  { %4146 = vrcp.f32 %v1832_v3  ;;  %v1834_v29 = vadd.f32 1.0, %v4135_v55  ;;  %v5247_v3 = vld [vmem:[%s5874_s29 + $0x10] sm:$0xff] }
 0x9ca   :  { %4148 = vrcp.f32 %v1833_v57  ;;  %v2407_v55 = vand.u32 2147483647, %v5247_v3  ;;  %v5253_v57 = vld [vmem:[%s5874_s29 + $0x18] sm:$0xff]  ;;  %vm2391_vm5 = vcmp.ne.f32.partialorder %v5247_v3, %v5247_v3 }
 0x9cb   :  { %4150 = vrcp.f32 %v1834_v29  ;;  %vm2392_vm6 = vcmp.ne.f32.partialorder %v5253_v57, %v5253_v57 }
 0x9cc   :  { %v2415_v29 = vsub.f32 0.0, %v2407_v55 }
 0x9ce   :  { %v4137_v15 = vpop.eup %4136 }
 0x9cf   :  { %v4139_v18 = vpop.eup %4138 }
 0x9d0   :  { %v4141_v45 = vpop.eup %4140 }
 0x9d1   :  { %v4143_v32 = vpop.eup %4142 }
 0x9d2   :  { %v4145_v20 = vpop.eup %4144 }
 0x9d3   :  { %v4147_v4 = vpop.eup %4146 }
 0x9d4   :  { %v4149_v7 = vpop.eup %4148 }
 0x9d5   :  { %v4151_v13 = vpop.eup %4150 }
 0xa27   :  { %v2004_v58 = vpop.permute.xlu0 %2003 }
 0xa28   :  { %v2027_v22 = vmul.f32 %v4137_v15, %v2004_v58  ;;  %v2408_v58 = vand.u32 2147483647, %v5253_v57 }
 0xa29   :  { %v2006_v11 = vpop.permute.xlu1 %2005 }
 0xa2a   :  { %v2028_v53 = vmul.f32 %v4139_v18, %v2006_v11  ;;  %v2416_v15 = vsub.f32 0.0, %v2408_v58  ;;  %v2425_v18 = vmul.f32 1.442695, %v2415_v29  ;;  %v3927_v29 = vld [vmem:[%s5846_s16] sm:$0xff]  }
 0xa2b   :  { %v2008_v39 = vpop.permute.xlu0 %2007 }
 0xa2c   :  { %v2035_v36 = vpack.c.bf16 %v2028_v53, %v2027_v22  ;;  %v2029_v24 = vmul.f32 %v4141_v45, %v2008_v39  ;;  %v2427_v11 = vmul.f32 1.442695, %v2416_v15  ;;  %v5259_v22 = vld [vmem:[%s5874_s29] sm:$0xff]  ;;  %v5265_v39 = vld [vmem:[%s5874_s29 + $0x8] sm:$0xff] }
 0xa2d   :  { %v2010_v10 = vpop.permute.xlu1 %2009  ;;  %v2405_v53 = vand.u32 2147483647, %v5259_v22  ;;  %v2406_v45 = vand.u32 2147483647, %v5265_v39  ;;  %v3928_v15 = vld [vmem:[%s5845_s15] sm:$0xff]   ;;  %vm2389_vm8 = vcmp.ne.f32.partialorder %v5259_v22, %v5259_v22  ;;  %vm2390_vm9 = vcmp.ne.f32.partialorder %v5265_v39, %v5265_v39 }
 0xa2e   :  { %v2030_v43 = vmul.f32 %v4143_v32, %v2010_v10  ;;  %3711 = vmatpush3.bf16.msra.mxu1 %v2035_v36 }
 0xa2f   :  { %v2012_v61 = vpop.permute.xlu0 %2011  ;;  %3712 = vmatprep.subr.bf16.mxu1 %v4301_v2  ;;  %v2413_v36 = vsub.f32 0.0, %v2405_v53  ;;  %v2414_v32 = vsub.f32 0.0, %v2406_v45 }
 0xa30   :  { %v2036_v14 = vpack.c.bf16 %v2030_v43, %v2029_v24  ;;  %v2031_v47 = vmul.f32 %v4145_v20, %v2012_v61  ;;  %v5271_v61 = vld [vmem:[%s5874_s29 + $0x20] sm:$0xff] }
 0xa31   :  { %v2014_v19 = vpop.permute.xlu1 %2013  ;;  %v2421_v10 = vmul.f32 1.442695, %v2413_v36  ;;  %v2423_v43 = vmul.f32 1.442695, %v2414_v32  ;;  %v2409_v20 = vand.u32 2147483647, %v5271_v61 }
 0xa32   :  { %v2032_v37 = vmul.f32 %v4147_v4, %v2014_v19  ;;  %3713 = vmatpush3.bf16.msra.mxu1 %v2036_v14  ;;  %v5277_v19 = vld [vmem:[%s5874_s29 + $0x28] sm:$0xff] }
 0xa33   :  { %v2016_v21 = vpop.permute.xlu0 %2015  ;;  %3714 = vmatprep.subr.bf16.mxu1 %v4301_v2 }
 0xa34   :  { %v2037_v51 = vpack.c.bf16 %v2032_v37, %v2031_v47  ;;  %v2033_v23 = vmul.f32 %v4149_v7, %v2016_v21  ;;  %v2410_v47 = vand.u32 2147483647, %v5277_v19  ;;  %v2417_v21 = vsub.f32 0.0, %v2409_v20  ;;  %v5283_v7 = vld [vmem:[%s5874_s29 + $0x30] sm:$0xff] }
 0xa35   :  { %v2018_v16 = vpop.permute.xlu1 %2017 }
 0xa36   :  { %v2034_v25 = vmul.f32 %v4151_v13, %v2018_v16  ;;  %3715 = vmatpush3.bf16.msra.mxu1 %v2037_v51  ;;  %v2411_v51 = vand.u32 2147483647, %v5283_v7  ;;  %v2418_v13 = vsub.f32 0.0, %v2410_v47  ;;  %v2429_v16 = vmul.f32 1.442695, %v2417_v21 }
 0xa37   :  { %3716 = vmatprep.subr.bf16.mxu1 %v4301_v2 }
 0xa38   :  { %v2038_v60 = vpack.c.bf16 %v2034_v25, %v2033_v23  ;;  %v2419_v23 = vsub.f32 0.0, %v2411_v51  ;;  %v5289_v25 = vld [vmem:[%s5874_s29 + $0x38] sm:$0xff] }
 0xa3a   :  { %3717 = vmatpush3.bf16.msra.mxu1 %v2038_v60  ;;  %v2412_v60 = vand.u32 2147483647, %v5289_v25 }
 0xa3d   :  { %3719 = vmatmul.mubr.msk.bf16.vlgmr.msra.gmra.mrb[24].mxu1 %vm392_vm2, %v4268_v33  ;;  %v2431_v33 = vmul.f32 1.442695, %v2418_v13 }
 0xa3e   :  { %3724 = vmatprep.mubr.msk.bf16.mxu1 %vm459_vm3, %v3923_v49  ;;  %v2433_v49 = vmul.f32 1.442695, %v2419_v23 }
 0xb10   :  { %v2073_v50 = vpop.f32.mrb[24].mxu1 }
 0xb11   :  { %v2087_v31 = vmul.f32 %v3462_v0, %v2073_v50  ;;  %v3720_v35 = vpop.f32.mrb[25].mxu1 }
 0xb12   :  { %v2076_v8 = vpop.f32.mrb[26].mxu1  ;;  %v2420_v35 = vsub.f32 0.0, %v2412_v60 }
 0xb13   :  { %v2096_v59 = vadd.f32 %v3464_v5, %v2087_v31  ;;  %v3721_v41 = vpop.f32.mrb[27].mxu1 }
 0xb15   :  { %v2097_v6 = vadd.f32 %v2096_v59, %v5019_v44 }
 0xb17   :  { %v2101_v54 = vand.u32 2147483647, %v2097_v6  ;;  %v2098_v56 = vmax.f32 %v2097_v6, 0.0  ;;  %vm2099_vm14 = vcmp.ne.f32.partialorder %v2097_v6, %v2097_v6 }
 0xb19   :  { %v2102_v12 = vsub.f32 0.0, %v2101_v54 }
 0xb1b   :  { %v2103_v62 = vmul.f32 1.442695, %v2102_v12 }
 0xb1d   :  { %4152 = vpow2.f32 %v2103_v62 }
 0xb27   :  { %v4153_v34 = vpop.eup %4152 }
 0xb28   :  { %v2105_v28 = vadd.f32 1.0, %v4153_v34  ;;  %v2108_v46 = vmul.f32 -0.5, %v4153_v34  ;;  %v2111_v27 = vand.u32 2147483647, %v4153_v34 }
 0xb2a   :  { %4154 = vlog2.f32 %v2105_v28  ;;  %v2109_v9 = vadd.f32 1.0, %v2108_v46  ;;  %vm2112_vm13 = vcmp.lt.f32.partialorder %v2111_v27, 0.0004427343  ;;  %v2435_v28 = vmul.f32 1.442695, %v2420_v35 }
 0xb2b   :  { %4156 = vpow2.f32 %v2425_v18 }
 0xb2c   :  { %v2110_v42 = vmul.f32 %v4153_v34, %v2109_v9  ;;  %4158 = vpow2.f32 %v2427_v11 }
 0xb2d   :  { %4160 = vpow2.f32 %v2421_v10 }
 0xb2e   :  { %4162 = vpow2.f32 %v2423_v43  ;;  %v2382_v43 = vmax.f32 %v5265_v39, 0.0 }
 0xb34   :  { %v4155_v1 = vpop.eup %4154 }
 0xb35   :  { %v2107_v48 = vmul.f32 0.6931472, %v4155_v1  ;;  %v4157_v24 = vpop.eup %4156 }
 0xb36   :  { %v4159_v14 = vpop.eup %4158  ;;  %v2455_v4 = vadd.f32 1.0, %v4157_v24  ;;  %v2458_v50 = vmul.f32 -0.5, %v4157_v24  ;;  %v2461_v62 = vand.u32 2147483647, %v4157_v24 }
 0xb37   :  { %v2113_v17 = vsel %vm2112_vm13, %v2110_v42, %v2107_v48  ;;  %v2464_v37 = vadd.f32 1.0, %v4159_v14  ;;  %v4161_v0 = vpop.eup %4160  ;;  %v2467_v5 = vmul.f32 -0.5, %v4159_v14  ;;  %v2470_v34 = vand.u32 2147483647, %v4159_v14 }
 0xb38   :  { %v2114_v40 = vadd.f32 %v2113_v17, %v2098_v56  ;;  %4164 = vlog2.f32 %v2455_v4  ;;  %v4163_v31 = vpop.eup %4162  ;;  %v2459_v59 = vadd.f32 1.0, %v2458_v50  ;;  %v2383_v42 = vmax.f32 %v5247_v3, 0.0 }
 0xb39   :  { %4166 = vlog2.f32 %v2464_v37  ;;  %v2468_v41 = vadd.f32 1.0, %v2467_v5  ;;  %v2446_v54 = vadd.f32 1.0, %v4163_v31  ;;  %vm2471_vm15 = vcmp.lt.f32.partialorder %v2470_v34, 0.0004427343 }
 0xb3a   :  { %v2115_v63 = vsel %vm2099_vm14, %v2097_v6, %v2114_v40  ;;  %4168 = vpow2.f32 %v2429_v16  ;;  %v2437_v6 = vadd.f32 1.0, %v4161_v0  ;;  %v2460_v9 = vmul.f32 %v4157_v24, %v2459_v59 }
 0xb3b   :  { %v2124_v44 = vpack.c.bf16 %v2115_v63, %v2115_v63  ;;  %4170 = vpow2.f32 %v2431_v33  ;;  %v2469_v1 = vmul.f32 %v4159_v14, %v2468_v41  ;;  %v2384_v56 = vmax.f32 %v5253_v57, 0.0 }
 0xb3c   :  { %4172 = vpow2.f32 %v2433_v49  ;;  %v2443_v45 = vand.u32 2147483647, %v4161_v0  ;;  %v2452_v32 = vand.u32 2147483647, %v4163_v31  ;;  %v2381_v24 = vmax.f32 %v5259_v22, 0.0 }
 0xb3d   :  { %3868 = vmatprep.subr.msk.bf16.mxu1 %vm472_vm4, %v2124_v44  ;;  %v5229_v26 = vsel %vm472_vm4, %v2124_v44, 0  ;;  %4174 = vlog2.f32 %v2437_v6  ;;  %vm2462_vm4 = vcmp.lt.f32.partialorder %v2461_v62, 0.0004427343  ;;  %v3929_v6 = vld [vmem:[%s5845_s15 + $0x8] sm:$0xff]   ;;  %vm2393_vm13 = vcmp.ne.f32.partialorder %v5271_v61, %v5271_v61 }
 0xb3e   :  { %3723 = vmatpush3.bf16.msra.mxu1 %v5229_v26  ;;  %4176 = vlog2.f32 %v2446_v54  ;;  %vm2444_vm7 = vcmp.lt.f32.partialorder %v2443_v45, 0.0004427343  ;;  %vm2453_vm10 = vcmp.lt.f32.partialorder %v2452_v32, 0.0004427343  ;;  %vm2394_vm14 = vcmp.ne.f32.partialorder %v5277_v19, %v5277_v19 }
 0xb3f   :  { %4178 = vpow2.f32 %v2435_v28  ;;  %3732 = vmatprep.subr.bf16.mxu1 %v3927_v29  ;;  %v2388_v45 = vmax.f32 %v5289_v25, 0.0 }
 0xb41   :  { %3725 = vmatmul.mubr.msk.bf16.vlgmr.msra.gmra.mrb[28].mxu1 %vm459_vm3, %v3924_v38 }
 0xb42   :  { %3728 = vmatprep.mubr.msk.bf16.mxu1 %vm459_vm3, %v3925_v30  ;;  %v4165_v8 = vpop.eup %4164  ;;  %v2440_v30 = vmul.f32 -0.5, %v4161_v0  ;;  %3733 = vmatpush3.bf16.msra.mxu1 %v3927_v29 }
 0xb43   :  { %v4167_v12 = vpop.eup %4166  ;;  %v2457_v46 = vmul.f32 0.6931472, %v4165_v8  ;;  %3742 = vmatprep.subr.bf16.mxu1 %v3928_v15 }
 0xb44   :  { %v2466_v27 = vmul.f32 0.6931472, %v4167_v12  ;;  %v4169_v48 = vpop.eup %4168  ;;  %v2441_v53 = vadd.f32 1.0, %v2440_v30 }
 0xb45   :  { %v5294_v17 = vpop.eup %4170  ;;  %v2463_v40 = vsel %vm2462_vm4, %v2460_v9, %v2457_v46  ;;  %v2473_v44 = vadd.f32 1.0, %v4169_v48  ;;  %v2476_v60 = vmul.f32 -0.5, %v4169_v48  ;;  %v3930_v9 = vld [vmem:[%s5845_s15 + $0x10] sm:$0xff]  }
 0xb46   :  { %v2472_v63 = vsel %vm2471_vm15, %v2469_v1, %v2466_v27  ;;  %v5296_v38 = vpop.eup %4172  ;;  %v2511_v55 = vadd.f32 %v2463_v40, %v2383_v42  ;;  %v2482_v18 = vadd.f32 1.0, %v5294_v17  ;;  %v2442_v4 = vmul.f32 %v4161_v0, %v2441_v53 }
 0xb47   :  { %4180 = vlog2.f32 %v2473_v44  ;;  %v2512_v58 = vadd.f32 %v2472_v63, %v2384_v56  ;;  %v4175_v11 = vpop.eup %4174  ;;  %v2491_v14 = vadd.f32 1.0, %v5296_v38  ;;  %v2479_v0 = vand.u32 2147483647, %v4169_v48 }
 0xb48   :  { %v4177_v10 = vpop.eup %4176  ;;  %v2439_v20 = vmul.f32 0.6931472, %v4175_v11  ;;  %v2519_v51 = vsel %vm2391_vm5, %v5247_v3, %v2511_v55  ;;  %4182 = vlog2.f32 %v2482_v18  ;;  %v2477_v50 = vadd.f32 1.0, %v2476_v60 }
 0xb49   :  { %3729 = vmatmul.mubr.msk.bf16.gmra.mrb[32].mxu1 %vm459_vm3, %v3926_v52  ;;  %v2449_v52 = vmul.f32 -0.5, %v4163_v31  ;;  %v2448_v47 = vmul.f32 0.6931472, %v4177_v10  ;;  %v5312_v21 = vpop.eup %4178  ;;  %v2520_v23 = vsel %vm2392_vm6, %v5253_v57, %v2512_v58  ;;  %v2485_v5 = vmul.f32 -0.5, %v5294_v17 }
 0xb4a   :  { %v2445_v13 = vsel %vm2444_vm7, %v2442_v4, %v2439_v20  ;;  %v2528_v35 = vpack.c.bf16 %v2520_v23, %v2519_v51  ;;  %v2478_v41 = vmul.f32 %v4169_v48, %v2477_v50  ;;  %vm5339_vm11 = vcmp.lt.f32.partialorder %v2479_v0, 0.0004427343 }
 0xb4b   :  { %v2450_v36 = vadd.f32 1.0, %v2449_v52  ;;  %v2509_v33 = vadd.f32 %v2445_v13, %v2381_v24  ;;  %4184 = vlog2.f32 %v2491_v14  ;;  %v2494_v62 = vmul.f32 -0.5, %v5296_v38  ;;  %v3931_v52 = vld [vmem:[%s5845_s15 + $0x18] sm:$0xff]  }
 0xb4c   :  { %v2488_v34 = vand.u32 2147483647, %v5294_v17  ;;  %v2503_v28 = vmul.f32 -0.5, %v5312_v21  ;;  %v2386_v27 = vmax.f32 %v5277_v19, 0.0  ;;  %v2497_v40 = vand.u32 2147483647, %v5296_v38 }
 0xb4d   :  { %v2451_v37 = vmul.f32 %v4163_v31, %v2450_v36  ;;  %v2500_v31 = vadd.f32 1.0, %v5312_v21  ;;  %v2517_v3 = vsel %vm2389_vm8, %v5259_v22, %v2509_v33  ;;  %v2486_v22 = vadd.f32 1.0, %v2485_v5 }
 0xb4e   :  { %v2495_v48 = vadd.f32 1.0, %v2494_v62  ;;  %vm2489_vm12 = vcmp.lt.f32.partialorder %v2488_v34, 0.0004427343  ;;  %v2504_v63 = vadd.f32 1.0, %v2503_v28  ;;  %v2506_v30 = vand.u32 2147483647, %v5312_v21 }
 0xb4f   :  { %v2454_v16 = vsel %vm2453_vm10, %v2451_v37, %v2448_v47  ;;  %4186 = vlog2.f32 %v2500_v31  ;;  %v2487_v1 = vmul.f32 %v5294_v17, %v2486_v22  ;;  %v2387_v55 = vmax.f32 %v5283_v7, 0.0 }
 0xb50   :  { %v2510_v49 = vadd.f32 %v2454_v16, %v2382_v43  ;;  %v2496_v58 = vmul.f32 %v5296_v38, %v2495_v48  ;;  %vm2498_vm4 = vcmp.lt.f32.partialorder %v2497_v40, 0.0004427343  ;;  %v2505_v11 = vmul.f32 %v5312_v21, %v2504_v63 }
 0xb51   :  { %v4181_v8 = vpop.eup %4180  ;;  %vm2507_vm15 = vcmp.lt.f32.partialorder %v2506_v30, 0.0004427343  ;;  %vm2395_vm5 = vcmp.ne.f32.partialorder %v5283_v7, %v5283_v7  ;;  %vm2396_vm6 = vcmp.ne.f32.partialorder %v5289_v25, %v5289_v25 }
 0xb52   :  { %v2518_v57 = vsel %vm2390_vm9, %v5265_v39, %v2510_v49  ;;  %v2475_v54 = vmul.f32 0.6931472, %v4181_v8  ;;  %v2385_v39 = vmax.f32 %v5271_v61, 0.0  ;;  %v4183_v42 = vpop.eup %4182 }
 0xb53   :  { %v2527_v59 = vpack.c.bf16 %v2518_v57, %v2517_v3  ;;  %v2484_v44 = vmul.f32 0.6931472, %v4183_v42 }
 0xb54   :  { %v2481_v46 = vsel %vm5339_vm11, %v2478_v41, %v2475_v54 }
 0xb55   :  { %3734 = vmatprep.mubr.msk.bf16.mxu1 %vm100_vm1, %v2527_v59  ;;  %v2513_v56 = vadd.f32 %v2481_v46, %v2385_v39  ;;  %v2490_v17 = vsel %vm2489_vm12, %v2487_v1, %v2484_v44  ;;  %v4185_v29 = vpop.eup %4184 }
 0xb56   :  { %3735 = vmatmul.mubr.msk.bf16.vlgmr.msra.gmra.mrb[36].mxu1 %vm100_vm1, %v2528_v35  ;;  %v2493_v36 = vmul.f32 0.6931472, %v4185_v29 }
 0xb57   :  { %3743 = vmatpush3.bf16.msra.mxu1 %v3928_v15  ;;  %v2514_v15 = vadd.f32 %v2490_v17, %v2386_v27  ;;  %v2521_v18 = vsel %vm2393_vm13, %v5271_v61, %v2513_v56 }
 0xb58   :  { %3744 = vmatprep.subr.bf16.mxu1 %v3929_v6  ;;  %v2499_v38 = vsel %vm2498_vm4, %v2496_v58, %v2493_v36 }
 0xb59   :  { %v4187_v53 = vpop.eup %4186  ;;  %v2522_v32 = vsel %vm2394_vm14, %v5277_v19, %v2514_v15  ;;  %v2515_v43 = vadd.f32 %v2499_v38, %v2387_v55 }
 0xb5a   :  { %v2502_v10 = vmul.f32 0.6931472, %v4187_v53  ;;  %v2529_v24 = vpack.c.bf16 %v2522_v32, %v2521_v18 }
 0xb5b   :  { %3745 = vmatpush3.bf16.msra.mxu1 %v3929_v6  ;;  %v2523_v14 = vsel %vm2395_vm5, %v5283_v7, %v2515_v43 }
 0xb5c   :  { %3746 = vmatprep.subr.bf16.mxu1 %v3930_v9  ;;  %v2508_v61 = vsel %vm2507_vm15, %v2505_v11, %v2502_v10  ;;  %3738 = vmatprep.mubr.msk.bf16.mxu1 %vm100_vm1, %v2529_v24 }
 0xb5d   :  { %v2516_v20 = vadd.f32 %v2508_v61, %v2388_v45 }
 0xb5f   :  { %3747 = vmatpush3.bf16.msra.mxu1 %v3930_v9  ;;  %v2524_v19 = vsel %vm2396_vm6, %v5289_v25, %v2516_v20 }
 0xb60   :  { %3748 = vmatprep.subr.bf16.mxu1 %v3931_v52  ;;  %v2530_v4 = vpack.c.bf16 %v2524_v19, %v2523_v14 }
 0xb62   :  { %3739 = vmatmul.mubr.msk.bf16.gmra.mrb[40].mxu1 %vm100_vm1, %v2530_v4 }
 0xb63   :  { %3749 = vmatpush3.bf16.msra.mxu1 %v3931_v52 }
 0xb64   :  { %3782 = vmatprep.subr.bf16.mxu1 %v4301_v2 }
 0xc14   :  { %v5380_v47 = vpop.f32.mrb[28].mxu1 }
 0xc15   :  { %v2251_v37 = vand.u32 2147483647, %v5380_v47  ;;  %v5383_v21 = vpop.f32.mrb[29].mxu1  ;;  %v2227_v15 = vmax.f32 %v5380_v47, 0.0  ;;  %vm2235_vm8 = vcmp.ne.f32.partialorder %v5380_v47, %v5380_v47 }
 0xc16   :  { %v2249_v51 = vand.u32 2147483647, %v5383_v21  ;;  %v5386_v13 = vpop.f32.mrb[30].mxu1  ;;  %v2225_v11 = vmax.f32 %v5383_v21, 0.0  ;;  %vm2233_vm10 = vcmp.ne.f32.partialorder %v5383_v21, %v5383_v21 }
 0xc17   :  { %v2259_v16 = vsub.f32 0.0, %v2251_v37  ;;  %v2252_v7 = vand.u32 2147483647, %v5386_v13  ;;  %v5389_v23 = vpop.f32.mrb[31].mxu1  ;;  %v2228_v53 = vmax.f32 %v5386_v13, 0.0  ;;  %vm2236_vm9 = vcmp.ne.f32.partialorder %v5386_v13, %v5386_v13 }
 0xc18   :  { %v2257_v60 = vsub.f32 0.0, %v2249_v51  ;;  %v2250_v25 = vand.u32 2147483647, %v5389_v23  ;;  %v2226_v32 = vmax.f32 %v5389_v23, 0.0  ;;  %vm2234_vm11 = vcmp.ne.f32.partialorder %v5389_v23, %v5389_v23 }
 0xc19   :  { %v2269_v33 = vmul.f32 1.442695, %v2259_v16  ;;  %v2260_v49 = vsub.f32 0.0, %v2252_v7 }
 0xc1a   :  { %v2265_v0 = vmul.f32 1.442695, %v2257_v60  ;;  %v2258_v50 = vsub.f32 0.0, %v2250_v25 }
 0xc1b   :  { %4188 = vpow2.f32 %v2269_v33  ;;  %v2271_v5 = vmul.f32 1.442695, %v2260_v49 }
 0xc1c   :  { %4190 = vpow2.f32 %v2265_v0  ;;  %v2267_v31 = vmul.f32 1.442695, %v2258_v50  ;;  %v5392_v3 = vpop.f32.mrb[32].mxu1 }
 0xc1d   :  { %4192 = vpow2.f32 %v2271_v5  ;;  %v2255_v57 = vand.u32 2147483647, %v5392_v3  ;;  %v5395_v35 = vpop.f32.mrb[33].mxu1  ;;  %v2231_v43 = vmax.f32 %v5392_v3, 0.0  ;;  %vm2239_vm6 = vcmp.ne.f32.partialorder %v5392_v3, %v5392_v3 }
 0xc1e   :  { %4194 = vpow2.f32 %v2267_v31  ;;  %v2253_v8 = vand.u32 2147483647, %v5395_v35  ;;  %v5398_v59 = vpop.f32.mrb[34].mxu1  ;;  %v2229_v20 = vmax.f32 %v5395_v35, 0.0 }
 0xc1f   :  { %v2263_v41 = vsub.f32 0.0, %v2255_v57  ;;  %v2256_v6 = vand.u32 2147483647, %v5398_v59  ;;  %v5401_v54 = vpop.f32.mrb[35].mxu1 }
 0xc20   :  { %v2261_v12 = vsub.f32 0.0, %v2253_v8  ;;  %v2254_v22 = vand.u32 2147483647, %v5401_v54 }
 0xc21   :  { %v2277_v62 = vmul.f32 1.442695, %v2263_v41  ;;  %v2264_v39 = vsub.f32 0.0, %v2256_v6 }
 0xc22   :  { %v2273_v34 = vmul.f32 1.442695, %v2261_v12  ;;  %v2262_v28 = vsub.f32 0.0, %v2254_v22 }
 0xc23   :  { %4196 = vpow2.f32 %v2277_v62  ;;  %v2279_v46 = vmul.f32 1.442695, %v2264_v39 }
 0xc24   :  { %4198 = vpow2.f32 %v2273_v34  ;;  %v2275_v9 = vmul.f32 1.442695, %v2262_v28 }
 0xc25   :  { %v4189_v27 = vpop.eup %4188  ;;  %4200 = vpow2.f32 %v2279_v46 }
 0xc26   :  { %v4191_v1 = vpop.eup %4190  ;;  %v2299_v48 = vadd.f32 1.0, %v4189_v27  ;;  %4202 = vpow2.f32 %v2275_v9  ;;  %v2302_v44 = vmul.f32 -0.5, %v4189_v27  ;;  %v2305_v55 = vand.u32 2147483647, %v4189_v27 }
 0xc27   :  { %v5404_v42 = vpop.eup %4192  ;;  %v2281_v56 = vadd.f32 1.0, %v4191_v1  ;;  %v2284_v30 = vmul.f32 -0.5, %v4191_v1  ;;  %v2287_v58 = vand.u32 2147483647, %v4191_v1 }
 0xc28   :  { %v5406_v40 = vpop.eup %4194  ;;  %4204 = vlog2.f32 %v2299_v48  ;;  %v2308_v63 = vadd.f32 1.0, %v5404_v42  ;;  %v2311_v17 = vmul.f32 -0.5, %v5404_v42  ;;  %v2303_v18 = vadd.f32 1.0, %v2302_v44 }
 0xc29   :  { %4206 = vlog2.f32 %v2281_v56  ;;  %v2290_v52 = vadd.f32 1.0, %v5406_v40  ;;  %v2285_v36 = vadd.f32 1.0, %v2284_v30  ;;  %v2293_v10 = vmul.f32 -0.5, %v5406_v40 }
 0xc2a   :  { %4208 = vlog2.f32 %v2308_v63  ;;  %v2312_v61 = vadd.f32 1.0, %v2311_v17  ;;  %vm5425_vm1 = vcmp.lt.f32.partialorder %v2305_v55, 0.0004427343  ;;  %vm5429_vm7 = vcmp.lt.f32.partialorder %v2287_v58, 0.0004427343 }
 0xc2b   :  { %4210 = vlog2.f32 %v2290_v52  ;;  %v2304_v16 = vmul.f32 %v4189_v27, %v2303_v18  ;;  %v2314_v7 = vand.u32 2147483647, %v5404_v42  ;;  %v2286_v33 = vmul.f32 %v4191_v1, %v2285_v36 }
 0xc2c   :  { %v2294_v49 = vadd.f32 1.0, %v2293_v10  ;;  %v2313_v31 = vmul.f32 %v5404_v42, %v2312_v61  ;;  %v2296_v57 = vand.u32 2147483647, %v5406_v40 }
 0xc2d   :  { %v4197_v29 = vpop.eup %4196  ;;  %vm2315_vm12 = vcmp.lt.f32.partialorder %v2314_v7, 0.0004427343 }
 0xc2e   :  { %v5414_v45 = vpop.eup %4198  ;;  %v2335_v24 = vadd.f32 1.0, %v4197_v29  ;;  %v2338_v60 = vmul.f32 -0.5, %v4197_v29  ;;  %v2341_v12 = vand.u32 2147483647, %v4197_v29  ;;  %v2295_v1 = vmul.f32 %v5406_v40, %v2294_v49 }
 0xc2f   :  { %v5418_v38 = vpop.eup %4200  ;;  %v2317_v14 = vadd.f32 1.0, %v5414_v45  ;;  %v2320_v8 = vmul.f32 -0.5, %v5414_v45  ;;  %v2323_v22 = vand.u32 2147483647, %v5414_v45  ;;  %vm2297_vm13 = vcmp.lt.f32.partialorder %v2296_v57, 0.0004427343 }
 0xc30   :  { %v5423_v19 = vpop.eup %4202  ;;  %4212 = vlog2.f32 %v2335_v24  ;;  %v2344_v51 = vadd.f32 1.0, %v5418_v38  ;;  %v2339_v34 = vadd.f32 1.0, %v2338_v60  ;;  %v2347_v28 = vmul.f32 -0.5, %v5418_v38 }
 0xc31   :  { %4214 = vlog2.f32 %v2317_v14  ;;  %v2326_v0 = vadd.f32 1.0, %v5423_v19  ;;  %v2321_v56 = vadd.f32 1.0, %v2320_v8  ;;  %v2329_v63 = vmul.f32 -0.5, %v5423_v19 }
 0xc32   :  { %v4205_v25 = vpop.eup %4204  ;;  %4216 = vlog2.f32 %v2344_v51  ;;  %vm5455_vm14 = vcmp.lt.f32.partialorder %v2341_v12, 0.0004427343  ;;  %v2340_v55 = vmul.f32 %v4197_v29, %v2339_v34  ;;  %vm5459_vm4 = vcmp.lt.f32.partialorder %v2323_v22, 0.0004427343  ;;  %v3936_v12 = vld [vmem:[%s5848_s18 + $0x20] sm:$0xff]   ;;  %v3937_v22 = vld [vmem:[%s5848_s18 + $0x28] sm:$0xff]  }
 0xc33   :  { %v4207_v50 = vpop.eup %4206  ;;  %v2301_v5 = vmul.f32 0.6931472, %v4205_v25  ;;  %4218 = vlog2.f32 %v2326_v0  ;;  %v2350_v36 = vand.u32 2147483647, %v5418_v38  ;;  %v2322_v61 = vmul.f32 %v5414_v45, %v2321_v56  ;;  %v3486_v34 = vld [vmem:[%s5847_s17] ss:$0 sm:$0xff] }
 0xc34   :  { %v4209_v41 = vpop.eup %4208  ;;  %v2283_v6 = vmul.f32 0.6931472, %v4207_v50  ;;  %v2330_v14 = vadd.f32 1.0, %v2329_v63  ;;  %v2332_v37 = vand.u32 2147483647, %v5423_v19  ;;  %s5933_s17 = sld [smem:[#allocation8_spill]] }
 0xc35   :  { %v2307_v62 = vsel %vm5425_vm1, %v2304_v16, %v2301_v5  ;;  %v2310_v39 = vmul.f32 0.6931472, %v4209_v41  ;;  %v4211_v46 = vpop.eup %4210  ;;  %vm2351_vm15 = vcmp.lt.f32.partialorder %v2350_v36, 0.0004427343  ;;  %v2230_v5 = vmax.f32 %v5401_v54, 0.0 }
 0xc36   :  { %v2355_v9 = vadd.f32 %v2307_v62, %v2227_v15  ;;  %v2289_v27 = vsel %vm5429_vm7, %v2286_v33, %v2283_v6  ;;  %v2292_v42 = vmul.f32 0.6931472, %v4211_v46  ;;  %v2348_v15 = vadd.f32 1.0, %v2347_v28  ;;  %v3938_v62 = vld [vmem:[%s5848_s18 + $0x30] sm:$0xff]  }
 0xc37   :  { %v2316_v48 = vsel %vm2315_vm12, %v2313_v31, %v2310_v39  ;;  %v2353_v44 = vadd.f32 %v2289_v27, %v2225_v11  ;;  %v2232_v33 = vmax.f32 %v5398_v59, 0.0  ;;  %v2331_v0 = vmul.f32 %v5423_v19, %v2330_v14  ;;  %v3939_v39 = vld [vmem:[%s5848_s18 + $0x38] sm:$0xff]  }
 0xc38   :  { %v2356_v30 = vadd.f32 %v2316_v48, %v2228_v53  ;;  %v2298_v17 = vsel %vm2297_vm13, %v2295_v1, %v2292_v42  ;;  %v2363_v18 = vsel %vm2235_vm8, %v5380_v47, %v2355_v9  ;;  %v2349_v7 = vmul.f32 %v5418_v38, %v2348_v15 }
 0xc39   :  { %v2354_v53 = vadd.f32 %v2298_v17, %v2226_v32  ;;  %v2361_v47 = vsel %vm2233_vm10, %v5383_v21, %v2353_v44  ;;  %vm2333_vm5 = vcmp.lt.f32.partialorder %v2332_v37, 0.0004427343  ;;  %vm2240_vm1 = vcmp.ne.f32.partialorder %v5398_v59, %v5398_v59 }
 0xc3a   :  { %v4213_v40 = vpop.eup %4212  ;;  %v2364_v11 = vsel %vm2236_vm9, %v5386_v13, %v2356_v30  ;;  %vm2237_vm7 = vcmp.ne.f32.partialorder %v5395_v35, %v5395_v35  ;;  %vm2238_vm8 = vcmp.ne.f32.partialorder %v5401_v54, %v5401_v54 }
 0xc3b   :  { %v4215_v29 = vpop.eup %4214  ;;  %v2378_v10 = vpack.c.bf16 %v2364_v11, %v2363_v18  ;;  %v2337_v24 = vmul.f32 0.6931472, %v4213_v40  ;;  %v2362_v13 = vsel %vm2234_vm11, %v5389_v23, %v2354_v53 }
 0xc3c   :  { %v4217_v4 = vpop.eup %4216  ;;  %v2319_v32 = vmul.f32 0.6931472, %v4215_v29  ;;  %v2377_v51 = vpack.c.bf16 %v2362_v13, %v2361_v47 }
 0xc3d   :  { %v2343_v16 = vsel %vm5455_vm14, %v2340_v55, %v2337_v24  ;;  %v2346_v45 = vmul.f32 0.6931472, %v4217_v4  ;;  %v4219_v60 = vpop.eup %4218 }
 0xc3e   :  { %v2359_v25 = vadd.f32 %v2343_v16, %v2231_v43  ;;  %v2325_v21 = vsel %vm5459_vm4, %v2322_v61, %v2319_v32  ;;  %v2328_v49 = vmul.f32 0.6931472, %v4219_v60  ;;  %3750 = vmatprep.mubr.msk.bf16.mxu1 %vm392_vm2, %v2377_v51 }
 0xc3f   :  { %v2352_v23 = vsel %vm2351_vm15, %v2349_v7, %v2346_v45  ;;  %v2357_v50 = vadd.f32 %v2325_v21, %v2229_v20  ;;  %3751 = vmatmul.mubr.msk.bf16.vlgmr.msra.gmra.mrb[36].mxu1 %vm392_vm2, %v2378_v10 }
 0xc40   :  { %v2360_v38 = vadd.f32 %v2352_v23, %v2232_v33  ;;  %v2334_v43 = vsel %vm2333_vm5, %v2331_v0, %v2328_v49  ;;  %3783 = vmatpush3.bf16.msra.mxu1 %v5229_v26  ;;  %v2367_v19 = vsel %vm2239_vm6, %v5392_v3, %v2359_v25  ;;  %v3039_v26 = vld [vmem:[%s5920_s12] sm:$0x1]  ;;  %s3324_s12 = sshll.u32 %s4305_s7, 4  ;;  %s3325_s12 = int_to_ptr.vmem [resolvable:$true] %s3324_s12 }
 0xc41   :  { %v2358_v20 = vadd.f32 %v2334_v43, %v2230_v5  ;;  %3800 = vmatprep.subr.bf16.mxu1 %v4301_v2  ;;  %v2365_v8 = vsel %vm2237_vm7, %v5395_v35, %v2357_v50  ;;  %v3932_v3 = vld [vmem:[%s5848_s18] sm:$0xff]   ;;  %v3933_v35 = vld [vmem:[%s5848_s18 + $0x8] sm:$0xff]   ;;  %s4277_s28 = scalar_lea.vmem %s3325_s12, 32  ;;  %p4282_p1 = scmp.lt.s32.totalorder %s3325_s12, %s3325_s12 }
 0xc42   :  { %v2368_v31 = vsel %vm2240_vm1, %v5398_v59, %v2360_v38  ;;  %3758 = vmatprep.subr.bf16.mxu0 %v3932_v3  ;;  %v3934_v59 = vld [vmem:[%s5848_s18 + $0x10] sm:$0xff]   ;;  %p4278_p0 = scmp.ne.s32.totalorder %s3325_s12, %s4277_s28  ;;  %p4283_p2 = scmp.lt.s32.totalorder %s4277_s28, %s4277_s28 }
 0xc43   :  { %v2380_v57 = vpack.c.bf16 %v2368_v31, %v2367_v19  ;;  %v2366_v41 = vsel %vm2238_vm8, %v5401_v54, %v2358_v20  ;;  %3759 = vmatpush3.bf16.msra.mxu0 %v3932_v3  ;;  %v3935_v54 = vld [vmem:[%s5848_s18 + $0x18] sm:$0xff]  }
 0xc44   :  { %v2379_v6 = vpack.c.bf16 %v2366_v41, %v2365_v8  ;;  %3760 = vmatprep.subr.bf16.mxu0 %v3933_v35  ;;  %p4284_p3 = por %p4283_p2, %p4282_p1 }
 0xc46   :  { %3754 = vmatprep.mubr.msk.bf16.mxu1 %vm392_vm2, %v2379_v6  ;;  %p4285_p4 = pnand %p4284_p3, %p4278_p0 }
 0xc47   :  { %3755 = vmatmul.mubr.msk.bf16.gmra.mrb[40].mxu1 %vm392_vm2, %v2380_v57  ;;  %3761 = vmatpush3.bf16.msra.mxu0 %v3933_v35 }
 0xc48   :  { %3784 = vmatprep.mubr.msk.bf16.mxu1 %vm4302_vm0, %v4301_v2  ;;  %3762 = vmatprep.subr.bf16.mxu0 %v3934_v59 }
 0xc4b   :  { %3763 = vmatpush3.bf16.msra.mxu0 %v3934_v59 }
 0xc4c   :  { %3764 = vmatprep.subr.bf16.mxu0 %v3935_v54 }
 0xc4f   :  { %3785 = vmatmul.mubr.msk.bf16.vlgmr.msra.gmra.mrb[44].mxu1 %vm459_vm3, %v3039_v26  ;;  %3765 = vmatpush3.bf16.msra.mxu0 %v3935_v54 }
 0xc50   :  { %3816 = vmatprep.mubr.msk.bf16.mxu1 %vm4302_vm0, %v4301_v2  ;;  %3766 = vmatprep.subr.bf16.mxu0 %v3936_v12 }
 0xc53   :  { %3767 = vmatpush3.bf16.msra.mxu0 %v3936_v12 }
 0xc54   :  { %3768 = vmatprep.subr.bf16.mxu0 %v3937_v22 }
 0xc57   :  { %3769 = vmatpush3.bf16.msra.mxu0 %v3937_v22 }
 0xc58   :  { %3770 = vmatprep.subr.bf16.mxu0 %v3938_v62 }
 0xc5b   :  { %3771 = vmatpush3.bf16.msra.mxu0 %v3938_v62 }
 0xc5c   :  { %3772 = vmatprep.subr.bf16.mxu0 %v3939_v39 }
 0xc5f   :  { %3773 = vmatpush3.bf16.msra.mxu0 %v3939_v39 }
 0xc60   :  { %3788 = vmatprep.subr.bf16.mxu0 %v4301_v2 }
 0xd12   :  { %v3752_v28 = vpop.f32.mrb[36].mxu1 }
 0xd13   :  { %v5548_v46 = vadd.f32 %v3752_v28, %v3486_v34  ;;  %v2684_v9 = vpop.f32.mrb[37].mxu1 }
 0xd14   :  { %v5550_v27 = vadd.f32 %v3486_v34, %v2684_v9  ;;  %v3753_v1 = vpop.f32.mrb[38].mxu1 }
 0xd15   :  { %v2756_v48 = vand.u32 2147483647, %v5548_v46  ;;  %v5553_v42 = vadd.f32 %v3753_v1, %v3486_v34  ;;  %v2687_v56 = vpop.f32.mrb[39].mxu1  ;;  %v2732_v3 = vmax.f32 %v5548_v46, 0.0  ;;  %vm2740_vm9 = vcmp.ne.f32.partialorder %v5548_v46, %v5548_v46 }
 0xd16   :  { %v2754_v63 = vand.u32 2147483647, %v5550_v27  ;;  %v5556_v44 = vadd.f32 %v3486_v34, %v2687_v56  ;;  %v2730_v62 = vmax.f32 %v5550_v27, 0.0  ;;  %vm2738_vm13 = vcmp.ne.f32.partialorder %v5550_v27, %v5550_v27 }
 0xd17   :  { %v2764_v30 = vsub.f32 0.0, %v2756_v48  ;;  %v2757_v52 = vand.u32 2147483647, %v5553_v42  ;;  %v2733_v39 = vmax.f32 %v5553_v42, 0.0  ;;  %vm2741_vm10 = vcmp.ne.f32.partialorder %v5553_v42, %v5553_v42 }
 0xd18   :  { %v2762_v17 = vsub.f32 0.0, %v2754_v63  ;;  %v2755_v55 = vand.u32 2147483647, %v5556_v44  ;;  %vm2739_vm14 = vcmp.ne.f32.partialorder %v5556_v44, %v5556_v44 }
 0xd19   :  { %v2774_v58 = vmul.f32 1.442695, %v2764_v30  ;;  %v2765_v15 = vsub.f32 0.0, %v2757_v52 }
 0xd1a   :  { %v2770_v40 = vmul.f32 1.442695, %v2762_v17  ;;  %v2763_v18 = vsub.f32 0.0, %v2755_v55  ;;  %v3756_v11 = vpop.f32.mrb[40].mxu1 }
 0xd1b   :  { %4220 = vpow2.f32 %v2774_v58  ;;  %v2776_v53 = vmul.f32 1.442695, %v2765_v15  ;;  %v5560_v36 = vadd.f32 %v3756_v11, %v3486_v34  ;;  %v2700_v29 = vpop.f32.mrb[41].mxu1 }
 0xd1c   :  { %4222 = vpow2.f32 %v2770_v40  ;;  %v2772_v10 = vmul.f32 1.442695, %v2763_v18  ;;  %v5562_v24 = vadd.f32 %v3486_v34, %v2700_v29  ;;  %v3757_v61 = vpop.f32.mrb[42].mxu1 }
 0xd1d   :  { %4224 = vpow2.f32 %v2776_v53  ;;  %v2760_v14 = vand.u32 2147483647, %v5560_v36  ;;  %v5565_v4 = vadd.f32 %v3757_v61, %v3486_v34  ;;  %v2703_v47 = vpop.f32.mrb[43].mxu1  ;;  %v2736_v9 = vmax.f32 %v5560_v36, 0.0 }
 0xd1e   :  { %4226 = vpow2.f32 %v2772_v10  ;;  %v2758_v13 = vand.u32 2147483647, %v5562_v24  ;;  %v5568_v32 = vadd.f32 %v3486_v34, %v2703_v47  ;;  %v2731_v34 = vmax.f32 %v5556_v44, 0.0 }
 0xd1f   :  { %v2768_v37 = vsub.f32 0.0, %v2760_v14  ;;  %v2761_v51 = vand.u32 2147483647, %v5565_v4  ;;  %v2734_v1 = vmax.f32 %v5562_v24, 0.0  ;;  %v2737_v52 = vmax.f32 %v5565_v4, 0.0 }
 0xd20   :  { %v2766_v16 = vsub.f32 0.0, %v2758_v13  ;;  %v2759_v45 = vand.u32 2147483647, %v5568_v32  ;;  %v2735_v15 = vmax.f32 %v5568_v32, 0.0  ;;  %vm2742_vm7 = vcmp.ne.f32.partialorder %v5562_v24, %v5562_v24 }
 0xd21   :  { %v2782_v7 = vmul.f32 1.442695, %v2768_v37  ;;  %v2769_v60 = vsub.f32 0.0, %v2761_v51  ;;  %vm2743_vm8 = vcmp.ne.f32.partialorder %v5568_v32, %v5568_v32 }
 0xd22   :  { %v2778_v25 = vmul.f32 1.442695, %v2766_v16  ;;  %v2767_v21 = vsub.f32 0.0, %v2759_v45  ;;  %v5572_v33 = vpop.f32.mrb[44].mxu1 }
 0xd23   :  { %4228 = vpow2.f32 %v2782_v7  ;;  %v2784_v23 = vmul.f32 1.442695, %v2769_v60  ;;  %v3786_v49 = vpop.f32.mrb[45].mxu1  ;;  %v3086_v50 = vand.u32 2147483647, %v5572_v33 }
 0xd24   :  { %4230 = vpow2.f32 %v2778_v25  ;;  %v2780_v0 = vmul.f32 1.442695, %v2767_v21  ;;  %v3080_v38 = vpop.f32.mrb[46].mxu1 }
 0xd25   :  { %v4221_v5 = vpop.eup %4220  ;;  %4232 = vpow2.f32 %v2784_v23  ;;  %v3787_v43 = vpop.f32.mrb[47].mxu1  ;;  %v3087_v57 = vsub.f32 0.0, %v3086_v50 }
 0xd26   :  { %v4223_v19 = vpop.eup %4222  ;;  %v2804_v31 = vadd.f32 1.0, %v4221_v5  ;;  %4234 = vpow2.f32 %v2780_v0  ;;  %v2807_v35 = vmul.f32 -0.5, %v4221_v5  ;;  %v2810_v22 = vand.u32 2147483647, %v4221_v5 }
 0xd27   :  { %v4225_v20 = vpop.eup %4224  ;;  %v2786_v8 = vadd.f32 1.0, %v4223_v19  ;;  %v3088_v26 = vmul.f32 1.442695, %v3087_v57  ;;  %v2789_v54 = vmul.f32 -0.5, %v4223_v19  ;;  %v2792_v48 = vand.u32 2147483647, %v4223_v19 }
 0xd28   :  { %v5575_v41 = vpop.eup %4226  ;;  %4236 = vlog2.f32 %v2804_v31  ;;  %v2813_v6 = vadd.f32 1.0, %v4225_v20  ;;  %v2816_v59 = vmul.f32 -0.5, %v4225_v20  ;;  %v2808_v63 = vadd.f32 1.0, %v2807_v35 }
 0xd29   :  { %4238 = vlog2.f32 %v2786_v8  ;;  %v2795_v12 = vadd.f32 1.0, %v5575_v41  ;;  %v2819_v30 = vand.u32 2147483647, %v4225_v20  ;;  %v2790_v40 = vadd.f32 1.0, %v2789_v54 }
 0xd2a   :  { %4240 = vlog2.f32 %v2813_v6  ;;  %v2817_v58 = vadd.f32 1.0, %v2816_v59  ;;  %vm5596_vm3 = vcmp.lt.f32.partialorder %v2810_v22, 0.0004427343  ;;  %v2798_v29 = vmul.f32 -0.5, %v5575_v41 }
 0xd2b   :  { %4242 = vpow2.f32 %v3088_v26  ;;  %vm5606_vm11 = vcmp.lt.f32.partialorder %v2792_v48, 0.0004427343  ;;  %v2809_v37 = vmul.f32 %v4221_v5, %v2808_v63  ;;  %vm5612_vm12 = vcmp.lt.f32.partialorder %v2819_v30, 0.0004427343 }
 0xd2c   :  { %4244 = vlog2.f32 %v2795_v12  ;;  %v2801_v16 = vand.u32 2147483647, %v5575_v41  ;;  %v2818_v25 = vmul.f32 %v4225_v20, %v2817_v58  ;;  %v2791_v21 = vmul.f32 %v4223_v19, %v2790_v40  ;;  %v3016_v58 = vld [vmem:[%s5933_s17 + $0x10] sm:$0xff] }
 0xd2d   :  { %v5582_v28 = vpop.eup %4228  ;;  %v2799_v0 = vadd.f32 1.0, %v2798_v29 }
 0xd2e   :  { %v5586_v56 = vpop.eup %4230  ;;  %v2840_v17 = vadd.f32 1.0, %v5582_v28  ;;  %v2843_v47 = vmul.f32 -0.5, %v5582_v28  ;;  %v2846_v50 = vand.u32 2147483647, %v5582_v28  ;;  %vm5629_vm4 = vcmp.lt.f32.partialorder %v2801_v16, 0.0004427343 }
 0xd2f   :  { %v5590_v55 = vpop.eup %4232  ;;  %v2822_v18 = vadd.f32 1.0, %v5586_v56  ;;  %v2825_v45 = vmul.f32 -0.5, %v5586_v56  ;;  %v2828_v54 = vand.u32 2147483647, %v5586_v56 }
 0xd30   :  { %v5594_v11 = vpop.eup %4234  ;;  %4246 = vlog2.f32 %v2840_v17  ;;  %v2849_v10 = vadd.f32 1.0, %v5590_v55  ;;  %v2844_v31 = vadd.f32 1.0, %v2843_v47  ;;  %v2852_v12 = vmul.f32 -0.5, %v5590_v55 }
 0xd31   :  { %4248 = vlog2.f32 %v2822_v18  ;;  %v2831_v14 = vadd.f32 1.0, %v5594_v11  ;;  %v2834_v19 = vmul.f32 -0.5, %v5594_v11  ;;  %v2826_v6 = vadd.f32 1.0, %v2825_v45 }
 0xd32   :  { %v4237_v13 = vpop.eup %4236  ;;  %v2837_v48 = vand.u32 2147483647, %v5594_v11  ;;  %v2845_v17 = vmul.f32 %v5582_v28, %v2844_v31  ;;  %vm5642_vm15 = vcmp.lt.f32.partialorder %v2846_v50, 0.0004427343  ;;  %vm2829_vm5 = vcmp.lt.f32.partialorder %v2828_v54, 0.0004427343 }
 0xd33   :  { %v4239_v7 = vpop.eup %4238  ;;  %v2806_v60 = vmul.f32 0.6931472, %v4237_v13  ;;  %4250 = vlog2.f32 %v2831_v14  ;;  %v2835_v30 = vadd.f32 1.0, %v2834_v19  ;;  %v2827_v28 = vmul.f32 %v5586_v56, %v2826_v6  ;;  %v3945_v54 = vld [vmem:[%s5852_s22 + $0x8] sm:$0xff]  }
 0xd34   :  { %v4241_v23 = vpop.eup %4240  ;;  %v2788_v49 = vmul.f32 0.6931472, %v4239_v7  ;;  %4252 = vlog2.f32 %v2849_v10  ;;  %v2853_v14 = vadd.f32 1.0, %v2852_v12  ;;  %vm5664_vm6 = vcmp.lt.f32.partialorder %v2837_v48, 0.0004427343  ;;  %v3947_v12 = vld [vmem:[%s5852_s22 + $0x18] sm:$0xff]  }
 0xd35   :  { %v5619_v38 = vpop.eup %4242  ;;  %v2812_v5 = vsel %vm5596_vm3, %v2809_v37, %v2806_v60  ;;  %v2815_v43 = vmul.f32 0.6931472, %v4241_v23  ;;  %vm2744_vm3 = vcmp.ne.f32.partialorder %v5560_v36, %v5560_v36  ;;  %v3950_v48 = vld [vmem:[%s5852_s22 + $0x30] sm:$0xff]  }
 0xd36   :  { %v2860_v20 = vadd.f32 %v2812_v5, %v2732_v3  ;;  %v3090_v57 = vadd.f32 1.0, %v5619_v38  ;;  %v4245_v26 = vpop.eup %4244  ;;  %v2794_v59 = vsel %vm5606_vm11, %v2791_v21, %v2788_v49  ;;  %v2800_v3 = vmul.f32 %v5575_v41, %v2799_v0 }
 0xd37   :  { %v2821_v35 = vsel %vm5612_vm12, %v2818_v25, %v2815_v43  ;;  %v2797_v63 = vmul.f32 0.6931472, %v4245_v26  ;;  %v3093_v47 = vmul.f32 -0.5, %v5619_v38  ;;  %v3940_v25 = vld [vmem:[%s5850_s20] sm:$0xff]   ;;  %v2854_v49 = vmul.f32 %v5590_v55, %v2853_v14 }
 0xd38   :  { %v2861_v22 = vadd.f32 %v2821_v35, %v2733_v39  ;;  %4254 = vlog2.f32 %v3090_v57  ;;  %v2868_v18 = vsel %vm2740_vm9, %v5548_v46, %v2860_v20  ;;  %v2858_v39 = vadd.f32 %v2794_v59, %v2730_v62  ;;  %v3944_v59 = vld [vmem:[%s5852_s22] sm:$0xff]  }
 0xd39   :  { %v2803_v10 = vsel %vm5629_vm4, %v2800_v3, %v2797_v63  ;;  %v2836_v62 = vmul.f32 %v5594_v11, %v2835_v30  ;;  %v3094_v0 = vadd.f32 1.0, %v3093_v47  ;;  %v3096_v50 = vand.u32 2147483647, %v5619_v38  ;;  %3801 = vmatpush3.bf16.msra.mxu1 %v3944_v59  ;;  %v3949_v3 = vld [vmem:[%s5852_s22 + $0x28] sm:$0xff]   ;;  %v3951_v63 = vld [vmem:[%s5852_s22 + $0x38] sm:$0xff]  }
 0xd3a   :  { %v4247_v40 = vpop.eup %4246  ;;  %v2869_v41 = vsel %vm2741_vm10, %v5553_v42, %v2861_v22  ;;  %v2859_v46 = vadd.f32 %v2803_v10, %v2731_v34  ;;  %v2855_v42 = vand.u32 2147483647, %v5590_v55  ;;  %v2866_v34 = vsel %vm2738_vm13, %v5550_v27, %v2858_v39  ;;  %v3941_v55 = vld [vmem:[%s5850_s20 + $0x8] sm:$0xff]   ;;  %3802 = vmatprep.subr.bf16.mxu1 %v4301_v2  ;;  %v3948_v22 = vld [vmem:[%s5852_s22 + $0x20] sm:$0xff]  }
 0xd3b   :  { %v4249_v53 = vpop.eup %4248  ;;  %v2891_v29 = vpack.c.bf16 %v2869_v41, %v2868_v18  ;;  %v2842_v61 = vmul.f32 0.6931472, %v4247_v40  ;;  %vm2745_vm9 = vcmp.ne.f32.partialorder %v5565_v4, %v5565_v4  ;;  %v3095_v20 = vmul.f32 %v5619_v38, %v3094_v0  ;;  %v3487_v30 = vld [vmem:[#allocation2] ss:$0 sm:$0xff] }
 0xd3c   :  { %v2824_v13 = vmul.f32 0.6931472, %v4249_v53  ;;  %v2867_v45 = vsel %vm2739_vm14, %v5556_v44, %v2859_v46  ;;  %vm2856_vm1 = vcmp.lt.f32.partialorder %v2855_v42, 0.0004427343  ;;  %vm3097_vm10 = vcmp.lt.f32.partialorder %v3096_v50, 0.0004427343 }
 0xd3d   :  { %v4251_v37 = vpop.eup %4250  ;;  %v2848_v51 = vsel %vm5642_vm15, %v2845_v17, %v2842_v61  ;;  %v2890_v60 = vpack.c.bf16 %v2867_v45, %v2866_v34  ;;  %vm3084_vm11 = vcmp.ne.f32.partialorder %v5572_v33, %v5572_v33  ;;  %3803 = vmatpush3.bf16.msra.mxu1 %v3945_v54  ;;  %v3014_v41 = vld [vmem:[%s5933_s17] sm:$0xff]  ;;  %v3015_v61 = vld [vmem:[%s5933_s17 + $0x8] sm:$0xff]  ;;  %v3021_v45 = vld [vmem:[%s5933_s17 + $0x38] sm:$0xff]  ;;  %vm3314_vm13 = vcmask 17408  }
 0xd3e   :  { %v4253_v16 = vpop.eup %4252  ;;  %v2830_v7 = vsel %vm2829_vm5, %v2827_v28, %v2824_v13  ;;  %v2833_v11 = vmul.f32 0.6931472, %v4251_v37  ;;  %v2864_v44 = vadd.f32 %v2848_v51, %v2736_v9  ;;  %3804 = vmatprep.subr.bf16.mxu1 %v4301_v2  ;;  %v3020_v37 = vld [vmem:[%s5933_s17 + $0x30] sm:$0xff]  ;;  %v3018_v51 = vld [vmem:[%s5933_s17 + $0x20] sm:$0xff] }
 0xd3f   :  { %v2862_v21 = vadd.f32 %v2830_v7, %v2734_v1  ;;  %v2851_v23 = vmul.f32 0.6931472, %v4253_v16  ;;  %3774 = vmatprep.mubr.bf16.mxu0 %v2890_v60 }
 0xd40   :  { %v2839_v27 = vsel %vm5664_vm6, %v2836_v62, %v2833_v11  ;;  %3775 = vmatmul.mubr.bf16.vlgmr.msra.gmra.mrb[40].mxu0 %v2891_v29 }
 0xd41   :  { %v2863_v5 = vadd.f32 %v2839_v27, %v2735_v15  ;;  %v2857_v43 = vsel %vm2856_vm1, %v2854_v49, %v2851_v23  ;;  %3789 = vmatpush3.bf16.msra.mxu0 %v3940_v25  ;;  %v2870_v15 = vsel %vm2742_vm7, %v5562_v24, %v2862_v21  ;;  %v3083_v24 = vmax.f32 %v5572_v33, 0.0  ;;  %v3019_v25 = vld [vmem:[%s5933_s17 + $0x28] sm:$0xff]  ;;  %v3497_v27 = vld [vmem:[%s5851_s21] ss:$0 sm:$0xff] }
 0xd42   :  { %v4255_v19 = vpop.eup %4254  ;;  %v2865_v9 = vadd.f32 %v2857_v43, %v2737_v52  ;;  %3790 = vmatprep.subr.bf16.mxu0 %v4301_v2  ;;  %v2872_v52 = vsel %vm2744_vm3, %v5560_v36, %v2864_v44  ;;  %v3943_v36 = vld [vmem:[%s5850_s20 + $0x18] sm:$0xff]  }
 0xd43   :  { %v3092_v1 = vmul.f32 0.6931472, %v4255_v19  ;;  %v2871_v31 = vsel %vm2743_vm8, %v5568_v32, %v2863_v5  ;;  %v3942_v32 = vld [vmem:[%s5850_s20 + $0x10] sm:$0xff]  }
 0xd44   :  { %v2892_v57 = vpack.c.bf16 %v2871_v31, %v2870_v15  ;;  %v2873_v8 = vsel %vm2745_vm9, %v5565_v4, %v2865_v9 }
 0xd45   :  { %v2893_v6 = vpack.c.bf16 %v2873_v8, %v2872_v52  ;;  %v3098_v26 = vsel %vm3097_vm10, %v3095_v20, %v3092_v1  ;;  %3791 = vmatpush3.bf16.msra.mxu0 %v3941_v55 }
 0xd46   :  { %3778 = vmatprep.mubr.bf16.mxu0 %v2892_v57  ;;  %3792 = vmatprep.subr.bf16.mxu0 %v4301_v2  ;;  %v3099_v38 = vadd.f32 %v3098_v26, %v3083_v24 }
 0xd48   :  { %3779 = vmatmul.mubr.bf16.gmra.mrb[44].mxu0 %v2893_v6  ;;  %v3100_v4 = vsel %vm3084_vm11, %v5572_v33, %v3099_v38  ;;  %v3946_v33 = vld [vmem:[%s5852_s22 + $0x10] sm:$0xff]  }
 0xd49   :  { %3793 = vmatpush3.bf16.msra.mxu0 %v3942_v32  ;;  %3796 = vmatprep.mubr.msk.bf16.mxu0 %vm4302_vm0, %v4301_v2  ;;  %v3109_v35 = vpack.c.bf16 %v3100_v4, %v3100_v4  ;;  %vm3030_vm0 = vcmask 7168  }
 0xd4a   :  { %3794 = vmatprep.subr.bf16.mxu0 %v4301_v2  ;;  %3805 = vmatpush3.bf16.msra.mxu1 %v3946_v33 }
 0xd4b   :  { %3806 = vmatprep.subr.bf16.mxu1 %v4301_v2 }
 0xd4d   :  { %3795 = vmatpush3.bf16.msra.mxu0 %v3943_v36 }
 0xd4e   :  { %3807 = vmatpush3.bf16.msra.mxu1 %v3947_v12 }
 0xd4f   :  { %3808 = vmatprep.subr.bf16.mxu1 %v4301_v2 }
 0xd50   :  { %3797 = vmatmul.mubr.msk.bf16.vlgmr.msra.gmra.mrb[48].mxu0 %vm392_vm2, %v3109_v35  ;;  %v3503_v35 = vld [vmem:[%s5853_s23] ss:$0 sm:$0xff] }
 0xd52   :  { %3809 = vmatpush3.bf16.msra.mxu1 %v3948_v22 }
 0xd53   :  { %3810 = vmatprep.subr.bf16.mxu1 %v4301_v2 }
 0xd56   :  { %3811 = vmatpush3.bf16.msra.mxu1 %v3949_v3 }
 0xd57   :  { %3812 = vmatprep.subr.bf16.mxu1 %v4301_v2 }
 0xd5a   :  { %3813 = vmatpush3.bf16.msra.mxu1 %v3950_v48 }
 0xd5b   :  { %3814 = vmatprep.subr.bf16.mxu1 %v4301_v2  ;;  %v3017_v2 = vld [vmem:[%s5933_s17 + $0x18] sm:$0xff] }
 0xd5e   :  { %3815 = vmatpush3.bf16.msra.mxu1 %v3951_v63 }
 0xe13   :  { %v3776_v17 = vpop.f32.mrb[40].mxu0 }
 0xe14   :  { %v2992_v40 = vadd.f32 %v3776_v17, %v3487_v30  ;;  %v2983_v18 = vpop.f32.mrb[41].mxu0 }
 0xe15   :  { %v2984_v39 = vadd.f32 %v3487_v30, %v2983_v18  ;;  %v3777_v28 = vpop.f32.mrb[42].mxu0 }
 0xe16   :  { %v3024_v53 = vmul.f32 %v3016_v58, %v2992_v40  ;;  %v2995_v29 = vadd.f32 %v3777_v28, %v3487_v30  ;;  %v2986_v10 = vpop.f32.mrb[43].mxu0 }
 0xe17   :  { %v3022_v14 = vmul.f32 %v3014_v41, %v2984_v39  ;;  %v2987_v47 = vadd.f32 %v3487_v30, %v2986_v10 }
 0xe18   :  { %3033 = vst.msk [vmem:[%s5854_s24 + $0x10] sm:$0xff] %vm3030_vm0, %v3024_v53  ;;  %v3025_v46 = vmul.f32 %v3017_v2, %v2995_v29 }
 0xe19   :  { %3031 = vst.msk [vmem:[%s5854_s24] sm:$0xff] %vm3030_vm0, %v3022_v14  ;;  %v3023_v13 = vmul.f32 %v3015_v61, %v2987_v47 }
 0xe1a   :  { %3034 = vst.msk [vmem:[%s5854_s24 + $0x18] sm:$0xff] %vm3030_vm0, %v3025_v46 }
 0xe1b   :  { %3032 = vst.msk [vmem:[%s5854_s24 + $0x8] sm:$0xff] %vm3030_vm0, %v3023_v13  ;;  %v3780_v42 = vpop.f32.mrb[44].mxu0 }
 0xe1c   :  { %v3008_v62 = vadd.f32 %v3780_v42, %v3487_v30  ;;  %v2999_v56 = vpop.f32.mrb[45].mxu0 }
 0xe1d   :  { %v3000_v16 = vadd.f32 %v3487_v30, %v2999_v56  ;;  %v3781_v34 = vpop.f32.mrb[46].mxu0 }
 0xe1e   :  { %v3028_v7 = vmul.f32 %v3020_v37, %v3008_v62  ;;  %v3011_v11 = vadd.f32 %v3781_v34, %v3487_v30  ;;  %v3002_v60 = vpop.f32.mrb[47].mxu0 }
 0xe1f   :  { %v3026_v21 = vmul.f32 %v3018_v51, %v3000_v16  ;;  %v3003_v23 = vadd.f32 %v3487_v30, %v3002_v60 }
 0xe20   :  { %3037 = vst.msk [vmem:[%s5854_s24 + $0x30] sm:$0xff] %vm3030_vm0, %v3028_v7  ;;  %v3029_v49 = vmul.f32 %v3021_v45, %v3011_v11 }
 0xe21   :  { %3035 = vst.msk [vmem:[%s5854_s24 + $0x20] sm:$0xff] %vm3030_vm0, %v3026_v21  ;;  %v3027_v0 = vmul.f32 %v3019_v25, %v3003_v23 }
 0xe22   :  { %3038 = vst.msk [vmem:[%s5854_s24 + $0x38] sm:$0xff] %vm3030_vm0, %v3029_v49 }
 0xe23   :  { %3036 = vst.msk [vmem:[%s5854_s24 + $0x28] sm:$0xff] %vm3030_vm0, %v3027_v0  ;;  %v3178_v44 = vpop.f32.mrb[48].mxu0 }
 0xe24   :  { %v3179_v50 = vadd.f32 %v3497_v27, %v3178_v44  ;;  %v3798_v5 = vpop.f32.mrb[49].mxu0 }
 0xe25   :  { %v3181_v43 = vpop.f32.mrb[50].mxu0 }
 0xe26   :  { %v3187_v19 = vand.u32 2147483647, %v3179_v50  ;;  %v3799_v9 = vpop.f32.mrb[51].mxu0  ;;  %v3184_v24 = vmax.f32 %v3179_v50, 0.0  ;;  %vm3185_vm12 = vcmp.ne.f32.partialorder %v3179_v50, %v3179_v50 }
 0xe28   :  { %v3188_v1 = vsub.f32 0.0, %v3187_v19 }
 0xe2a   :  { %v3189_v55 = vmul.f32 1.442695, %v3188_v1 }
 0xe2c   :  { %4256 = vpow2.f32 %v3189_v55 }
 0xe36   :  { %v4257_v15 = vpop.eup %4256 }
 0xe37   :  { %v3191_v31 = vadd.f32 1.0, %v4257_v15  ;;  %v3194_v20 = vmul.f32 -0.5, %v4257_v15  ;;  %v3197_v52 = vand.u32 2147483647, %v4257_v15 }
 0xe39   :  { %4258 = vlog2.f32 %v3191_v31  ;;  %v3195_v57 = vadd.f32 1.0, %v3194_v20  ;;  %vm3198_vm2 = vcmp.lt.f32.partialorder %v3197_v52, 0.0004427343 }
 0xe3b   :  { %v3196_v26 = vmul.f32 %v4257_v15, %v3195_v57 }
 0xe43   :  { %v4259_v8 = vpop.eup %4258 }
 0xe44   :  { %v3193_v6 = vmul.f32 0.6931472, %v4259_v8 }
 0xe46   :  { %v3199_v32 = vsel %vm3198_vm2, %v3196_v26, %v3193_v6 }
 0xe47   :  { %v3200_v38 = vadd.f32 %v3199_v32, %v3184_v24 }
 0xe49   :  { %v3201_v36 = vsel %vm3185_vm12, %v3179_v50, %v3200_v38 }
 0xe4a   :  { %v3218_v4 = vpack.c.bf16 %v3201_v36, %v3201_v36 }
 0xe4c   :  { %3817 = vmatmul.mubr.bf16.vlgmr.msra.gmra.mrb[48].mxu1 %v3218_v4 }
 0xf1f   :  { %v3308_v59 = vpop.f32.mrb[48].mxu1 }
 0xf20   :  { %v3309_v54 = vadd.f32 %v3503_v35, %v3308_v59  ;;  %v3818_v33 = vpop.f32.mrb[49].mxu1 }
 0xf21   :  { %v3311_v12 = vpop.f32.mrb[50].mxu1 }
 0xf22   :  { %v3819_v22 = vpop.f32.mrb[51].mxu1  ;;  %3315 = vst.msk [vmem:[#allocation3] sm:$0x3] %vm3314_vm13, %v3309_v54 }
 0xf23   :  { %4288 = shalt.err (!%p4285_p4)
}
 0xf24   :  { %s4289_s23 = scalar_lea.hbm %s5855_s25, 32 }
 0xf25   :  { %p4290_p5 = scmp.ne.s32.totalorder %s5855_s25, %s4289_s23  ;;  %p4293_p6 = scmp.lt.u32.totalorder %s4289_s23, %s5855_s25 }
 0xf27   :  { %p4295_p7 = pnand %p4293_p6, %p4290_p5 }
 0xf29   :  { %4298 = shalt.err (!%p4295_p7)
}
 0xf2a   :  { %3327 = dma.vmem_to_hbm [thread:$0]  %s3325_s12, 32, %s5855_s25, [#allocation4]  }
 0xf2b   :  { %4299 = dma.done.wait [#allocation4], 32  }
 0xf2c   :  { %4300 = vsyncadd [#allocation4], 4294967264 }
 0xf2d   :  { %3333 = vsyncpa [#allocation4], 1 }

</bundles_post_ra>
